<compile_context>
chip_gen: v5e
topology: v5e:2x2
jax: 0.10.0
libtpu: 0.0.40
codegen_flags: <defaults>
</compile_context>

<pallas_src>
import functools
import math

import jax
import jax.numpy as jnp
from jax.experimental import pallas as pl
from jax.experimental.pallas import tpu as pltpu

_EPS = 1e-5

_CP = getattr(pltpu, "CompilerParams", None)
if _CP is None:  # very old jax fallback
    _CP = getattr(pltpu, "TPUCompilerParams")


def _recip(x):
    # approximate reciprocal lowers to the EUP (free slot); fallback = plain divide.
    if hasattr(pl, "reciprocal"):
        return pl.reciprocal(x, approx=True)
    return 1.0 / x


def _sigmoid(y):
    # f32 sigmoid (keep transcendental in f32 even with bf16 matmul operands).
    return _recip(1.0 + jnp.exp(-y))


def _layernorm(y, g, b, eps=_EPS):
    mu = jnp.mean(y, axis=-1, keepdims=True)
    var = jnp.mean((y - mu) ** 2, axis=-1, keepdims=True)
    return (y - mu) * jax.lax.rsqrt(var + eps) * g + b


# ----------------------------- fused kernels -----------------------------

def _encoder_layer_kernel(x_ref, wqkv_ref, bqkv_ref, wo_ref, bo_ref,
                          ln1g_ref, ln1b_ref, w1_ref, b1_ref, w2_ref, b2_ref,
                          ln2g_ref, ln2b_ref, o_ref, qkv_scr, attn_scr,
                          *, num_heads, seq_len):
    M, E = x_ref.shape                  # rows grouped as (M // seq_len) attention batches
    L = seq_len
    nb = M // L
    dh = E // num_heads
    scale = 1.0 / math.sqrt(dh)

    x = x_ref[...]                      # (M, E) f32

    # Fused QKV projection: bf16 MXU, f32 accumulation, lane-dense (3E) output.
    qkv_scr[...] = jnp.dot(x.astype(jnp.bfloat16), wqkv_ref[...],
                           preferred_element_type=jnp.float32) + bqkv_ref[...]

    # Multi-head self attention (heads & batch groups unrolled; all tiny & VMEM-resident).
    for n in range(nb):
        r0 = n * L
        for h in range(num_heads):
            c0 = h * dh
            qh = qkv_scr[r0:r0 + L, c0:c0 + dh].astype(jnp.bfloat16)
            kh = qkv_scr[r0:r0 + L, E + c0:E + c0 + dh].astype(jnp.bfloat16)
            vh = qkv_scr[r0:r0 + L, 2 * E + c0:2 * E + c0 + dh].astype(jnp.bfloat16)
            s = jnp.einsum("qd,kd->qk", qh, kh,
                           preferred_element_type=jnp.float32) * scale
            s = s - jnp.max(s, axis=-1, keepdims=True)
            p = jnp.exp(s)
            p = p * _recip(jnp.sum(p, axis=-1, keepdims=True))
            attn_scr[r0:r0 + L, c0:c0 + dh] = jnp.dot(
                p.astype(jnp.bfloat16), vh, preferred_element_type=jnp.float32)

    # Output projection of the concatenated heads (single MXU dot).
    attn = jnp.dot(attn_scr[...].astype(jnp.bfloat16), wo_ref[...],
                   preferred_element_type=jnp.float32) + bo_ref[...]

    # Add & Norm 1 (post-norm, torch default).
    y = _layernorm(x + attn, ln1g_ref[...], ln1b_ref[...])

    # Feed-forward: Linear -> ReLU -> Linear (torch default), dropout = identity (eval).
    h1 = jnp.dot(y.astype(jnp.bfloat16), w1_ref[...],
                 preferred_element_type=jnp.float32) + b1_ref[...]
    h1 = jnp.maximum(h1, 0.0)
    h2 = jnp.dot(h1.astype(jnp.bfloat16), w2_ref[...],
                 preferred_element_type=jnp.float32) + b2_ref[...]

    # Add & Norm 2.
    o_ref[...] = _layernorm(y + h2, ln2g_ref[...], ln2b_ref[...])


def _cross_attention_kernel(q_ref, kv_ref, wq_ref, bq_ref, wkv_ref, bkv_ref,
                            wo_ref, bo_ref, lnag_ref, lnab_ref,
                            w1_ref, b1_ref, w2_ref, b2_ref, lnfg_ref, lnfb_ref,
                            o_ref, q_scr, kv_scr, attn_scr,
                            *, num_heads, q_len, kv_len):
    Mq, E = q_ref.shape
    Lq, Lk = q_len, kv_len
    nb = Mq // Lq
    dh = E // num_heads
    scale = 1.0 / math.sqrt(dh)

    q_scr[...] = jnp.dot(q_ref[...].astype(jnp.bfloat16), wq_ref[...],
                         preferred_element_type=jnp.float32) + bq_ref[...]
    kv_scr[...] = jnp.dot(kv_ref[...].astype(jnp.bfloat16), wkv_ref[...],
                          preferred_element_type=jnp.float32) + bkv_ref[...]

    for n in range(nb):
        rq, rk = n * Lq, n * Lk
        for h in range(num_heads):
            c0 = h * dh
            qh = q_scr[rq:rq + Lq, c0:c0 + dh].astype(jnp.bfloat16)
            kh = kv_scr[rk:rk + Lk, c0:c0 + dh].astype(jnp.bfloat16)
            vh = kv_scr[rk:rk + Lk, E + c0:E + c0 + dh].astype(jnp.bfloat16)
            s = jnp.einsum("qd,kd->qk", qh, kh,
                           preferred_element_type=jnp.float32) * scale
            s = s - jnp.max(s, axis=-1, keepdims=True)
            p = jnp.exp(s)
            p = p * _recip(jnp.sum(p, axis=-1, keepdims=True))
            attn_scr[rq:rq + Lq, c0:c0 + dh] = jnp.dot(
                p.astype(jnp.bfloat16), vh, preferred_element_type=jnp.float32)

    attn = jnp.dot(attn_scr[...].astype(jnp.bfloat16), wo_ref[...],
                   preferred_element_type=jnp.float32) + bo_ref[...]

    # LayerNorm of the attention output (reference has NO residual here).
    ca = _layernorm(attn, lnag_ref[...], lnab_ref[...])

    # Linear -> Swish -> Linear, residual with `ca`, final LayerNorm.
    h1 = jnp.dot(ca.astype(jnp.bfloat16), w1_ref[...],
                 preferred_element_type=jnp.float32) + b1_ref[...]
    h1 = h1 * _sigmoid(h1)
    h2 = jnp.dot(h1.astype(jnp.bfloat16), w2_ref[...],
                 preferred_element_type=jnp.float32) + b2_ref[...]
    o_ref[...] = _layernorm(h2 + ca, lnfg_ref[...], lnfb_ref[...])


def _reduction_kernel(enc_ref, att_ref, w_enc_ref, w_att_ref, g_ref, b_ref,
                      rm_ref, rv_ref, res_ref, o_ref, *, eps):
    # cat([enc, att], channel) -> Conv1d(2E, E, k=1, bias=False)
    #   == enc @ W_enc + att @ W_att  (channels-last).
    y = jnp.dot(enc_ref[...].astype(jnp.bfloat16), w_enc_ref[...],
                preferred_element_type=jnp.float32)
    y = y + jnp.dot(att_ref[...].astype(jnp.bfloat16), w_att_ref[...],
                    preferred_element_type=jnp.float32)
    # BatchNorm1d (eval mode: running stats).
    y = (y - rm_ref[...]) * jax.lax.rsqrt(rv_ref[...] + eps) * g_ref[...] + b_ref[...]
    # Swish, then residual with the positionally-encoded input.
    y = y * _sigmoid(y)
    o_ref[...] = y + res_ref[...]


# ----------------------------- wrappers (pallas_call glue) -----------------------------

def _rep2(i):
    return (0, 0)


def transformer_encoder_layer_2d(x2, p, *, num_heads, seq_len):
    M, E = x2.shape
    FF = p["w1"].shape[1]
    groups = M // seq_len
    # Two parallel row-group blocks when legal (lets v7x shard over both TensorCores).
    n_blk = 2 if (groups % 2 == 0 and (M // 2) % 8 == 0) else 1
    Mb = M // n_blk
    kernel = functools.partial(_encoder_layer_kernel, num_heads=num_heads, seq_len=seq_len)
    return pl.pallas_call(
        kernel,
        out_shape=jax.ShapeDtypeStruct((M, E), jnp.float32),
        grid=(n_blk,),
        in_specs=[
            pl.BlockSpec((Mb, E), lambda i: (i, 0)),
            pl.BlockSpec((E, 3 * E), _rep2),
            pl.BlockSpec((1, 3 * E), _rep2),
            pl.BlockSpec((E, E), _rep2),
            pl.BlockSpec((1, E), _rep2),
            pl.BlockSpec((1, E), _rep2),
            pl.BlockSpec((1, E), _rep2),
            pl.BlockSpec((E, FF), _rep2),
            pl.BlockSpec((1, FF), _rep2),
            pl.BlockSpec((FF, E), _rep2),
            pl.BlockSpec((1, E), _rep2),
            pl.BlockSpec((1, E), _rep2),
            pl.BlockSpec((1, E), _rep2),
        ],
        out_specs=pl.BlockSpec((Mb, E), lambda i: (i, 0)),
        scratch_shapes=[pltpu.VMEM((Mb, 3 * E), jnp.float32),
                        pltpu.VMEM((Mb, E), jnp.float32)],
        compiler_params=_CP(dimension_semantics=("parallel",)),
    )(x2, p["wqkv"], p["bqkv"], p["wo"], p["bo"],
      p["ln1_g"], p["ln1_b"], p["w1"], p["b1"], p["w2"], p["b2"],
      p["ln2_g"], p["ln2_b"])


def transformer_encoder(x, layers_params, num_heads):
    # batch_first=False encoders fed a (B,S,E) tensor: attention runs over dim 0 (B),
    # "batch" is S.  Keep activations as 2D (S*B, E) row-groups across the whole stack.
    B, S, E = x.shape
    xb = jnp.transpose(x, (1, 0, 2)).reshape(S * B, E)
    for p in layers_params:
        xb = transformer_encoder_layer_2d(xb, p, num_heads=num_heads, seq_len=B)
    return jnp.transpose(xb.reshape(S, B, E), (1, 0, 2))


def cross_attention_block(q_in, kv_in, p, num_heads):
    # batch_first=True MHA(Q, K=V=kv) + LN + (Linear->Swish->Linear) + residual + LN.
    B, Lq, E = q_in.shape
    Lk = kv_in.shape[1]
    FF = p["w1"].shape[1]
    q2 = q_in.reshape(B * Lq, E)
    kv2 = kv_in.reshape(B * Lk, E)
    n_blk = B if (Lq % 8 == 0 and Lk % 8 == 0 and B > 1) else 1
    gq = (B // n_blk) * Lq
    gk = (B // n_blk) * Lk
    kernel = functools.partial(_cross_attention_kernel, num_heads=num_heads,
                               q_len=Lq, kv_len=Lk)
    out2 = pl.pallas_call(
        kernel,
        out_shape=jax.ShapeDtypeStruct((B * Lq, E), jnp.float32),
        grid=(n_blk,),
        in_specs=[
            pl.BlockSpec((gq, E), lambda i: (i, 0)),
            pl.BlockSpec((gk, E), lambda i: (i, 0)),
            pl.BlockSpec((E, E), _rep2),
            pl.BlockSpec((1, E), _rep2),
            pl.BlockSpec((E, 2 * E), _rep2),
            pl.BlockSpec((1, 2 * E), _rep2),
            pl.BlockSpec((E, E), _rep2),
            pl.BlockSpec((1, E), _rep2),
            pl.BlockSpec((1, E), _rep2),
            pl.BlockSpec((1, E), _rep2),
            pl.BlockSpec((E, FF), _rep2),
            pl.BlockSpec((1, FF), _rep2),
            pl.BlockSpec((FF, E), _rep2),
            pl.BlockSpec((1, E), _rep2),
            pl.BlockSpec((1, E), _rep2),
            pl.BlockSpec((1, E), _rep2),
        ],
        out_specs=pl.BlockSpec((gq, E), lambda i: (i, 0)),
        scratch_shapes=[pltpu.VMEM((gq, E), jnp.float32),
                        pltpu.VMEM((gk, 2 * E), jnp.float32),
                        pltpu.VMEM((gq, E), jnp.float32)],
        compiler_params=_CP(dimension_semantics=("parallel",)),
    )(q2, kv2, p["wq"], p["bq"], p["wkv"], p["bkv"], p["wo"], p["bo"],
      p["ln_a_g"], p["ln_a_b"], p["w1"], p["b1"], p["w2"], p["b2"],
      p["ln_f_g"], p["ln_f_b"])
    return out2.reshape(B, Lq, E)


def reduction_block(enc, att, p, res):
    B, S, E = enc.shape
    M = B * S
    n_blk = 2 if (M % 16 == 0) else 1
    Mb = M // n_blk
    out2 = pl.pallas_call(
        functools.partial(_reduction_kernel, eps=_EPS),
        out_shape=jax.ShapeDtypeStruct((M, E), jnp.float32),
        grid=(n_blk,),
        in_specs=[
            pl.BlockSpec((Mb, E), lambda i: (i, 0)),
            pl.BlockSpec((Mb, E), lambda i: (i, 0)),
            pl.BlockSpec((E, E), _rep2),
            pl.BlockSpec((E, E), _rep2),
            pl.BlockSpec((1, E), _rep2),
            pl.BlockSpec((1, E), _rep2),
            pl.BlockSpec((1, E), _rep2),
            pl.BlockSpec((1, E), _rep2),
            pl.BlockSpec((Mb, E), lambda i: (i, 0)),
        ],
        out_specs=pl.BlockSpec((Mb, E), lambda i: (i, 0)),
        compiler_params=_CP(dimension_semantics=("parallel",)),
    )(enc.reshape(M, E), att.reshape(M, E), p["w_enc"], p["w_att"],
      p["gamma"], p["beta"], p["rmean"], p["rvar"], res.reshape(M, E))
    return out2.reshape(B, S, E)


def positional_encoding(d_model, max_seq_len):
    position = jnp.arange(max_seq_len, dtype=jnp.float32)[:, None]
    div_term = jnp.exp(jnp.arange(0, d_model, 2, dtype=jnp.float32) *
                       (-math.log(10000.0) / d_model))
    pe = jnp.zeros((max_seq_len, d_model), jnp.float32)
    pe = pe.at[:, 0::2].set(jnp.sin(position * div_term))
    pe = pe.at[:, 1::2].set(jnp.cos(position * div_term))
    return pe


def seperator_block(audio, video, params, num_heads):
    B, S, E = audio.shape
    pe = params["pe"][:S][None, :, :]
    audio = audio + pe
    video = video + pe
    enc_a = transformer_encoder(audio, params["audio_enc"], num_heads)
    enc_v = transformer_encoder(video, params["video_enc"], num_heads)
    av = cross_attention_block(enc_v, enc_a, params["av_ca"], num_heads)
    va = cross_attention_block(av, enc_v, params["va_ca"], num_heads)
    a_out = reduction_block(enc_a, av, params["a_red"], audio)
    v_out = reduction_block(enc_v, va, params["v_red"], video)
    return a_out, v_out


# ----------------------------- deterministic parameter init -----------------------------

def init_params(key, d_model, num_layers, num_heads, ff=2048, max_seq_len=30):
    E = d_model
    keys = iter(jax.random.split(key, 256))
    bf16 = jnp.bfloat16

    def nrm(shape, scale=0.05, dtype=jnp.float32):
        return (jax.random.normal(next(keys), shape, jnp.float32) * scale).astype(dtype)

    def enc_layer_p():
        return {"wqkv": nrm((E, 3 * E), dtype=bf16), "bqkv": nrm((1, 3 * E)),
                "wo": nrm((E, E), dtype=bf16), "bo": nrm((1, E)),
                "ln1_g": jnp.ones((1, E), jnp.float32), "ln1_b": jnp.zeros((1, E), jnp.float32),
                "w1": nrm((E, ff), dtype=bf16), "b1": nrm((1, ff)),
                "w2": nrm((ff, E), dtype=bf16), "b2": nrm((1, E)),
                "ln2_g": jnp.ones((1, E), jnp.float32), "ln2_b": jnp.zeros((1, E), jnp.float32)}

    def ca_p():
        return {"wq": nrm((E, E), dtype=bf16), "bq": nrm((1, E)),
                "wkv": nrm((E, 2 * E), dtype=bf16), "bkv": nrm((1, 2 * E)),
                "wo": nrm((E, E), dtype=bf16), "bo": nrm((1, E)),
                "ln_a_g": jnp.ones((1, E), jnp.float32), "ln_a_b": jnp.zeros((1, E), jnp.float32),
                "w1": nrm((E, ff), dtype=bf16), "b1": nrm((1, ff)),
                "w2": nrm((ff, E), dtype=bf16), "b2": nrm((1, E)),
                "ln_f_g": jnp.ones((1, E), jnp.float32), "ln_f_b": jnp.zeros((1, E), jnp.float32)}

    def red_p():
        # Conv1d(2E, E, k=1, bias=False) split into enc / attn halves of the weight.
        return {"w_enc": nrm((E, E), dtype=bf16), "w_att": nrm((E, E), dtype=bf16),
                "gamma": jnp.ones((1, E), jnp.float32), "beta": jnp.zeros((1, E), jnp.float32),
                "rmean": jnp.zeros((1, E), jnp.float32), "rvar": jnp.ones((1, E), jnp.float32)}

    return {"pe": positional_encoding(E, max_seq_len),
            "audio_enc": [enc_layer_p() for _ in range(num_layers)],
            "video_enc": [enc_layer_p() for _ in range(num_layers)],
            "av_ca": ca_p(), "va_ca": ca_p(),
            "a_red": red_p(), "v_red": red_p()}


# ----------------------------- main -----------------------------

if __name__ == "__main__":
    B, S, E, H, L = 2, 8, 32, 4, 2   # batch, seq, d_model, n_head, num_layers
    key = jax.random.PRNGKey(0)
    ka, kv, kp = jax.random.split(key, 3)
    audio = jax.random.normal(ka, (B, S, E), jnp.float32)
    video = jax.random.normal(kv, (B, S, E), jnp.float32)
    params = init_params(kp, d_model=E, num_layers=L, num_heads=H)

    fwd = jax.jit(functools.partial(seperator_block, num_heads=H))
    a_out, v_out = fwd(audio, video, params)
    jax.block_until_ready((a_out, v_out))

    assert a_out.shape == (B, S, E) and v_out.shape == (B, S, E)
    assert a_out.dtype == jnp.float32 and v_out.dtype == jnp.float32
    assert bool(jnp.all(jnp.isfinite(a_out))) and bool(jnp.all(jnp.isfinite(v_out)))
    print("KERNEL_OK")
</pallas_src>

<mosaic_0001>
module attributes {stable_mosaic.version = 11 : i64} {
  func.func @_encoder_layer_kernel(%arg0: i32, %arg1: memref<8x32xf32, #tpu.memory_space<vmem>>, %arg2: memref<32x96xbf16, #tpu.memory_space<vmem>>, %arg3: memref<1x96xf32, #tpu.memory_space<vmem>>, %arg4: memref<32x32xbf16, #tpu.memory_space<vmem>>, %arg5: memref<1x32xf32, #tpu.memory_space<vmem>>, %arg6: memref<1x32xf32, #tpu.memory_space<vmem>>, %arg7: memref<1x32xf32, #tpu.memory_space<vmem>>, %arg8: memref<32x2048xbf16, #tpu.memory_space<vmem>>, %arg9: memref<1x2048xf32, #tpu.memory_space<vmem>>, %arg10: memref<2048x32xbf16, #tpu.memory_space<vmem>>, %arg11: memref<1x32xf32, #tpu.memory_space<vmem>>, %arg12: memref<1x32xf32, #tpu.memory_space<vmem>>, %arg13: memref<1x32xf32, #tpu.memory_space<vmem>>, %arg14: memref<8x32xf32, #tpu.memory_space<vmem>>, %arg15: memref<8x96xf32, #tpu.memory_space<vmem>>, %arg16: memref<8x32xf32, #tpu.memory_space<vmem>>) attributes {dimension_semantics = [#tpu.dimension_semantics<parallel>], iteration_bounds = array<i64: 2>, scalar_prefetch = 0 : i64, scratch_operands = 2 : i64, tpu.core_type = #tpu.core_type<tc>, window_params = [{transform_indices = @transform_0, window_bounds = array<i64: 8, 32>}, {pipeline_mode = #tpu.pipeline_mode<synchronous>, transform_indices = @transform_1, window_bounds = array<i64: 32, 96>}, {pipeline_mode = #tpu.pipeline_mode<synchronous>, transform_indices = @transform_2, window_bounds = array<i64: 1, 96>}, {pipeline_mode = #tpu.pipeline_mode<synchronous>, transform_indices = @transform_3, window_bounds = array<i64: 32, 32>}, {pipeline_mode = #tpu.pipeline_mode<synchronous>, transform_indices = @transform_4, window_bounds = array<i64: 1, 32>}, {pipeline_mode = #tpu.pipeline_mode<synchronous>, transform_indices = @transform_5, window_bounds = array<i64: 1, 32>}, {pipeline_mode = #tpu.pipeline_mode<synchronous>, transform_indices = @transform_6, window_bounds = array<i64: 1, 32>}, {pipeline_mode = #tpu.pipeline_mode<synchronous>, transform_indices = @transform_7, window_bounds = array<i64: 32, 2048>}, {pipeline_mode = #tpu.pipeline_mode<synchronous>, transform_indices = @transform_8, window_bounds = array<i64: 1, 2048>}, {pipeline_mode = #tpu.pipeline_mode<synchronous>, transform_indices = @transform_9, window_bounds = array<i64: 2048, 32>}, {pipeline_mode = #tpu.pipeline_mode<synchronous>, transform_indices = @transform_10, window_bounds = array<i64: 1, 32>}, {pipeline_mode = #tpu.pipeline_mode<synchronous>, transform_indices = @transform_11, window_bounds = array<i64: 1, 32>}, {pipeline_mode = #tpu.pipeline_mode<synchronous>, transform_indices = @transform_12, window_bounds = array<i64: 1, 32>}, {transform_indices = @transform_13, window_bounds = array<i64: 8, 32>}]} {
    %c0 = arith.constant 0 : index
    %c0_0 = arith.constant 0 : index
    %0 = vector.load %arg1[%c0, %c0_0] : memref<8x32xf32, #tpu.memory_space<vmem>>, vector<8x32xf32>
    %1 = arith.truncf %0 : vector<8x32xf32> to vector<8x32xbf16>
    %c0_1 = arith.constant 0 : index
    %c0_2 = arith.constant 0 : index
    %2 = vector.load %arg2[%c0_1, %c0_2] : memref<32x96xbf16, #tpu.memory_space<vmem>>, vector<32x96xbf16>
    %cst = arith.constant dense<0.000000e+00> : vector<8x96xf32>
    %3 = tpu.matmul %1, %2, %cst {dimension_numbers = #tpu.dot_dimension_numbers<[1], [0], [0], [1], [0, 0, 1, 1], [], []>} : vector<8x32xbf16>, vector<32x96xbf16>, vector<8x96xf32> -> vector<8x96xf32>
    %c0_3 = arith.constant 0 : index
    %c0_4 = arith.constant 0 : index
    %4 = vector.load %arg3[%c0_3, %c0_4] : memref<1x96xf32, #tpu.memory_space<vmem>>, vector<1x96xf32>
    %5 = vector.broadcast %4 : vector<1x96xf32> to vector<8x96xf32>
    %6 = arith.addf %3, %5 : vector<8x96xf32>
    %c0_5 = arith.constant 0 : index
    %c0_6 = arith.constant 0 : index
    %7 = vector.load %arg15[%c0_5, %c0_6] : memref<8x96xf32, #tpu.memory_space<vmem>>, vector<8x96xf32>
    tpu.vector_store %arg15[%c0_5, %c0_6], %6 {strides = array<i32>} : memref<8x96xf32, #tpu.memory_space<vmem>>, vector<8x96xf32>,
    %c0_7 = arith.constant 0 : index
    %c0_8 = arith.constant 0 : index
    %8 = vector.load %arg15[%c0_7, %c0_8] : memref<8x96xf32, #tpu.memory_space<vmem>>, vector<2x8xf32>
    %9 = arith.truncf %8 : vector<2x8xf32> to vector<2x8xbf16>
    %c0_9 = arith.constant 0 : index
    %c32 = arith.constant 32 : index
    %10 = vector.load %arg15[%c0_9, %c32] : memref<8x96xf32, #tpu.memory_space<vmem>>, vector<2x8xf32>
    %11 = arith.truncf %10 : vector<2x8xf32> to vector<2x8xbf16>
    %c0_10 = arith.constant 0 : index
    %c64 = arith.constant 64 : index
    %12 = vector.load %arg15[%c0_10, %c64] : memref<8x96xf32, #tpu.memory_space<vmem>>, vector<2x8xf32>
    %13 = arith.truncf %12 : vector<2x8xf32> to vector<2x8xbf16>
    "tpu.trace_start"() <{level = 10 : i32, message = "qd,kd->qk"}> : () -> ()
    %cst_11 = arith.constant dense<0.000000e+00> : vector<2x2xf32>
    %14 = tpu.matmul %9, %11, %cst_11 {dimension_numbers = #tpu.dot_dimension_numbers<[1], [1], [0], [0], [0, 0, 1, 0], [], []>} : vector<2x8xbf16>, vector<2x8xbf16>, vector<2x2xf32> -> vector<2x2xf32>
    "tpu.trace_stop"() : () -> ()
    %cst_12 = arith.constant 0.353553385 : f32
    %15 = vector.broadcast %cst_12 : f32 to vector<2x2xf32>
    %16 = arith.mulf %14, %15 : vector<2x2xf32>
    %cst_13 = arith.constant dense<0xFF800000> : vector<2xf32>
    %17 = vector.multi_reduction <maximumf>, %16, %cst_13 [1] : vector<2x2xf32> to vector<2xf32>
    %18 = vector.shape_cast %17 : vector<2xf32> to vector<2x1xf32>
    %19 = vector.broadcast %18 : vector<2x1xf32> to vector<2x2xf32>
    %20 = arith.subf %16, %19 : vector<2x2xf32>
    %21 = math.exp %20 : vector<2x2xf32>
    %cst_14 = arith.constant dense<0.000000e+00> : vector<2xf32>
    %22 = vector.multi_reduction <add>, %21, %cst_14 [1] : vector<2x2xf32> to vector<2xf32>
    %23 = vector.shape_cast %22 : vector<2xf32> to vector<2x1xf32>
    %24 = tpu.reciprocal %23 {approx = true} : vector<2x1xf32> -> vector<2x1xf32>
    %25 = vector.broadcast %24 : vector<2x1xf32> to vector<2x2xf32>
    %26 = arith.mulf %21, %25 : vector<2x2xf32>
    %27 = arith.truncf %26 : vector<2x2xf32> to vector<2x2xbf16>
    %cst_15 = arith.constant dense<0.000000e+00> : vector<2x8xf32>
    %28 = tpu.matmul %27, %13, %cst_15 {dimension_numbers = #tpu.dot_dimension_numbers<[1], [0], [0], [1], [0, 0, 1, 1], [], []>} : vector<2x2xbf16>, vector<2x8xbf16>, vector<2x8xf32> -> vector<2x8xf32>
    %c0_16 = arith.constant 0 : index
    %c0_17 = arith.constant 0 : index
    %29 = vector.load %arg16[%c0_16, %c0_17] : memref<8x32xf32, #tpu.memory_space<vmem>>, vector<2x8xf32>
    tpu.vector_store %arg16[%c0_16, %c0_17], %28 {strides = array<i32>} : memref<8x32xf32, #tpu.memory_space<vmem>>, vector<2x8xf32>,
    %c0_18 = arith.constant 0 : index
    %c8 = arith.constant 8 : index
    %30 = vector.load %arg15[%c0_18, %c8] : memref<8x96xf32, #tpu.memory_space<vmem>>, vector<2x8xf32>
    %31 = arith.truncf %30 : vector<2x8xf32> to vector<2x8xbf16>
    %c0_19 = arith.constant 0 : index
    %c40 = arith.constant 40 : index
    %32 = vector.load %arg15[%c0_19, %c40] : memref<8x96xf32, #tpu.memory_space<vmem>>, vector<2x8xf32>
    %33 = arith.truncf %32 : vector<2x8xf32> to vector<2x8xbf16>
    %c0_20 = arith.constant 0 : index
    %c72 = arith.constant 72 : index
    %34 = vector.load %arg15[%c0_20, %c72] : memref<8x96xf32, #tpu.memory_space<vmem>>, vector<2x8xf32>
    %35 = arith.truncf %34 : vector<2x8xf32> to vector<2x8xbf16>
    "tpu.trace_start"() <{level = 10 : i32, message = "qd,kd->qk"}> : () -> ()
    %cst_21 = arith.constant dense<0.000000e+00> : vector<2x2xf32>
    %36 = tpu.matmul %31, %33, %cst_21 {dimension_numbers = #tpu.dot_dimension_numbers<[1], [1], [0], [0], [0, 0, 1, 0], [], []>} : vector<2x8xbf16>, vector<2x8xbf16>, vector<2x2xf32> -> vector<2x2xf32>
    "tpu.trace_stop"() : () -> ()
    %cst_22 = arith.constant 0.353553385 : f32
    %37 = vector.broadcast %cst_22 : f32 to vector<2x2xf32>
    %38 = arith.mulf %36, %37 : vector<2x2xf32>
    %cst_23 = arith.constant dense<0xFF800000> : vector<2xf32>
    %39 = vector.multi_reduction <maximumf>, %38, %cst_23 [1] : vector<2x2xf32> to vector<2xf32>
    %40 = vector.shape_cast %39 : vector<2xf32> to vector<2x1xf32>
    %41 = vector.broadcast %40 : vector<2x1xf32> to vector<2x2xf32>
    %42 = arith.subf %38, %41 : vector<2x2xf32>
    %43 = math.exp %42 : vector<2x2xf32>
    %cst_24 = arith.constant dense<0.000000e+00> : vector<2xf32>
    %44 = vector.multi_reduction <add>, %43, %cst_24 [1] : vector<2x2xf32> to vector<2xf32>
    %45 = vector.shape_cast %44 : vector<2xf32> to vector<2x1xf32>
    %46 = tpu.reciprocal %45 {approx = true} : vector<2x1xf32> -> vector<2x1xf32>
    %47 = vector.broadcast %46 : vector<2x1xf32> to vector<2x2xf32>
    %48 = arith.mulf %43, %47 : vector<2x2xf32>
    %49 = arith.truncf %48 : vector<2x2xf32> to vector<2x2xbf16>
    %cst_25 = arith.constant dense<0.000000e+00> : vector<2x8xf32>
    %50 = tpu.matmul %49, %35, %cst_25 {dimension_numbers = #tpu.dot_dimension_numbers<[1], [0], [0], [1], [0, 0, 1, 1], [], []>} : vector<2x2xbf16>, vector<2x8xbf16>, vector<2x8xf32> -> vector<2x8xf32>
    %c0_26 = arith.constant 0 : index
    %c8_27 = arith.constant 8 : index
    %51 = vector.load %arg16[%c0_26, %c8_27] : memref<8x32xf32, #tpu.memory_space<vmem>>, vector<2x8xf32>
    tpu.vector_store %arg16[%c0_26, %c8_27], %50 {strides = array<i32>} : memref<8x32xf32, #tpu.memory_space<vmem>>, vector<2x8xf32>,
    %c0_28 = arith.constant 0 : index
    %c16 = arith.constant 16 : index
    %52 = vector.load %arg15[%c0_28, %c16] : memref<8x96xf32, #tpu.memory_space<vmem>>, vector<2x8xf32>
    %53 = arith.truncf %52 : vector<2x8xf32> to vector<2x8xbf16>
    %c0_29 = arith.constant 0 : index
    %c48 = arith.constant 48 : index
    %54 = vector.load %arg15[%c0_29, %c48] : memref<8x96xf32, #tpu.memory_space<vmem>>, vector<2x8xf32>
    %55 = arith.truncf %54 : vector<2x8xf32> to vector<2x8xbf16>
    %c0_30 = arith.constant 0 : index
    %c80 = arith.constant 80 : index
    %56 = vector.load %arg15[%c0_30, %c80] : memref<8x96xf32, #tpu.memory_space<vmem>>, vector<2x8xf32>
    %57 = arith.truncf %56 : vector<2x8xf32> to vector<2x8xbf16>
    "tpu.trace_start"() <{level = 10 : i32, message = "qd,kd->qk"}> : () -> ()
    %cst_31 = arith.constant dense<0.000000e+00> : vector<2x2xf32>
    %58 = tpu.matmul %53, %55, %cst_31 {dimension_numbers = #tpu.dot_dimension_numbers<[1], [1], [0], [0], [0, 0, 1, 0], [], []>} : vector<2x8xbf16>, vector<2x8xbf16>, vector<2x2xf32> -> vector<2x2xf32>
    "tpu.trace_stop"() : () -> ()
    %cst_32 = arith.constant 0.353553385 : f32
    %59 = vector.broadcast %cst_32 : f32 to vector<2x2xf32>
    %60 = arith.mulf %58, %59 : vector<2x2xf32>
    %cst_33 = arith.constant dense<0xFF800000> : vector<2xf32>
    %61 = vector.multi_reduction <maximumf>, %60, %cst_33 [1] : vector<2x2xf32> to vector<2xf32>
    %62 = vector.shape_cast %61 : vector<2xf32> to vector<2x1xf32>
    %63 = vector.broadcast %62 : vector<2x1xf32> to vector<2x2xf32>
    %64 = arith.subf %60, %63 : vector<2x2xf32>
    %65 = math.exp %64 : vector<2x2xf32>
    %cst_34 = arith.constant dense<0.000000e+00> : vector<2xf32>
    %66 = vector.multi_reduction <add>, %65, %cst_34 [1] : vector<2x2xf32> to vector<2xf32>
    %67 = vector.shape_cast %66 : vector<2xf32> to vector<2x1xf32>
    %68 = tpu.reciprocal %67 {approx = true} : vector<2x1xf32> -> vector<2x1xf32>
    %69 = vector.broadcast %68 : vector<2x1xf32> to vector<2x2xf32>
    %70 = arith.mulf %65, %69 : vector<2x2xf32>
    %71 = arith.truncf %70 : vector<2x2xf32> to vector<2x2xbf16>
    %cst_35 = arith.constant dense<0.000000e+00> : vector<2x8xf32>
    %72 = tpu.matmul %71, %57, %cst_35 {dimension_numbers = #tpu.dot_dimension_numbers<[1], [0], [0], [1], [0, 0, 1, 1], [], []>} : vector<2x2xbf16>, vector<2x8xbf16>, vector<2x8xf32> -> vector<2x8xf32>
    %c0_36 = arith.constant 0 : index
    %c16_37 = arith.constant 16 : index
    %73 = vector.load %arg16[%c0_36, %c16_37] : memref<8x32xf32, #tpu.memory_space<vmem>>, vector<2x8xf32>
    tpu.vector_store %arg16[%c0_36, %c16_37], %72 {strides = array<i32>} : memref<8x32xf32, #tpu.memory_space<vmem>>, vector<2x8xf32>,
    %c0_38 = arith.constant 0 : index
    %c24 = arith.constant 24 : index
    %74 = vector.load %arg15[%c0_38, %c24] : memref<8x96xf32, #tpu.memory_space<vmem>>, vector<2x8xf32>
    %75 = arith.truncf %74 : vector<2x8xf32> to vector<2x8xbf16>
    %c0_39 = arith.constant 0 : index
    %c56 = arith.constant 56 : index
    %76 = vector.load %arg15[%c0_39, %c56] : memref<8x96xf32, #tpu.memory_space<vmem>>, vector<2x8xf32>
    %77 = arith.truncf %76 : vector<2x8xf32> to vector<2x8xbf16>
    %c0_40 = arith.constant 0 : index
    %c88 = arith.constant 88 : index
    %78 = vector.load %arg15[%c0_40, %c88] : memref<8x96xf32, #tpu.memory_space<vmem>>, vector<2x8xf32>
    %79 = arith.truncf %78 : vector<2x8xf32> to vector<2x8xbf16>
    "tpu.trace_start"() <{level = 10 : i32, message = "qd,kd->qk"}> : () -> ()
    %cst_41 = arith.constant dense<0.000000e+00> : vector<2x2xf32>
    %80 = tpu.matmul %75, %77, %cst_41 {dimension_numbers = #tpu.dot_dimension_numbers<[1], [1], [0], [0], [0, 0, 1, 0], [], []>} : vector<2x8xbf16>, vector<2x8xbf16>, vector<2x2xf32> -> vector<2x2xf32>
    "tpu.trace_stop"() : () -> ()
    %cst_42 = arith.constant 0.353553385 : f32
    %81 = vector.broadcast %cst_42 : f32 to vector<2x2xf32>
    %82 = arith.mulf %80, %81 : vector<2x2xf32>
    %cst_43 = arith.constant dense<0xFF800000> : vector<2xf32>
    %83 = vector.multi_reduction <maximumf>, %82, %cst_43 [1] : vector<2x2xf32> to vector<2xf32>
    %84 = vector.shape_cast %83 : vector<2xf32> to vector<2x1xf32>
    %85 = vector.broadcast %84 : vector<2x1xf32> to vector<2x2xf32>
    %86 = arith.subf %82, %85 : vector<2x2xf32>
    %87 = math.exp %86 : vector<2x2xf32>
    %cst_44 = arith.constant dense<0.000000e+00> : vector<2xf32>
    %88 = vector.multi_reduction <add>, %87, %cst_44 [1] : vector<2x2xf32> to vector<2xf32>
    %89 = vector.shape_cast %88 : vector<2xf32> to vector<2x1xf32>
    %90 = tpu.reciprocal %89 {approx = true} : vector<2x1xf32> -> vector<2x1xf32>
    %91 = vector.broadcast %90 : vector<2x1xf32> to vector<2x2xf32>
    %92 = arith.mulf %87, %91 : vector<2x2xf32>
    %93 = arith.truncf %92 : vector<2x2xf32> to vector<2x2xbf16>
    %cst_45 = arith.constant dense<0.000000e+00> : vector<2x8xf32>
    %94 = tpu.matmul %93, %79, %cst_45 {dimension_numbers = #tpu.dot_dimension_numbers<[1], [0], [0], [1], [0, 0, 1, 1], [], []>} : vector<2x2xbf16>, vector<2x8xbf16>, vector<2x8xf32> -> vector<2x8xf32>
    %c0_46 = arith.constant 0 : index
    %c24_47 = arith.constant 24 : index
    %95 = vector.load %arg16[%c0_46, %c24_47] : memref<8x32xf32, #tpu.memory_space<vmem>>, vector<2x8xf32>
    tpu.vector_store %arg16[%c0_46, %c24_47], %94 {strides = array<i32>} : memref<8x32xf32, #tpu.memory_space<vmem>>, vector<2x8xf32>,
    %c2 = arith.constant 2 : index
    %c0_48 = arith.constant 0 : index
    %96 = vector.load %arg15[%c2, %c0_48] : memref<8x96xf32, #tpu.memory_space<vmem>>, vector<2x8xf32>
    %97 = arith.truncf %96 : vector<2x8xf32> to vector<2x8xbf16>
    %c2_49 = arith.constant 2 : index
    %c32_50 = arith.constant 32 : index
    %98 = vector.load %arg15[%c2_49, %c32_50] : memref<8x96xf32, #tpu.memory_space<vmem>>, vector<2x8xf32>
    %99 = arith.truncf %98 : vector<2x8xf32> to vector<2x8xbf16>
    %c2_51 = arith.constant 2 : index
    %c64_52 = arith.constant 64 : index
    %100 = vector.load %arg15[%c2_51, %c64_52] : memref<8x96xf32, #tpu.memory_space<vmem>>, vector<2x8xf32>
    %101 = arith.truncf %100 : vector<2x8xf32> to vector<2x8xbf16>
    "tpu.trace_start"() <{level = 10 : i32, message = "qd,kd->qk"}> : () -> ()
    %cst_53 = arith.constant dense<0.000000e+00> : vector<2x2xf32>
    %102 = tpu.matmul %97, %99, %cst_53 {dimension_numbers = #tpu.dot_dimension_numbers<[1], [1], [0], [0], [0, 0, 1, 0], [], []>} : vector<2x8xbf16>, vector<2x8xbf16>, vector<2x2xf32> -> vector<2x2xf32>
    "tpu.trace_stop"() : () -> ()
    %cst_54 = arith.constant 0.353553385 : f32
    %103 = vector.broadcast %cst_54 : f32 to vector<2x2xf32>
    %104 = arith.mulf %102, %103 : vector<2x2xf32>
    %cst_55 = arith.constant dense<0xFF800000> : vector<2xf32>
    %105 = vector.multi_reduction <maximumf>, %104, %cst_55 [1] : vector<2x2xf32> to vector<2xf32>
    %106 = vector.shape_cast %105 : vector<2xf32> to vector<2x1xf32>
    %107 = vector.broadcast %106 : vector<2x1xf32> to vector<2x2xf32>
    %108 = arith.subf %104, %107 : vector<2x2xf32>
    %109 = math.exp %108 : vector<2x2xf32>
    %cst_56 = arith.constant dense<0.000000e+00> : vector<2xf32>
    %110 = vector.multi_reduction <add>, %109, %cst_56 [1] : vector<2x2xf32> to vector<2xf32>
    %111 = vector.shape_cast %110 : vector<2xf32> to vector<2x1xf32>
    %112 = tpu.reciprocal %111 {approx = true} : vector<2x1xf32> -> vector<2x1xf32>
    %113 = vector.broadcast %112 : vector<2x1xf32> to vector<2x2xf32>
    %114 = arith.mulf %109, %113 : vector<2x2xf32>
    %115 = arith.truncf %114 : vector<2x2xf32> to vector<2x2xbf16>
    %cst_57 = arith.constant dense<0.000000e+00> : vector<2x8xf32>
    %116 = tpu.matmul %115, %101, %cst_57 {dimension_numbers = #tpu.dot_dimension_numbers<[1], [0], [0], [1], [0, 0, 1, 1], [], []>} : vector<2x2xbf16>, vector<2x8xbf16>, vector<2x8xf32> -> vector<2x8xf32>
    %c2_58 = arith.constant 2 : index
    %c0_59 = arith.constant 0 : index
    %117 = vector.load %arg16[%c2_58, %c0_59] : memref<8x32xf32, #tpu.memory_space<vmem>>, vector<2x8xf32>
    tpu.vector_store %arg16[%c2_58, %c0_59], %116 {strides = array<i32>} : memref<8x32xf32, #tpu.memory_space<vmem>>, vector<2x8xf32>,
    %c2_60 = arith.constant 2 : index
    %c8_61 = arith.constant 8 : index
    %118 = vector.load %arg15[%c2_60, %c8_61] : memref<8x96xf32, #tpu.memory_space<vmem>>, vector<2x8xf32>
    %119 = arith.truncf %118 : vector<2x8xf32> to vector<2x8xbf16>
    %c2_62 = arith.constant 2 : index
    %c40_63 = arith.constant 40 : index
    %120 = vector.load %arg15[%c2_62, %c40_63] : memref<8x96xf32, #tpu.memory_space<vmem>>, vector<2x8xf32>
    %121 = arith.truncf %120 : vector<2x8xf32> to vector<2x8xbf16>
    %c2_64 = arith.constant 2 : index
    %c72_65 = arith.constant 72 : index
    %122 = vector.load %arg15[%c2_64, %c72_65] : memref<8x96xf32, #tpu.memory_space<vmem>>, vector<2x8xf32>
    %123 = arith.truncf %122 : vector<2x8xf32> to vector<2x8xbf16>
    "tpu.trace_start"() <{level = 10 : i32, message = "qd,kd->qk"}> : () -> ()
    %cst_66 = arith.constant dense<0.000000e+00> : vector<2x2xf32>
    %124 = tpu.matmul %119, %121, %cst_66 {dimension_numbers = #tpu.dot_dimension_numbers<[1], [1], [0], [0], [0, 0, 1, 0], [], []>} : vector<2x8xbf16>, vector<2x8xbf16>, vector<2x2xf32> -> vector<2x2xf32>
    "tpu.trace_stop"() : () -> ()
    %cst_67 = arith.constant 0.353553385 : f32
    %125 = vector.broadcast %cst_67 : f32 to vector<2x2xf32>
    %126 = arith.mulf %124, %125 : vector<2x2xf32>
    %cst_68 = arith.constant dense<0xFF800000> : vector<2xf32>
    %127 = vector.multi_reduction <maximumf>, %126, %cst_68 [1] : vector<2x2xf32> to vector<2xf32>
    %128 = vector.shape_cast %127 : vector<2xf32> to vector<2x1xf32>
    %129 = vector.broadcast %128 : vector<2x1xf32> to vector<2x2xf32>
    %130 = arith.subf %126, %129 : vector<2x2xf32>
    %131 = math.exp %130 : vector<2x2xf32>
    %cst_69 = arith.constant dense<0.000000e+00> : vector<2xf32>
    %132 = vector.multi_reduction <add>, %131, %cst_69 [1] : vector<2x2xf32> to vector<2xf32>
    %133 = vector.shape_cast %132 : vector<2xf32> to vector<2x1xf32>
    %134 = tpu.reciprocal %133 {approx = true} : vector<2x1xf32> -> vector<2x1xf32>
    %135 = vector.broadcast %134 : vector<2x1xf32> to vector<2x2xf32>
    %136 = arith.mulf %131, %135 : vector<2x2xf32>
    %137 = arith.truncf %136 : vector<2x2xf32> to vector<2x2xbf16>
    %cst_70 = arith.constant dense<0.000000e+00> : vector<2x8xf32>
    %138 = tpu.matmul %137, %123, %cst_70 {dimension_numbers = #tpu.dot_dimension_numbers<[1], [0], [0], [1], [0, 0, 1, 1], [], []>} : vector<2x2xbf16>, vector<2x8xbf16>, vector<2x8xf32> -> vector<2x8xf32>
    %c2_71 = arith.constant 2 : index
    %c8_72 = arith.constant 8 : index
    %139 = vector.load %arg16[%c2_71, %c8_72] : memref<8x32xf32, #tpu.memory_space<vmem>>, vector<2x8xf32>
    tpu.vector_store %arg16[%c2_71, %c8_72], %138 {strides = array<i32>} : memref<8x32xf32, #tpu.memory_space<vmem>>, vector<2x8xf32>,
    %c2_73 = arith.constant 2 : index
    %c16_74 = arith.constant 16 : index
    %140 = vector.load %arg15[%c2_73, %c16_74] : memref<8x96xf32, #tpu.memory_space<vmem>>, vector<2x8xf32>
    %141 = arith.truncf %140 : vector<2x8xf32> to vector<2x8xbf16>
    %c2_75 = arith.constant 2 : index
    %c48_76 = arith.constant 48 : index
    %142 = vector.load %arg15[%c2_75, %c48_76] : memref<8x96xf32, #tpu.memory_space<vmem>>, vector<2x8xf32>
    %143 = arith.truncf %142 : vector<2x8xf32> to vector<2x8xbf16>
    %c2_77 = arith.constant 2 : index
    %c80_78 = arith.constant 80 : index
    %144 = vector.load %arg15[%c2_77, %c80_78] : memref<8x96xf32, #tpu.memory_space<vmem>>, vector<2x8xf32>
    %145 = arith.truncf %144 : vector<2x8xf32> to vector<2x8xbf16>
    "tpu.trace_start"() <{level = 10 : i32, message = "qd,kd->qk"}> : () -> ()
    %cst_79 = arith.constant dense<0.000000e+00> : vector<2x2xf32>
    %146 = tpu.matmul %141, %143, %cst_79 {dimension_numbers = #tpu.dot_dimension_numbers<[1], [1], [0], [0], [0, 0, 1, 0], [], []>} : vector<2x8xbf16>, vector<2x8xbf16>, vector<2x2xf32> -> vector<2x2xf32>
    "tpu.trace_stop"() : () -> ()
    %cst_80 = arith.constant 0.353553385 : f32
    %147 = vector.broadcast %cst_80 : f32 to vector<2x2xf32>
    %148 = arith.mulf %146, %147 : vector<2x2xf32>
    %cst_81 = arith.constant dense<0xFF800000> : vector<2xf32>
    %149 = vector.multi_reduction <maximumf>, %148, %cst_81 [1] : vector<2x2xf32> to vector<2xf32>
    %150 = vector.shape_cast %149 : vector<2xf32> to vector<2x1xf32>
    %151 = vector.broadcast %150 : vector<2x1xf32> to vector<2x2xf32>
    %152 = arith.subf %148, %151 : vector<2x2xf32>
    %153 = math.exp %152 : vector<2x2xf32>
    %cst_82 = arith.constant dense<0.000000e+00> : vector<2xf32>
    %154 = vector.multi_reduction <add>, %153, %cst_82 [1] : vector<2x2xf32> to vector<2xf32>
    %155 = vector.shape_cast %154 : vector<2xf32> to vector<2x1xf32>
    %156 = tpu.reciprocal %155 {approx = true} : vector<2x1xf32> -> vector<2x1xf32>
    %157 = vector.broadcast %156 : vector<2x1xf32> to vector<2x2xf32>
    %158 = arith.mulf %153, %157 : vector<2x2xf32>
    %159 = arith.truncf %158 : vector<2x2xf32> to vector<2x2xbf16>
    %cst_83 = arith.constant dense<0.000000e+00> : vector<2x8xf32>
    %160 = tpu.matmul %159, %145, %cst_83 {dimension_numbers = #tpu.dot_dimension_numbers<[1], [0], [0], [1], [0, 0, 1, 1], [], []>} : vector<2x2xbf16>, vector<2x8xbf16>, vector<2x8xf32> -> vector<2x8xf32>
    %c2_84 = arith.constant 2 : index
    %c16_85 = arith.constant 16 : index
    %161 = vector.load %arg16[%c2_84, %c16_85] : memref<8x32xf32, #tpu.memory_space<vmem>>, vector<2x8xf32>
    tpu.vector_store %arg16[%c2_84, %c16_85], %160 {strides = array<i32>} : memref<8x32xf32, #tpu.memory_space<vmem>>, vector<2x8xf32>,
    %c2_86 = arith.constant 2 : index
    %c24_87 = arith.constant 24 : index
    %162 = vector.load %arg15[%c2_86, %c24_87] : memref<8x96xf32, #tpu.memory_space<vmem>>, vector<2x8xf32>
    %163 = arith.truncf %162 : vector<2x8xf32> to vector<2x8xbf16>
    %c2_88 = arith.constant 2 : index
    %c56_89 = arith.constant 56 : index
    %164 = vector.load %arg15[%c2_88, %c56_89] : memref<8x96xf32, #tpu.memory_space<vmem>>, vector<2x8xf32>
    %165 = arith.truncf %164 : vector<2x8xf32> to vector<2x8xbf16>
    %c2_90 = arith.constant 2 : index
    %c88_91 = arith.constant 88 : index
    %166 = vector.load %arg15[%c2_90, %c88_91] : memref<8x96xf32, #tpu.memory_space<vmem>>, vector<2x8xf32>
    %167 = arith.truncf %166 : vector<2x8xf32> to vector<2x8xbf16>
    "tpu.trace_start"() <{level = 10 : i32, message = "qd,kd->qk"}> : () -> ()
    %cst_92 = arith.constant dense<0.000000e+00> : vector<2x2xf32>
    %168 = tpu.matmul %163, %165, %cst_92 {dimension_numbers = #tpu.dot_dimension_numbers<[1], [1], [0], [0], [0, 0, 1, 0], [], []>} : vector<2x8xbf16>, vector<2x8xbf16>, vector<2x2xf32> -> vector<2x2xf32>
    "tpu.trace_stop"() : () -> ()
    %cst_93 = arith.constant 0.353553385 : f32
    %169 = vector.broadcast %cst_93 : f32 to vector<2x2xf32>
    %170 = arith.mulf %168, %169 : vector<2x2xf32>
    %cst_94 = arith.constant dense<0xFF800000> : vector<2xf32>
    %171 = vector.multi_reduction <maximumf>, %170, %cst_94 [1] : vector<2x2xf32> to vector<2xf32>
    %172 = vector.shape_cast %171 : vector<2xf32> to vector<2x1xf32>
    %173 = vector.broadcast %172 : vector<2x1xf32> to vector<2x2xf32>
    %174 = arith.subf %170, %173 : vector<2x2xf32>
    %175 = math.exp %174 : vector<2x2xf32>
    %cst_95 = arith.constant dense<0.000000e+00> : vector<2xf32>
    %176 = vector.multi_reduction <add>, %175, %cst_95 [1] : vector<2x2xf32> to vector<2xf32>
    %177 = vector.shape_cast %176 : vector<2xf32> to vector<2x1xf32>
    %178 = tpu.reciprocal %177 {approx = true} : vector<2x1xf32> -> vector<2x1xf32>
    %179 = vector.broadcast %178 : vector<2x1xf32> to vector<2x2xf32>
    %180 = arith.mulf %175, %179 : vector<2x2xf32>
    %181 = arith.truncf %180 : vector<2x2xf32> to vector<2x2xbf16>
    %cst_96 = arith.constant dense<0.000000e+00> : vector<2x8xf32>
    %182 = tpu.matmul %181, %167, %cst_96 {dimension_numbers = #tpu.dot_dimension_numbers<[1], [0], [0], [1], [0, 0, 1, 1], [], []>} : vector<2x2xbf16>, vector<2x8xbf16>, vector<2x8xf32> -> vector<2x8xf32>
    %c2_97 = arith.constant 2 : index
    %c24_98 = arith.constant 24 : index
    %183 = vector.load %arg16[%c2_97, %c24_98] : memref<8x32xf32, #tpu.memory_space<vmem>>, vector<2x8xf32>
    tpu.vector_store %arg16[%c2_97, %c24_98], %182 {strides = array<i32>} : memref<8x32xf32, #tpu.memory_space<vmem>>, vector<2x8xf32>,
    %c4 = arith.constant 4 : index
    %c0_99 = arith.constant 0 : index
    %184 = vector.load %arg15[%c4, %c0_99] : memref<8x96xf32, #tpu.memory_space<vmem>>, vector<2x8xf32>
    %185 = arith.truncf %184 : vector<2x8xf32> to vector<2x8xbf16>
    %c4_100 = arith.constant 4 : index
    %c32_101 = arith.constant 32 : index
    %186 = vector.load %arg15[%c4_100, %c32_101] : memref<8x96xf32, #tpu.memory_space<vmem>>, vector<2x8xf32>
    %187 = arith.truncf %186 : vector<2x8xf32> to vector<2x8xbf16>
    %c4_102 = arith.constant 4 : index
    %c64_103 = arith.constant 64 : index
    %188 = vector.load %arg15[%c4_102, %c64_103] : memref<8x96xf32, #tpu.memory_space<vmem>>, vector<2x8xf32>
    %189 = arith.truncf %188 : vector<2x8xf32> to vector<2x8xbf16>
    "tpu.trace_start"() <{level = 10 : i32, message = "qd,kd->qk"}> : () -> ()
    %cst_104 = arith.constant dense<0.000000e+00> : vector<2x2xf32>
    %190 = tpu.matmul %185, %187, %cst_104 {dimension_numbers = #tpu.dot_dimension_numbers<[1], [1], [0], [0], [0, 0, 1, 0], [], []>} : vector<2x8xbf16>, vector<2x8xbf16>, vector<2x2xf32> -> vector<2x2xf32>
    "tpu.trace_stop"() : () -> ()
    %cst_105 = arith.constant 0.353553385 : f32
    %191 = vector.broadcast %cst_105 : f32 to vector<2x2xf32>
    %192 = arith.mulf %190, %191 : vector<2x2xf32>
    %cst_106 = arith.constant dense<0xFF800000> : vector<2xf32>
    %193 = vector.multi_reduction <maximumf>, %192, %cst_106 [1] : vector<2x2xf32> to vector<2xf32>
    %194 = vector.shape_cast %193 : vector<2xf32> to vector<2x1xf32>
    %195 = vector.broadcast %194 : vector<2x1xf32> to vector<2x2xf32>
    %196 = arith.subf %192, %195 : vector<2x2xf32>
    %197 = math.exp %196 : vector<2x2xf32>
    %cst_107 = arith.constant dense<0.000000e+00> : vector<2xf32>
    %198 = vector.multi_reduction <add>, %197, %cst_107 [1] : vector<2x2xf32> to vector<2xf32>
    %199 = vector.shape_cast %198 : vector<2xf32> to vector<2x1xf32>
    %200 = tpu.reciprocal %199 {approx = true} : vector<2x1xf32> -> vector<2x1xf32>
    %201 = vector.broadcast %200 : vector<2x1xf32> to vector<2x2xf32>
    %202 = arith.mulf %197, %201 : vector<2x2xf32>
    %203 = arith.truncf %202 : vector<2x2xf32> to vector<2x2xbf16>
    %cst_108 = arith.constant dense<0.000000e+00> : vector<2x8xf32>
    %204 = tpu.matmul %203, %189, %cst_108 {dimension_numbers = #tpu.dot_dimension_numbers<[1], [0], [0], [1], [0, 0, 1, 1], [], []>} : vector<2x2xbf16>, vector<2x8xbf16>, vector<2x8xf32> -> vector<2x8xf32>
    %c4_109 = arith.constant 4 : index
    %c0_110 = arith.constant 0 : index
    %205 = vector.load %arg16[%c4_109, %c0_110] : memref<8x32xf32, #tpu.memory_space<vmem>>, vector<2x8xf32>
    tpu.vector_store %arg16[%c4_109, %c0_110], %204 {strides = array<i32>} : memref<8x32xf32, #tpu.memory_space<vmem>>, vector<2x8xf32>,
    %c4_111 = arith.constant 4 : index
    %c8_112 = arith.constant 8 : index
    %206 = vector.load %arg15[%c4_111, %c8_112] : memref<8x96xf32, #tpu.memory_space<vmem>>, vector<2x8xf32>
    %207 = arith.truncf %206 : vector<2x8xf32> to vector<2x8xbf16>
    %c4_113 = arith.constant 4 : index
    %c40_114 = arith.constant 40 : index
    %208 = vector.load %arg15[%c4_113, %c40_114] : memref<8x96xf32, #tpu.memory_space<vmem>>, vector<2x8xf32>
    %209 = arith.truncf %208 : vector<2x8xf32> to vector<2x8xbf16>
    %c4_115 = arith.constant 4 : index
    %c72_116 = arith.constant 72 : index
    %210 = vector.load %arg15[%c4_115, %c72_116] : memref<8x96xf32, #tpu.memory_space<vmem>>, vector<2x8xf32>
    %211 = arith.truncf %210 : vector<2x8xf32> to vector<2x8xbf16>
    "tpu.trace_start"() <{level = 10 : i32, message = "qd,kd->qk"}> : () -> ()
    %cst_117 = arith.constant dense<0.000000e+00> : vector<2x2xf32>
    %212 = tpu.matmul %207, %209, %cst_117 {dimension_numbers = #tpu.dot_dimension_numbers<[1], [1], [0], [0], [0, 0, 1, 0], [], []>} : vector<2x8xbf16>, vector<2x8xbf16>, vector<2x2xf32> -> vector<2x2xf32>
    "tpu.trace_stop"() : () -> ()
    %cst_118 = arith.constant 0.353553385 : f32
    %213 = vector.broadcast %cst_118 : f32 to vector<2x2xf32>
    %214 = arith.mulf %212, %213 : vector<2x2xf32>
    %cst_119 = arith.constant dense<0xFF800000> : vector<2xf32>
    %215 = vector.multi_reduction <maximumf>, %214, %cst_119 [1] : vector<2x2xf32> to vector<2xf32>
    %216 = vector.shape_cast %215 : vector<2xf32> to vector<2x1xf32>
    %217 = vector.broadcast %216 : vector<2x1xf32> to vector<2x2xf32>
    %218 = arith.subf %214, %217 : vector<2x2xf32>
    %219 = math.exp %218 : vector<2x2xf32>
    %cst_120 = arith.constant dense<0.000000e+00> : vector<2xf32>
    %220 = vector.multi_reduction <add>, %219, %cst_120 [1] : vector<2x2xf32> to vector<2xf32>
    %221 = vector.shape_cast %220 : vector<2xf32> to vector<2x1xf32>
    %222 = tpu.reciprocal %221 {approx = true} : vector<2x1xf32> -> vector<2x1xf32>
    %223 = vector.broadcast %222 : vector<2x1xf32> to vector<2x2xf32>
    %224 = arith.mulf %219, %223 : vector<2x2xf32>
    %225 = arith.truncf %224 : vector<2x2xf32> to vector<2x2xbf16>
    %cst_121 = arith.constant dense<0.000000e+00> : vector<2x8xf32>
    %226 = tpu.matmul %225, %211, %cst_121 {dimension_numbers = #tpu.dot_dimension_numbers<[1], [0], [0], [1], [0, 0, 1, 1], [], []>} : vector<2x2xbf16>, vector<2x8xbf16>, vector<2x8xf32> -> vector<2x8xf32>
    %c4_122 = arith.constant 4 : index
    %c8_123 = arith.constant 8 : index
    %227 = vector.load %arg16[%c4_122, %c8_123] : memref<8x32xf32, #tpu.memory_space<vmem>>, vector<2x8xf32>
    tpu.vector_store %arg16[%c4_122, %c8_123], %226 {strides = array<i32>} : memref<8x32xf32, #tpu.memory_space<vmem>>, vector<2x8xf32>,
    %c4_124 = arith.constant 4 : index
    %c16_125 = arith.constant 16 : index
    %228 = vector.load %arg15[%c4_124, %c16_125] : memref<8x96xf32, #tpu.memory_space<vmem>>, vector<2x8xf32>
    %229 = arith.truncf %228 : vector<2x8xf32> to vector<2x8xbf16>
    %c4_126 = arith.constant 4 : index
    %c48_127 = arith.constant 48 : index
    %230 = vector.load %arg15[%c4_126, %c48_127] : memref<8x96xf32, #tpu.memory_space<vmem>>, vector<2x8xf32>
    %231 = arith.truncf %230 : vector<2x8xf32> to vector<2x8xbf16>
    %c4_128 = arith.constant 4 : index
    %c80_129 = arith.constant 80 : index
    %232 = vector.load %arg15[%c4_128, %c80_129] : memref<8x96xf32, #tpu.memory_space<vmem>>, vector<2x8xf32>
    %233 = arith.truncf %232 : vector<2x8xf32> to vector<2x8xbf16>
    "tpu.trace_start"() <{level = 10 : i32, message = "qd,kd->qk"}> : () -> ()
    %cst_130 = arith.constant dense<0.000000e+00> : vector<2x2xf32>
    %234 = tpu.matmul %229, %231, %cst_130 {dimension_numbers = #tpu.dot_dimension_numbers<[1], [1], [0], [0], [0, 0, 1, 0], [], []>} : vector<2x8xbf16>, vector<2x8xbf16>, vector<2x2xf32> -> vector<2x2xf32>
    "tpu.trace_stop"() : () -> ()
    %cst_131 = arith.constant 0.353553385 : f32
    %235 = vector.broadcast %cst_131 : f32 to vector<2x2xf32>
    %236 = arith.mulf %234, %235 : vector<2x2xf32>
    %cst_132 = arith.constant dense<0xFF800000> : vector<2xf32>
    %237 = vector.multi_reduction <maximumf>, %236, %cst_132 [1] : vector<2x2xf32> to vector<2xf32>
    %238 = vector.shape_cast %237 : vector<2xf32> to vector<2x1xf32>
    %239 = vector.broadcast %238 : vector<2x1xf32> to vector<2x2xf32>
    %240 = arith.subf %236, %239 : vector<2x2xf32>
    %241 = math.exp %240 : vector<2x2xf32>
    %cst_133 = arith.constant dense<0.000000e+00> : vector<2xf32>
    %242 = vector.multi_reduction <add>, %241, %cst_133 [1] : vector<2x2xf32> to vector<2xf32>
    %243 = vector.shape_cast %242 : vector<2xf32> to vector<2x1xf32>
    %244 = tpu.reciprocal %243 {approx = true} : vector<2x1xf32> -> vector<2x1xf32>
    %245 = vector.broadcast %244 : vector<2x1xf32> to vector<2x2xf32>
    %246 = arith.mulf %241, %245 : vector<2x2xf32>
    %247 = arith.truncf %246 : vector<2x2xf32> to vector<2x2xbf16>
    %cst_134 = arith.constant dense<0.000000e+00> : vector<2x8xf32>
    %248 = tpu.matmul %247, %233, %cst_134 {dimension_numbers = #tpu.dot_dimension_numbers<[1], [0], [0], [1], [0, 0, 1, 1], [], []>} : vector<2x2xbf16>, vector<2x8xbf16>, vector<2x8xf32> -> vector<2x8xf32>
    %c4_135 = arith.constant 4 : index
    %c16_136 = arith.constant 16 : index
    %249 = vector.load %arg16[%c4_135, %c16_136] : memref<8x32xf32, #tpu.memory_space<vmem>>, vector<2x8xf32>
    tpu.vector_store %arg16[%c4_135, %c16_136], %248 {strides = array<i32>} : memref<8x32xf32, #tpu.memory_space<vmem>>, vector<2x8xf32>,
    %c4_137 = arith.constant 4 : index
    %c24_138 = arith.constant 24 : index
    %250 = vector.load %arg15[%c4_137, %c24_138] : memref<8x96xf32, #tpu.memory_space<vmem>>, vector<2x8xf32>
    %251 = arith.truncf %250 : vector<2x8xf32> to vector<2x8xbf16>
    %c4_139 = arith.constant 4 : index
    %c56_140 = arith.constant 56 : index
    %252 = vector.load %arg15[%c4_139, %c56_140] : memref<8x96xf32, #tpu.memory_space<vmem>>, vector<2x8xf32>
    %253 = arith.truncf %252 : vector<2x8xf32> to vector<2x8xbf16>
    %c4_141 = arith.constant 4 : index
    %c88_142 = arith.constant 88 : index
    %254 = vector.load %arg15[%c4_141, %c88_142] : memref<8x96xf32, #tpu.memory_space<vmem>>, vector<2x8xf32>
    %255 = arith.truncf %254 : vector<2x8xf32> to vector<2x8xbf16>
    "tpu.trace_start"() <{level = 10 : i32, message = "qd,kd->qk"}> : () -> ()
    %cst_143 = arith.constant dense<0.000000e+00> : vector<2x2xf32>
    %256 = tpu.matmul %251, %253, %cst_143 {dimension_numbers = #tpu.dot_dimension_numbers<[1], [1], [0], [0], [0, 0, 1, 0], [], []>} : vector<2x8xbf16>, vector<2x8xbf16>, vector<2x2xf32> -> vector<2x2xf32>
    "tpu.trace_stop"() : () -> ()
    %cst_144 = arith.constant 0.353553385 : f32
    %257 = vector.broadcast %cst_144 : f32 to vector<2x2xf32>
    %258 = arith.mulf %256, %257 : vector<2x2xf32>
    %cst_145 = arith.constant dense<0xFF800000> : vector<2xf32>
    %259 = vector.multi_reduction <maximumf>, %258, %cst_145 [1] : vector<2x2xf32> to vector<2xf32>
    %260 = vector.shape_cast %259 : vector<2xf32> to vector<2x1xf32>
    %261 = vector.broadcast %260 : vector<2x1xf32> to vector<2x2xf32>
    %262 = arith.subf %258, %261 : vector<2x2xf32>
    %263 = math.exp %262 : vector<2x2xf32>
    %cst_146 = arith.constant dense<0.000000e+00> : vector<2xf32>
    %264 = vector.multi_reduction <add>, %263, %cst_146 [1] : vector<2x2xf32> to vector<2xf32>
    %265 = vector.shape_cast %264 : vector<2xf32> to vector<2x1xf32>
    %266 = tpu.reciprocal %265 {approx = true} : vector<2x1xf32> -> vector<2x1xf32>
    %267 = vector.broadcast %266 : vector<2x1xf32> to vector<2x2xf32>
    %268 = arith.mulf %263, %267 : vector<2x2xf32>
    %269 = arith.truncf %268 : vector<2x2xf32> to vector<2x2xbf16>
    %cst_147 = arith.constant dense<0.000000e+00> : vector<2x8xf32>
    %270 = tpu.matmul %269, %255, %cst_147 {dimension_numbers = #tpu.dot_dimension_numbers<[1], [0], [0], [1], [0, 0, 1, 1], [], []>} : vector<2x2xbf16>, vector<2x8xbf16>, vector<2x8xf32> -> vector<2x8xf32>
    %c4_148 = arith.constant 4 : index
    %c24_149 = arith.constant 24 : index
    %271 = vector.load %arg16[%c4_148, %c24_149] : memref<8x32xf32, #tpu.memory_space<vmem>>, vector<2x8xf32>
    tpu.vector_store %arg16[%c4_148, %c24_149], %270 {strides = array<i32>} : memref<8x32xf32, #tpu.memory_space<vmem>>, vector<2x8xf32>,
    %c6 = arith.constant 6 : index
    %c0_150 = arith.constant 0 : index
    %272 = vector.load %arg15[%c6, %c0_150] : memref<8x96xf32, #tpu.memory_space<vmem>>, vector<2x8xf32>
    %273 = arith.truncf %272 : vector<2x8xf32> to vector<2x8xbf16>
    %c6_151 = arith.constant 6 : index
    %c32_152 = arith.constant 32 : index
    %274 = vector.load %arg15[%c6_151, %c32_152] : memref<8x96xf32, #tpu.memory_space<vmem>>, vector<2x8xf32>
    %275 = arith.truncf %274 : vector<2x8xf32> to vector<2x8xbf16>
    %c6_153 = arith.constant 6 : index
    %c64_154 = arith.constant 64 : index
    %276 = vector.load %arg15[%c6_153, %c64_154] : memref<8x96xf32, #tpu.memory_space<vmem>>, vector<2x8xf32>
    %277 = arith.truncf %276 : vector<2x8xf32> to vector<2x8xbf16>
    "tpu.trace_start"() <{level = 10 : i32, message = "qd,kd->qk"}> : () -> ()
    %cst_155 = arith.constant dense<0.000000e+00> : vector<2x2xf32>
    %278 = tpu.matmul %273, %275, %cst_155 {dimension_numbers = #tpu.dot_dimension_numbers<[1], [1], [0], [0], [0, 0, 1, 0], [], []>} : vector<2x8xbf16>, vector<2x8xbf16>, vector<2x2xf32> -> vector<2x2xf32>
    "tpu.trace_stop"() : () -> ()
    %cst_156 = arith.constant 0.353553385 : f32
    %279 = vector.broadcast %cst_156 : f32 to vector<2x2xf32>
    %280 = arith.mulf %278, %279 : vector<2x2xf32>
    %cst_157 = arith.constant dense<0xFF800000> : vector<2xf32>
    %281 = vector.multi_reduction <maximumf>, %280, %cst_157 [1] : vector<2x2xf32> to vector<2xf32>
    %282 = vector.shape_cast %281 : vector<2xf32> to vector<2x1xf32>
    %283 = vector.broadcast %282 : vector<2x1xf32> to vector<2x2xf32>
    %284 = arith.subf %280, %283 : vector<2x2xf32>
    %285 = math.exp %284 : vector<2x2xf32>
    %cst_158 = arith.constant dense<0.000000e+00> : vector<2xf32>
    %286 = vector.multi_reduction <add>, %285, %cst_158 [1] : vector<2x2xf32> to vector<2xf32>
    %287 = vector.shape_cast %286 : vector<2xf32> to vector<2x1xf32>
    %288 = tpu.reciprocal %287 {approx = true} : vector<2x1xf32> -> vector<2x1xf32>
    %289 = vector.broadcast %288 : vector<2x1xf32> to vector<2x2xf32>
    %290 = arith.mulf %285, %289 : vector<2x2xf32>
    %291 = arith.truncf %290 : vector<2x2xf32> to vector<2x2xbf16>
    %cst_159 = arith.constant dense<0.000000e+00> : vector<2x8xf32>
    %292 = tpu.matmul %291, %277, %cst_159 {dimension_numbers = #tpu.dot_dimension_numbers<[1], [0], [0], [1], [0, 0, 1, 1], [], []>} : vector<2x2xbf16>, vector<2x8xbf16>, vector<2x8xf32> -> vector<2x8xf32>
    %c6_160 = arith.constant 6 : index
    %c0_161 = arith.constant 0 : index
    %293 = vector.load %arg16[%c6_160, %c0_161] : memref<8x32xf32, #tpu.memory_space<vmem>>, vector<2x8xf32>
    tpu.vector_store %arg16[%c6_160, %c0_161], %292 {strides = array<i32>} : memref<8x32xf32, #tpu.memory_space<vmem>>, vector<2x8xf32>,
    %c6_162 = arith.constant 6 : index
    %c8_163 = arith.constant 8 : index
    %294 = vector.load %arg15[%c6_162, %c8_163] : memref<8x96xf32, #tpu.memory_space<vmem>>, vector<2x8xf32>
    %295 = arith.truncf %294 : vector<2x8xf32> to vector<2x8xbf16>
    %c6_164 = arith.constant 6 : index
    %c40_165 = arith.constant 40 : index
    %296 = vector.load %arg15[%c6_164, %c40_165] : memref<8x96xf32, #tpu.memory_space<vmem>>, vector<2x8xf32>
    %297 = arith.truncf %296 : vector<2x8xf32> to vector<2x8xbf16>
    %c6_166 = arith.constant 6 : index
    %c72_167 = arith.constant 72 : index
    %298 = vector.load %arg15[%c6_166, %c72_167] : memref<8x96xf32, #tpu.memory_space<vmem>>, vector<2x8xf32>
    %299 = arith.truncf %298 : vector<2x8xf32> to vector<2x8xbf16>
    "tpu.trace_start"() <{level = 10 : i32, message = "qd,kd->qk"}> : () -> ()
    %cst_168 = arith.constant dense<0.000000e+00> : vector<2x2xf32>
    %300 = tpu.matmul %295, %297, %cst_168 {dimension_numbers = #tpu.dot_dimension_numbers<[1], [1], [0], [0], [0, 0, 1, 0], [], []>} : vector<2x8xbf16>, vector<2x8xbf16>, vector<2x2xf32> -> vector<2x2xf32>
    "tpu.trace_stop"() : () -> ()
    %cst_169 = arith.constant 0.353553385 : f32
    %301 = vector.broadcast %cst_169 : f32 to vector<2x2xf32>
    %302 = arith.mulf %300, %301 : vector<2x2xf32>
    %cst_170 = arith.constant dense<0xFF800000> : vector<2xf32>
    %303 = vector.multi_reduction <maximumf>, %302, %cst_170 [1] : vector<2x2xf32> to vector<2xf32>
    %304 = vector.shape_cast %303 : vector<2xf32> to vector<2x1xf32>
    %305 = vector.broadcast %304 : vector<2x1xf32> to vector<2x2xf32>
    %306 = arith.subf %302, %305 : vector<2x2xf32>
    %307 = math.exp %306 : vector<2x2xf32>
    %cst_171 = arith.constant dense<0.000000e+00> : vector<2xf32>
    %308 = vector.multi_reduction <add>, %307, %cst_171 [1] : vector<2x2xf32> to vector<2xf32>
    %309 = vector.shape_cast %308 : vector<2xf32> to vector<2x1xf32>
    %310 = tpu.reciprocal %309 {approx = true} : vector<2x1xf32> -> vector<2x1xf32>
    %311 = vector.broadcast %310 : vector<2x1xf32> to vector<2x2xf32>
    %312 = arith.mulf %307, %311 : vector<2x2xf32>
    %313 = arith.truncf %312 : vector<2x2xf32> to vector<2x2xbf16>
    %cst_172 = arith.constant dense<0.000000e+00> : vector<2x8xf32>
    %314 = tpu.matmul %313, %299, %cst_172 {dimension_numbers = #tpu.dot_dimension_numbers<[1], [0], [0], [1], [0, 0, 1, 1], [], []>} : vector<2x2xbf16>, vector<2x8xbf16>, vector<2x8xf32> -> vector<2x8xf32>
    %c6_173 = arith.constant 6 : index
    %c8_174 = arith.constant 8 : index
    %315 = vector.load %arg16[%c6_173, %c8_174] : memref<8x32xf32, #tpu.memory_space<vmem>>, vector<2x8xf32>
    tpu.vector_store %arg16[%c6_173, %c8_174], %314 {strides = array<i32>} : memref<8x32xf32, #tpu.memory_space<vmem>>, vector<2x8xf32>,
    %c6_175 = arith.constant 6 : index
    %c16_176 = arith.constant 16 : index
    %316 = vector.load %arg15[%c6_175, %c16_176] : memref<8x96xf32, #tpu.memory_space<vmem>>, vector<2x8xf32>
    %317 = arith.truncf %316 : vector<2x8xf32> to vector<2x8xbf16>
    %c6_177 = arith.constant 6 : index
    %c48_178 = arith.constant 48 : index
    %318 = vector.load %arg15[%c6_177, %c48_178] : memref<8x96xf32, #tpu.memory_space<vmem>>, vector<2x8xf32>
    %319 = arith.truncf %318 : vector<2x8xf32> to vector<2x8xbf16>
    %c6_179 = arith.constant 6 : index
    %c80_180 = arith.constant 80 : index
    %320 = vector.load %arg15[%c6_179, %c80_180] : memref<8x96xf32, #tpu.memory_space<vmem>>, vector<2x8xf32>
    %321 = arith.truncf %320 : vector<2x8xf32> to vector<2x8xbf16>
    "tpu.trace_start"() <{level = 10 : i32, message = "qd,kd->qk"}> : () -> ()
    %cst_181 = arith.constant dense<0.000000e+00> : vector<2x2xf32>
    %322 = tpu.matmul %317, %319, %cst_181 {dimension_numbers = #tpu.dot_dimension_numbers<[1], [1], [0], [0], [0, 0, 1, 0], [], []>} : vector<2x8xbf16>, vector<2x8xbf16>, vector<2x2xf32> -> vector<2x2xf32>
    "tpu.trace_stop"() : () -> ()
    %cst_182 = arith.constant 0.353553385 : f32
    %323 = vector.broadcast %cst_182 : f32 to vector<2x2xf32>
    %324 = arith.mulf %322, %323 : vector<2x2xf32>
    %cst_183 = arith.constant dense<0xFF800000> : vector<2xf32>
    %325 = vector.multi_reduction <maximumf>, %324, %cst_183 [1] : vector<2x2xf32> to vector<2xf32>
    %326 = vector.shape_cast %325 : vector<2xf32> to vector<2x1xf32>
    %327 = vector.broadcast %326 : vector<2x1xf32> to vector<2x2xf32>
    %328 = arith.subf %324, %327 : vector<2x2xf32>
    %329 = math.exp %328 : vector<2x2xf32>
    %cst_184 = arith.constant dense<0.000000e+00> : vector<2xf32>
    %330 = vector.multi_reduction <add>, %329, %cst_184 [1] : vector<2x2xf32> to vector<2xf32>
    %331 = vector.shape_cast %330 : vector<2xf32> to vector<2x1xf32>
    %332 = tpu.reciprocal %331 {approx = true} : vector<2x1xf32> -> vector<2x1xf32>
    %333 = vector.broadcast %332 : vector<2x1xf32> to vector<2x2xf32>
    %334 = arith.mulf %329, %333 : vector<2x2xf32>
    %335 = arith.truncf %334 : vector<2x2xf32> to vector<2x2xbf16>
    %cst_185 = arith.constant dense<0.000000e+00> : vector<2x8xf32>
    %336 = tpu.matmul %335, %321, %cst_185 {dimension_numbers = #tpu.dot_dimension_numbers<[1], [0], [0], [1], [0, 0, 1, 1], [], []>} : vector<2x2xbf16>, vector<2x8xbf16>, vector<2x8xf32> -> vector<2x8xf32>
    %c6_186 = arith.constant 6 : index
    %c16_187 = arith.constant 16 : index
    %337 = vector.load %arg16[%c6_186, %c16_187] : memref<8x32xf32, #tpu.memory_space<vmem>>, vector<2x8xf32>
    tpu.vector_store %arg16[%c6_186, %c16_187], %336 {strides = array<i32>} : memref<8x32xf32, #tpu.memory_space<vmem>>, vector<2x8xf32>,
    %c6_188 = arith.constant 6 : index
    %c24_189 = arith.constant 24 : index
    %338 = vector.load %arg15[%c6_188, %c24_189] : memref<8x96xf32, #tpu.memory_space<vmem>>, vector<2x8xf32>
    %339 = arith.truncf %338 : vector<2x8xf32> to vector<2x8xbf16>
    %c6_190 = arith.constant 6 : index
    %c56_191 = arith.constant 56 : index
    %340 = vector.load %arg15[%c6_190, %c56_191] : memref<8x96xf32, #tpu.memory_space<vmem>>, vector<2x8xf32>
    %341 = arith.truncf %340 : vector<2x8xf32> to vector<2x8xbf16>
    %c6_192 = arith.constant 6 : index
    %c88_193 = arith.constant 88 : index
    %342 = vector.load %arg15[%c6_192, %c88_193] : memref<8x96xf32, #tpu.memory_space<vmem>>, vector<2x8xf32>
    %343 = arith.truncf %342 : vector<2x8xf32> to vector<2x8xbf16>
    "tpu.trace_start"() <{level = 10 : i32, message = "qd,kd->qk"}> : () -> ()
    %cst_194 = arith.constant dense<0.000000e+00> : vector<2x2xf32>
    %344 = tpu.matmul %339, %341, %cst_194 {dimension_numbers = #tpu.dot_dimension_numbers<[1], [1], [0], [0], [0, 0, 1, 0], [], []>} : vector<2x8xbf16>, vector<2x8xbf16>, vector<2x2xf32> -> vector<2x2xf32>
    "tpu.trace_stop"() : () -> ()
    %cst_195 = arith.constant 0.353553385 : f32
    %345 = vector.broadcast %cst_195 : f32 to vector<2x2xf32>
    %346 = arith.mulf %344, %345 : vector<2x2xf32>
    %cst_196 = arith.constant dense<0xFF800000> : vector<2xf32>
    %347 = vector.multi_reduction <maximumf>, %346, %cst_196 [1] : vector<2x2xf32> to vector<2xf32>
    %348 = vector.shape_cast %347 : vector<2xf32> to vector<2x1xf32>
    %349 = vector.broadcast %348 : vector<2x1xf32> to vector<2x2xf32>
    %350 = arith.subf %346, %349 : vector<2x2xf32>
    %351 = math.exp %350 : vector<2x2xf32>
    %cst_197 = arith.constant dense<0.000000e+00> : vector<2xf32>
    %352 = vector.multi_reduction <add>, %351, %cst_197 [1] : vector<2x2xf32> to vector<2xf32>
    %353 = vector.shape_cast %352 : vector<2xf32> to vector<2x1xf32>
    %354 = tpu.reciprocal %353 {approx = true} : vector<2x1xf32> -> vector<2x1xf32>
    %355 = vector.broadcast %354 : vector<2x1xf32> to vector<2x2xf32>
    %356 = arith.mulf %351, %355 : vector<2x2xf32>
    %357 = arith.truncf %356 : vector<2x2xf32> to vector<2x2xbf16>
    %cst_198 = arith.constant dense<0.000000e+00> : vector<2x8xf32>
    %358 = tpu.matmul %357, %343, %cst_198 {dimension_numbers = #tpu.dot_dimension_numbers<[1], [0], [0], [1], [0, 0, 1, 1], [], []>} : vector<2x2xbf16>, vector<2x8xbf16>, vector<2x8xf32> -> vector<2x8xf32>
    %c6_199 = arith.constant 6 : index
    %c24_200 = arith.constant 24 : index
    %359 = vector.load %arg16[%c6_199, %c24_200] : memref<8x32xf32, #tpu.memory_space<vmem>>, vector<2x8xf32>
    tpu.vector_store %arg16[%c6_199, %c24_200], %358 {strides = array<i32>} : memref<8x32xf32, #tpu.memory_space<vmem>>, vector<2x8xf32>,
    %c0_201 = arith.constant 0 : index
    %c0_202 = arith.constant 0 : index
    %360 = vector.load %arg16[%c0_201, %c0_202] : memref<8x32xf32, #tpu.memory_space<vmem>>, vector<8x32xf32>
    %361 = arith.truncf %360 : vector<8x32xf32> to vector<8x32xbf16>
    %c0_203 = arith.constant 0 : index
    %c0_204 = arith.constant 0 : index
    %362 = vector.load %arg4[%c0_203, %c0_204] : memref<32x32xbf16, #tpu.memory_space<vmem>>, vector<32x32xbf16>
    %cst_205 = arith.constant dense<0.000000e+00> : vector<8x32xf32>
    %363 = tpu.matmul %361, %362, %cst_205 {dimension_numbers = #tpu.dot_dimension_numbers<[1], [0], [0], [1], [0, 0, 1, 1], [], []>} : vector<8x32xbf16>, vector<32x32xbf16>, vector<8x32xf32> -> vector<8x32xf32>
    %c0_206 = arith.constant 0 : index
    %c0_207 = arith.constant 0 : index
    %364 = vector.load %arg5[%c0_206, %c0_207] : memref<1x32xf32, #tpu.memory_space<vmem>>, vector<1x32xf32>
    %365 = vector.broadcast %364 : vector<1x32xf32> to vector<8x32xf32>
    %366 = arith.addf %363, %365 : vector<8x32xf32>
    %367 = arith.addf %0, %366 : vector<8x32xf32>
    %c0_208 = arith.constant 0 : index
    %c0_209 = arith.constant 0 : index
    %368 = vector.load %arg6[%c0_208, %c0_209] : memref<1x32xf32, #tpu.memory_space<vmem>>, vector<1x32xf32>
    %c0_210 = arith.constant 0 : index
    %c0_211 = arith.constant 0 : index
    %369 = vector.load %arg7[%c0_210, %c0_211] : memref<1x32xf32, #tpu.memory_space<vmem>>, vector<1x32xf32>
    %cst_212 = arith.constant dense<0.000000e+00> : vector<8xf32>
    %370 = vector.multi_reduction <add>, %367, %cst_212 [1] : vector<8x32xf32> to vector<8xf32>
    %371 = vector.shape_cast %370 : vector<8xf32> to vector<8x1xf32>
    %cst_213 = arith.constant 3.200000e+01 : f32
    %372 = vector.broadcast %cst_213 : f32 to vector<8x1xf32>
    %373 = arith.divf %371, %372 : vector<8x1xf32>
    %374 = vector.broadcast %373 : vector<8x1xf32> to vector<8x32xf32>
    %375 = arith.subf %367, %374 : vector<8x32xf32>
    %376 = arith.mulf %375, %375 : vector<8x32xf32>
    %cst_214 = arith.constant dense<0.000000e+00> : vector<8xf32>
    %377 = vector.multi_reduction <add>, %376, %cst_214 [1] : vector<8x32xf32> to vector<8xf32>
    %378 = vector.shape_cast %377 : vector<8xf32> to vector<8x1xf32>
    %cst_215 = arith.constant 3.200000e+01 : f32
    %379 = vector.broadcast %cst_215 : f32 to vector<8x1xf32>
    %380 = arith.divf %378, %379 : vector<8x1xf32>
    %381 = vector.broadcast %373 : vector<8x1xf32> to vector<8x32xf32>
    %382 = arith.subf %367, %381 : vector<8x32xf32>
    %cst_216 = arith.constant 9.99999974E-6 : f32
    %383 = vector.broadcast %cst_216 : f32 to vector<8x1xf32>
    %384 = arith.addf %380, %383 : vector<8x1xf32>
    %385 = math.rsqrt %384 : vector<8x1xf32>
    %386 = vector.broadcast %385 : vector<8x1xf32> to vector<8x32xf32>
    %387 = arith.mulf %382, %386 : vector<8x32xf32>
    %388 = vector.broadcast %368 : vector<1x32xf32> to vector<8x32xf32>
    %389 = arith.mulf %387, %388 : vector<8x32xf32>
    %390 = vector.broadcast %369 : vector<1x32xf32> to vector<8x32xf32>
    %391 = arith.addf %389, %390 : vector<8x32xf32>
    %392 = arith.truncf %391 : vector<8x32xf32> to vector<8x32xbf16>
    %c0_217 = arith.constant 0 : index
    %c0_218 = arith.constant 0 : index
    %393 = vector.load %arg8[%c0_217, %c0_218] : memref<32x2048xbf16, #tpu.memory_space<vmem>>, vector<32x2048xbf16>
    %cst_219 = arith.constant dense<0.000000e+00> : vector<8x2048xf32>
    %394 = tpu.matmul %392, %393, %cst_219 {dimension_numbers = #tpu.dot_dimension_numbers<[1], [0], [0], [1], [0, 0, 1, 1], [], []>} : vector<8x32xbf16>, vector<32x2048xbf16>, vector<8x2048xf32> -> vector<8x2048xf32>
    %c0_220 = arith.constant 0 : index
    %c0_221 = arith.constant 0 : index
    %395 = vector.load %arg9[%c0_220, %c0_221] : memref<1x2048xf32, #tpu.memory_space<vmem>>, vector<1x2048xf32>
    %396 = vector.broadcast %395 : vector<1x2048xf32> to vector<8x2048xf32>
    %397 = arith.addf %394, %396 : vector<8x2048xf32>
    %cst_222 = arith.constant 0.000000e+00 : f32
    %398 = vector.broadcast %cst_222 : f32 to vector<8x2048xf32>
    %399 = arith.maximumf %397, %398 : vector<8x2048xf32>
    %400 = arith.truncf %399 : vector<8x2048xf32> to vector<8x2048xbf16>
    %c0_223 = arith.constant 0 : index
    %c0_224 = arith.constant 0 : index
    %401 = vector.load %arg10[%c0_223, %c0_224] : memref<2048x32xbf16, #tpu.memory_space<vmem>>, vector<2048x32xbf16>
    %cst_225 = arith.constant dense<0.000000e+00> : vector<8x32xf32>
    %402 = tpu.matmul %400, %401, %cst_225 {dimension_numbers = #tpu.dot_dimension_numbers<[1], [0], [0], [1], [0, 0, 1, 1], [], []>} : vector<8x2048xbf16>, vector<2048x32xbf16>, vector<8x32xf32> -> vector<8x32xf32>
    %c0_226 = arith.constant 0 : index
    %c0_227 = arith.constant 0 : index
    %403 = vector.load %arg11[%c0_226, %c0_227] : memref<1x32xf32, #tpu.memory_space<vmem>>, vector<1x32xf32>
    %404 = vector.broadcast %403 : vector<1x32xf32> to vector<8x32xf32>
    %405 = arith.addf %402, %404 : vector<8x32xf32>
    %406 = arith.addf %391, %405 : vector<8x32xf32>
    %c0_228 = arith.constant 0 : index
    %c0_229 = arith.constant 0 : index
    %407 = vector.load %arg12[%c0_228, %c0_229] : memref<1x32xf32, #tpu.memory_space<vmem>>, vector<1x32xf32>
    %c0_230 = arith.constant 0 : index
    %c0_231 = arith.constant 0 : index
    %408 = vector.load %arg13[%c0_230, %c0_231] : memref<1x32xf32, #tpu.memory_space<vmem>>, vector<1x32xf32>
    %cst_232 = arith.constant dense<0.000000e+00> : vector<8xf32>
    %409 = vector.multi_reduction <add>, %406, %cst_232 [1] : vector<8x32xf32> to vector<8xf32>
    %410 = vector.shape_cast %409 : vector<8xf32> to vector<8x1xf32>
    %cst_233 = arith.constant 3.200000e+01 : f32
    %411 = vector.broadcast %cst_233 : f32 to vector<8x1xf32>
    %412 = arith.divf %410, %411 : vector<8x1xf32>
    %413 = vector.broadcast %412 : vector<8x1xf32> to vector<8x32xf32>
    %414 = arith.subf %406, %413 : vector<8x32xf32>
    %415 = arith.mulf %414, %414 : vector<8x32xf32>
    %cst_234 = arith.constant dense<0.000000e+00> : vector<8xf32>
    %416 = vector.multi_reduction <add>, %415, %cst_234 [1] : vector<8x32xf32> to vector<8xf32>
    %417 = vector.shape_cast %416 : vector<8xf32> to vector<8x1xf32>
    %cst_235 = arith.constant 3.200000e+01 : f32
    %418 = vector.broadcast %cst_235 : f32 to vector<8x1xf32>
    %419 = arith.divf %417, %418 : vector<8x1xf32>
    %420 = vector.broadcast %412 : vector<8x1xf32> to vector<8x32xf32>
    %421 = arith.subf %406, %420 : vector<8x32xf32>
    %cst_236 = arith.constant 9.99999974E-6 : f32
    %422 = vector.broadcast %cst_236 : f32 to vector<8x1xf32>
    %423 = arith.addf %419, %422 : vector<8x1xf32>
    %424 = math.rsqrt %423 : vector<8x1xf32>
    %425 = vector.broadcast %424 : vector<8x1xf32> to vector<8x32xf32>
    %426 = arith.mulf %421, %425 : vector<8x32xf32>
    %427 = vector.broadcast %407 : vector<1x32xf32> to vector<8x32xf32>
    %428 = arith.mulf %426, %427 : vector<8x32xf32>
    %429 = vector.broadcast %408 : vector<1x32xf32> to vector<8x32xf32>
    %430 = arith.addf %428, %429 : vector<8x32xf32>
    %c0_237 = arith.constant 0 : index
    %c0_238 = arith.constant 0 : index
    %431 = vector.load %arg14[%c0_237, %c0_238] : memref<8x32xf32, #tpu.memory_space<vmem>>, vector<8x32xf32>
    tpu.vector_store %arg14[%c0_237, %c0_238], %430 {strides = array<i32>} : memref<8x32xf32, #tpu.memory_space<vmem>>, vector<8x32xf32>,
    return
  }
  func.func @transform_0(%arg0: i32) -> (i32, i32) {
    %c0_i32 = arith.constant 0 : i32
    %c0_i32_0 = arith.constant 0 : i32
    return %arg0, %c0_i32 : i32, i32
  }
  func.func @transform_1(%arg0: i32) -> (i32, i32) {
    %c0_i32 = arith.constant 0 : i32
    %c0_i32_0 = arith.constant 0 : i32
    %c0_i32_1 = arith.constant 0 : i32
    return %c0_i32, %c0_i32_0 : i32, i32
  }
  func.func @transform_2(%arg0: i32) -> (i32, i32) {
    %c0_i32 = arith.constant 0 : i32
    %c0_i32_0 = arith.constant 0 : i32
    %c0_i32_1 = arith.constant 0 : i32
    return %c0_i32, %c0_i32_0 : i32, i32
  }
  func.func @transform_3(%arg0: i32) -> (i32, i32) {
    %c0_i32 = arith.constant 0 : i32
    %c0_i32_0 = arith.constant 0 : i32
    %c0_i32_1 = arith.constant 0 : i32
    return %c0_i32, %c0_i32_0 : i32, i32
  }
  func.func @transform_4(%arg0: i32) -> (i32, i32) {
    %c0_i32 = arith.constant 0 : i32
    %c0_i32_0 = arith.constant 0 : i32
    %c0_i32_1 = arith.constant 0 : i32
    return %c0_i32, %c0_i32_0 : i32, i32
  }
  func.func @transform_5(%arg0: i32) -> (i32, i32) {
    %c0_i32 = arith.constant 0 : i32
    %c0_i32_0 = arith.constant 0 : i32
    %c0_i32_1 = arith.constant 0 : i32
    return %c0_i32, %c0_i32_0 : i32, i32
  }
  func.func @transform_6(%arg0: i32) -> (i32, i32) {
    %c0_i32 = arith.constant 0 : i32
    %c0_i32_0 = arith.constant 0 : i32
    %c0_i32_1 = arith.constant 0 : i32
    return %c0_i32, %c0_i32_0 : i32, i32
  }
  func.func @transform_7(%arg0: i32) -> (i32, i32) {
    %c0_i32 = arith.constant 0 : i32
    %c0_i32_0 = arith.constant 0 : i32
    %c0_i32_1 = arith.constant 0 : i32
    return %c0_i32, %c0_i32_0 : i32, i32
  }
  func.func @transform_8(%arg0: i32) -> (i32, i32) {
    %c0_i32 = arith.constant 0 : i32
    %c0_i32_0 = arith.constant 0 : i32
    %c0_i32_1 = arith.constant 0 : i32
    return %c0_i32, %c0_i32_0 : i32, i32
  }
  func.func @transform_9(%arg0: i32) -> (i32, i32) {
    %c0_i32 = arith.constant 0 : i32
    %c0_i32_0 = arith.constant 0 : i32
    %c0_i32_1 = arith.constant 0 : i32
    return %c0_i32, %c0_i32_0 : i32, i32
  }
  func.func @transform_10(%arg0: i32) -> (i32, i32) {
    %c0_i32 = arith.constant 0 : i32
    %c0_i32_0 = arith.constant 0 : i32
    %c0_i32_1 = arith.constant 0 : i32
    return %c0_i32, %c0_i32_0 : i32, i32
  }
  func.func @transform_11(%arg0: i32) -> (i32, i32) {
    %c0_i32 = arith.constant 0 : i32
    %c0_i32_0 = arith.constant 0 : i32
    %c0_i32_1 = arith.constant 0 : i32
    return %c0_i32, %c0_i32_0 : i32, i32
  }
  func.func @transform_12(%arg0: i32) -> (i32, i32) {
    %c0_i32 = arith.constant 0 : i32
    %c0_i32_0 = arith.constant 0 : i32
    %c0_i32_1 = arith.constant 0 : i32
    return %c0_i32, %c0_i32_0 : i32, i32
  }
  func.func @transform_13(%arg0: i32) -> (i32, i32) {
    %c0_i32 = arith.constant 0 : i32
    %c0_i32_0 = arith.constant 0 : i32
    return %arg0, %c0_i32 : i32, i32
  }
}

module attributes {stable_mosaic.version = 11 : i64} {
  func.func @_cross_attention_kernel(%arg0: i32, %arg1: memref<8x32xf32, #tpu.memory_space<vmem>>, %arg2: memref<8x32xf32, #tpu.memory_space<vmem>>, %arg3: memref<32x32xbf16, #tpu.memory_space<vmem>>, %arg4: memref<1x32xf32, #tpu.memory_space<vmem>>, %arg5: memref<32x64xbf16, #tpu.memory_space<vmem>>, %arg6: memref<1x64xf32, #tpu.memory_space<vmem>>, %arg7: memref<32x32xbf16, #tpu.memory_space<vmem>>, %arg8: memref<1x32xf32, #tpu.memory_space<vmem>>, %arg9: memref<1x32xf32, #tpu.memory_space<vmem>>, %arg10: memref<1x32xf32, #tpu.memory_space<vmem>>, %arg11: memref<32x2048xbf16, #tpu.memory_space<vmem>>, %arg12: memref<1x2048xf32, #tpu.memory_space<vmem>>, %arg13: memref<2048x32xbf16, #tpu.memory_space<vmem>>, %arg14: memref<1x32xf32, #tpu.memory_space<vmem>>, %arg15: memref<1x32xf32, #tpu.memory_space<vmem>>, %arg16: memref<1x32xf32, #tpu.memory_space<vmem>>, %arg17: memref<8x32xf32, #tpu.memory_space<vmem>>, %arg18: memref<8x32xf32, #tpu.memory_space<vmem>>, %arg19: memref<8x64xf32, #tpu.memory_space<vmem>>, %arg20: memref<8x32xf32, #tpu.memory_space<vmem>>) attributes {dimension_semantics = [#tpu.dimension_semantics<parallel>], iteration_bounds = array<i64: 2>, scalar_prefetch = 0 : i64, scratch_operands = 3 : i64, tpu.core_type = #tpu.core_type<tc>, window_params = [{transform_indices = @transform_0, window_bounds = array<i64: 8, 32>}, {transform_indices = @transform_1, window_bounds = array<i64: 8, 32>}, {pipeline_mode = #tpu.pipeline_mode<synchronous>, transform_indices = @transform_2, window_bounds = array<i64: 32, 32>}, {pipeline_mode = #tpu.pipeline_mode<synchronous>, transform_indices = @transform_3, window_bounds = array<i64: 1, 32>}, {pipeline_mode = #tpu.pipeline_mode<synchronous>, transform_indices = @transform_4, window_bounds = array<i64: 32, 64>}, {pipeline_mode = #tpu.pipeline_mode<synchronous>, transform_indices = @transform_5, window_bounds = array<i64: 1, 64>}, {pipeline_mode = #tpu.pipeline_mode<synchronous>, transform_indices = @transform_6, window_bounds = array<i64: 32, 32>}, {pipeline_mode = #tpu.pipeline_mode<synchronous>, transform_indices = @transform_7, window_bounds = array<i64: 1, 32>}, {pipeline_mode = #tpu.pipeline_mode<synchronous>, transform_indices = @transform_8, window_bounds = array<i64: 1, 32>}, {pipeline_mode = #tpu.pipeline_mode<synchronous>, transform_indices = @transform_9, window_bounds = array<i64: 1, 32>}, {pipeline_mode = #tpu.pipeline_mode<synchronous>, transform_indices = @transform_10, window_bounds = array<i64: 32, 2048>}, {pipeline_mode = #tpu.pipeline_mode<synchronous>, transform_indices = @transform_11, window_bounds = array<i64: 1, 2048>}, {pipeline_mode = #tpu.pipeline_mode<synchronous>, transform_indices = @transform_12, window_bounds = array<i64: 2048, 32>}, {pipeline_mode = #tpu.pipeline_mode<synchronous>, transform_indices = @transform_13, window_bounds = array<i64: 1, 32>}, {pipeline_mode = #tpu.pipeline_mode<synchronous>, transform_indices = @transform_14, window_bounds = array<i64: 1, 32>}, {pipeline_mode = #tpu.pipeline_mode<synchronous>, transform_indices = @transform_15, window_bounds = array<i64: 1, 32>}, {transform_indices = @transform_16, window_bounds = array<i64: 8, 32>}]} {
    %c0 = arith.constant 0 : index
    %c0_0 = arith.constant 0 : index
    %0 = vector.load %arg1[%c0, %c0_0] : memref<8x32xf32, #tpu.memory_space<vmem>>, vector<8x32xf32>
    %1 = arith.truncf %0 : vector<8x32xf32> to vector<8x32xbf16>
    %c0_1 = arith.constant 0 : index
    %c0_2 = arith.constant 0 : index
    %2 = vector.load %arg3[%c0_1, %c0_2] : memref<32x32xbf16, #tpu.memory_space<vmem>>, vector<32x32xbf16>
    %cst = arith.constant dense<0.000000e+00> : vector<8x32xf32>
    %3 = tpu.matmul %1, %2, %cst {dimension_numbers = #tpu.dot_dimension_numbers<[1], [0], [0], [1], [0, 0, 1, 1], [], []>} : vector<8x32xbf16>, vector<32x32xbf16>, vector<8x32xf32> -> vector<8x32xf32>
    %c0_3 = arith.constant 0 : index
    %c0_4 = arith.constant 0 : index
    %4 = vector.load %arg4[%c0_3, %c0_4] : memref<1x32xf32, #tpu.memory_space<vmem>>, vector<1x32xf32>
    %5 = vector.broadcast %4 : vector<1x32xf32> to vector<8x32xf32>
    %6 = arith.addf %3, %5 : vector<8x32xf32>
    %c0_5 = arith.constant 0 : index
    %c0_6 = arith.constant 0 : index
    %7 = vector.load %arg18[%c0_5, %c0_6] : memref<8x32xf32, #tpu.memory_space<vmem>>, vector<8x32xf32>
    tpu.vector_store %arg18[%c0_5, %c0_6], %6 {strides = array<i32>} : memref<8x32xf32, #tpu.memory_space<vmem>>, vector<8x32xf32>,
    %c0_7 = arith.constant 0 : index
    %c0_8 = arith.constant 0 : index
    %8 = vector.load %arg2[%c0_7, %c0_8] : memref<8x32xf32, #tpu.memory_space<vmem>>, vector<8x32xf32>
    %9 = arith.truncf %8 : vector<8x32xf32> to vector<8x32xbf16>
    %c0_9 = arith.constant 0 : index
    %c0_10 = arith.constant 0 : index
    %10 = vector.load %arg5[%c0_9, %c0_10] : memref<32x64xbf16, #tpu.memory_space<vmem>>, vector<32x64xbf16>
    %cst_11 = arith.constant dense<0.000000e+00> : vector<8x64xf32>
    %11 = tpu.matmul %9, %10, %cst_11 {dimension_numbers = #tpu.dot_dimension_numbers<[1], [0], [0], [1], [0, 0, 1, 1], [], []>} : vector<8x32xbf16>, vector<32x64xbf16>, vector<8x64xf32> -> vector<8x64xf32>
    %c0_12 = arith.constant 0 : index
    %c0_13 = arith.constant 0 : index
    %12 = vector.load %arg6[%c0_12, %c0_13] : memref<1x64xf32, #tpu.memory_space<vmem>>, vector<1x64xf32>
    %13 = vector.broadcast %12 : vector<1x64xf32> to vector<8x64xf32>
    %14 = arith.addf %11, %13 : vector<8x64xf32>
    %c0_14 = arith.constant 0 : index
    %c0_15 = arith.constant 0 : index
    %15 = vector.load %arg19[%c0_14, %c0_15] : memref<8x64xf32, #tpu.memory_space<vmem>>, vector<8x64xf32>
    tpu.vector_store %arg19[%c0_14, %c0_15], %14 {strides = array<i32>} : memref<8x64xf32, #tpu.memory_space<vmem>>, vector<8x64xf32>,
    %c0_16 = arith.constant 0 : index
    %c0_17 = arith.constant 0 : index
    %16 = vector.load %arg18[%c0_16, %c0_17] : memref<8x32xf32, #tpu.memory_space<vmem>>, vector<8x8xf32>
    %17 = arith.truncf %16 : vector<8x8xf32> to vector<8x8xbf16>
    %c0_18 = arith.constant 0 : index
    %c0_19 = arith.constant 0 : index
    %18 = vector.load %arg19[%c0_18, %c0_19] : memref<8x64xf32, #tpu.memory_space<vmem>>, vector<8x8xf32>
    %19 = arith.truncf %18 : vector<8x8xf32> to vector<8x8xbf16>
    %c0_20 = arith.constant 0 : index
    %c32 = arith.constant 32 : index
    %20 = vector.load %arg19[%c0_20, %c32] : memref<8x64xf32, #tpu.memory_space<vmem>>, vector<8x8xf32>
    %21 = arith.truncf %20 : vector<8x8xf32> to vector<8x8xbf16>
    "tpu.trace_start"() <{level = 10 : i32, message = "qd,kd->qk"}> : () -> ()
    %cst_21 = arith.constant dense<0.000000e+00> : vector<8x8xf32>
    %22 = tpu.matmul %17, %19, %cst_21 {dimension_numbers = #tpu.dot_dimension_numbers<[1], [1], [0], [0], [0, 0, 1, 0], [], []>} : vector<8x8xbf16>, vector<8x8xbf16>, vector<8x8xf32> -> vector<8x8xf32>
    "tpu.trace_stop"() : () -> ()
    %cst_22 = arith.constant 0.353553385 : f32
    %23 = vector.broadcast %cst_22 : f32 to vector<8x8xf32>
    %24 = arith.mulf %22, %23 : vector<8x8xf32>
    %cst_23 = arith.constant dense<0xFF800000> : vector<8xf32>
    %25 = vector.multi_reduction <maximumf>, %24, %cst_23 [1] : vector<8x8xf32> to vector<8xf32>
    %26 = vector.shape_cast %25 : vector<8xf32> to vector<8x1xf32>
    %27 = vector.broadcast %26 : vector<8x1xf32> to vector<8x8xf32>
    %28 = arith.subf %24, %27 : vector<8x8xf32>
    %29 = math.exp %28 : vector<8x8xf32>
    %cst_24 = arith.constant dense<0.000000e+00> : vector<8xf32>
    %30 = vector.multi_reduction <add>, %29, %cst_24 [1] : vector<8x8xf32> to vector<8xf32>
    %31 = vector.shape_cast %30 : vector<8xf32> to vector<8x1xf32>
    %32 = tpu.reciprocal %31 {approx = true} : vector<8x1xf32> -> vector<8x1xf32>
    %33 = vector.broadcast %32 : vector<8x1xf32> to vector<8x8xf32>
    %34 = arith.mulf %29, %33 : vector<8x8xf32>
    %35 = arith.truncf %34 : vector<8x8xf32> to vector<8x8xbf16>
    %cst_25 = arith.constant dense<0.000000e+00> : vector<8x8xf32>
    %36 = tpu.matmul %35, %21, %cst_25 {dimension_numbers = #tpu.dot_dimension_numbers<[1], [0], [0], [1], [0, 0, 1, 1], [], []>} : vector<8x8xbf16>, vector<8x8xbf16>, vector<8x8xf32> -> vector<8x8xf32>
    %c0_26 = arith.constant 0 : index
    %c0_27 = arith.constant 0 : index
    %37 = vector.load %arg20[%c0_26, %c0_27] : memref<8x32xf32, #tpu.memory_space<vmem>>, vector<8x8xf32>
    tpu.vector_store %arg20[%c0_26, %c0_27], %36 {strides = array<i32>} : memref<8x32xf32, #tpu.memory_space<vmem>>, vector<8x8xf32>,
    %c0_28 = arith.constant 0 : index
    %c8 = arith.constant 8 : index
    %38 = vector.load %arg18[%c0_28, %c8] : memref<8x32xf32, #tpu.memory_space<vmem>>, vector<8x8xf32>
    %39 = arith.truncf %38 : vector<8x8xf32> to vector<8x8xbf16>
    %c0_29 = arith.constant 0 : index
    %c8_30 = arith.constant 8 : index
    %40 = vector.load %arg19[%c0_29, %c8_30] : memref<8x64xf32, #tpu.memory_space<vmem>>, vector<8x8xf32>
    %41 = arith.truncf %40 : vector<8x8xf32> to vector<8x8xbf16>
    %c0_31 = arith.constant 0 : index
    %c40 = arith.constant 40 : index
    %42 = vector.load %arg19[%c0_31, %c40] : memref<8x64xf32, #tpu.memory_space<vmem>>, vector<8x8xf32>
    %43 = arith.truncf %42 : vector<8x8xf32> to vector<8x8xbf16>
    "tpu.trace_start"() <{level = 10 : i32, message = "qd,kd->qk"}> : () -> ()
    %cst_32 = arith.constant dense<0.000000e+00> : vector<8x8xf32>
    %44 = tpu.matmul %39, %41, %cst_32 {dimension_numbers = #tpu.dot_dimension_numbers<[1], [1], [0], [0], [0, 0, 1, 0], [], []>} : vector<8x8xbf16>, vector<8x8xbf16>, vector<8x8xf32> -> vector<8x8xf32>
    "tpu.trace_stop"() : () -> ()
    %cst_33 = arith.constant 0.353553385 : f32
    %45 = vector.broadcast %cst_33 : f32 to vector<8x8xf32>
    %46 = arith.mulf %44, %45 : vector<8x8xf32>
    %cst_34 = arith.constant dense<0xFF800000> : vector<8xf32>
    %47 = vector.multi_reduction <maximumf>, %46, %cst_34 [1] : vector<8x8xf32> to vector<8xf32>
    %48 = vector.shape_cast %47 : vector<8xf32> to vector<8x1xf32>
    %49 = vector.broadcast %48 : vector<8x1xf32> to vector<8x8xf32>
    %50 = arith.subf %46, %49 : vector<8x8xf32>
    %51 = math.exp %50 : vector<8x8xf32>
    %cst_35 = arith.constant dense<0.000000e+00> : vector<8xf32>
    %52 = vector.multi_reduction <add>, %51, %cst_35 [1] : vector<8x8xf32> to vector<8xf32>
    %53 = vector.shape_cast %52 : vector<8xf32> to vector<8x1xf32>
    %54 = tpu.reciprocal %53 {approx = true} : vector<8x1xf32> -> vector<8x1xf32>
    %55 = vector.broadcast %54 : vector<8x1xf32> to vector<8x8xf32>
    %56 = arith.mulf %51, %55 : vector<8x8xf32>
    %57 = arith.truncf %56 : vector<8x8xf32> to vector<8x8xbf16>
    %cst_36 = arith.constant dense<0.000000e+00> : vector<8x8xf32>
    %58 = tpu.matmul %57, %43, %cst_36 {dimension_numbers = #tpu.dot_dimension_numbers<[1], [0], [0], [1], [0, 0, 1, 1], [], []>} : vector<8x8xbf16>, vector<8x8xbf16>, vector<8x8xf32> -> vector<8x8xf32>
    %c0_37 = arith.constant 0 : index
    %c8_38 = arith.constant 8 : index
    %59 = vector.load %arg20[%c0_37, %c8_38] : memref<8x32xf32, #tpu.memory_space<vmem>>, vector<8x8xf32>
    tpu.vector_store %arg20[%c0_37, %c8_38], %58 {strides = array<i32>} : memref<8x32xf32, #tpu.memory_space<vmem>>, vector<8x8xf32>,
    %c0_39 = arith.constant 0 : index
    %c16 = arith.constant 16 : index
    %60 = vector.load %arg18[%c0_39, %c16] : memref<8x32xf32, #tpu.memory_space<vmem>>, vector<8x8xf32>
    %61 = arith.truncf %60 : vector<8x8xf32> to vector<8x8xbf16>
    %c0_40 = arith.constant 0 : index
    %c16_41 = arith.constant 16 : index
    %62 = vector.load %arg19[%c0_40, %c16_41] : memref<8x64xf32, #tpu.memory_space<vmem>>, vector<8x8xf32>
    %63 = arith.truncf %62 : vector<8x8xf32> to vector<8x8xbf16>
    %c0_42 = arith.constant 0 : index
    %c48 = arith.constant 48 : index
    %64 = vector.load %arg19[%c0_42, %c48] : memref<8x64xf32, #tpu.memory_space<vmem>>, vector<8x8xf32>
    %65 = arith.truncf %64 : vector<8x8xf32> to vector<8x8xbf16>
    "tpu.trace_start"() <{level = 10 : i32, message = "qd,kd->qk"}> : () -> ()
    %cst_43 = arith.constant dense<0.000000e+00> : vector<8x8xf32>
    %66 = tpu.matmul %61, %63, %cst_43 {dimension_numbers = #tpu.dot_dimension_numbers<[1], [1], [0], [0], [0, 0, 1, 0], [], []>} : vector<8x8xbf16>, vector<8x8xbf16>, vector<8x8xf32> -> vector<8x8xf32>
    "tpu.trace_stop"() : () -> ()
    %cst_44 = arith.constant 0.353553385 : f32
    %67 = vector.broadcast %cst_44 : f32 to vector<8x8xf32>
    %68 = arith.mulf %66, %67 : vector<8x8xf32>
    %cst_45 = arith.constant dense<0xFF800000> : vector<8xf32>
    %69 = vector.multi_reduction <maximumf>, %68, %cst_45 [1] : vector<8x8xf32> to vector<8xf32>
    %70 = vector.shape_cast %69 : vector<8xf32> to vector<8x1xf32>
    %71 = vector.broadcast %70 : vector<8x1xf32> to vector<8x8xf32>
    %72 = arith.subf %68, %71 : vector<8x8xf32>
    %73 = math.exp %72 : vector<8x8xf32>
    %cst_46 = arith.constant dense<0.000000e+00> : vector<8xf32>
    %74 = vector.multi_reduction <add>, %73, %cst_46 [1] : vector<8x8xf32> to vector<8xf32>
    %75 = vector.shape_cast %74 : vector<8xf32> to vector<8x1xf32>
    %76 = tpu.reciprocal %75 {approx = true} : vector<8x1xf32> -> vector<8x1xf32>
    %77 = vector.broadcast %76 : vector<8x1xf32> to vector<8x8xf32>
    %78 = arith.mulf %73, %77 : vector<8x8xf32>
    %79 = arith.truncf %78 : vector<8x8xf32> to vector<8x8xbf16>
    %cst_47 = arith.constant dense<0.000000e+00> : vector<8x8xf32>
    %80 = tpu.matmul %79, %65, %cst_47 {dimension_numbers = #tpu.dot_dimension_numbers<[1], [0], [0], [1], [0, 0, 1, 1], [], []>} : vector<8x8xbf16>, vector<8x8xbf16>, vector<8x8xf32> -> vector<8x8xf32>
    %c0_48 = arith.constant 0 : index
    %c16_49 = arith.constant 16 : index
    %81 = vector.load %arg20[%c0_48, %c16_49] : memref<8x32xf32, #tpu.memory_space<vmem>>, vector<8x8xf32>
    tpu.vector_store %arg20[%c0_48, %c16_49], %80 {strides = array<i32>} : memref<8x32xf32, #tpu.memory_space<vmem>>, vector<8x8xf32>,
    %c0_50 = arith.constant 0 : index
    %c24 = arith.constant 24 : index
    %82 = vector.load %arg18[%c0_50, %c24] : memref<8x32xf32, #tpu.memory_space<vmem>>, vector<8x8xf32>
    %83 = arith.truncf %82 : vector<8x8xf32> to vector<8x8xbf16>
    %c0_51 = arith.constant 0 : index
    %c24_52 = arith.constant 24 : index
    %84 = vector.load %arg19[%c0_51, %c24_52] : memref<8x64xf32, #tpu.memory_space<vmem>>, vector<8x8xf32>
    %85 = arith.truncf %84 : vector<8x8xf32> to vector<8x8xbf16>
    %c0_53 = arith.constant 0 : index
    %c56 = arith.constant 56 : index
    %86 = vector.load %arg19[%c0_53, %c56] : memref<8x64xf32, #tpu.memory_space<vmem>>, vector<8x8xf32>
    %87 = arith.truncf %86 : vector<8x8xf32> to vector<8x8xbf16>
    "tpu.trace_start"() <{level = 10 : i32, message = "qd,kd->qk"}> : () -> ()
    %cst_54 = arith.constant dense<0.000000e+00> : vector<8x8xf32>
    %88 = tpu.matmul %83, %85, %cst_54 {dimension_numbers = #tpu.dot_dimension_numbers<[1], [1], [0], [0], [0, 0, 1, 0], [], []>} : vector<8x8xbf16>, vector<8x8xbf16>, vector<8x8xf32> -> vector<8x8xf32>
    "tpu.trace_stop"() : () -> ()
    %cst_55 = arith.constant 0.353553385 : f32
    %89 = vector.broadcast %cst_55 : f32 to vector<8x8xf32>
    %90 = arith.mulf %88, %89 : vector<8x8xf32>
    %cst_56 = arith.constant dense<0xFF800000> : vector<8xf32>
    %91 = vector.multi_reduction <maximumf>, %90, %cst_56 [1] : vector<8x8xf32> to vector<8xf32>
    %92 = vector.shape_cast %91 : vector<8xf32> to vector<8x1xf32>
    %93 = vector.broadcast %92 : vector<8x1xf32> to vector<8x8xf32>
    %94 = arith.subf %90, %93 : vector<8x8xf32>
    %95 = math.exp %94 : vector<8x8xf32>
    %cst_57 = arith.constant dense<0.000000e+00> : vector<8xf32>
    %96 = vector.multi_reduction <add>, %95, %cst_57 [1] : vector<8x8xf32> to vector<8xf32>
    %97 = vector.shape_cast %96 : vector<8xf32> to vector<8x1xf32>
    %98 = tpu.reciprocal %97 {approx = true} : vector<8x1xf32> -> vector<8x1xf32>
    %99 = vector.broadcast %98 : vector<8x1xf32> to vector<8x8xf32>
    %100 = arith.mulf %95, %99 : vector<8x8xf32>
    %101 = arith.truncf %100 : vector<8x8xf32> to vector<8x8xbf16>
    %cst_58 = arith.constant dense<0.000000e+00> : vector<8x8xf32>
    %102 = tpu.matmul %101, %87, %cst_58 {dimension_numbers = #tpu.dot_dimension_numbers<[1], [0], [0], [1], [0, 0, 1, 1], [], []>} : vector<8x8xbf16>, vector<8x8xbf16>, vector<8x8xf32> -> vector<8x8xf32>
    %c0_59 = arith.constant 0 : index
    %c24_60 = arith.constant 24 : index
    %103 = vector.load %arg20[%c0_59, %c24_60] : memref<8x32xf32, #tpu.memory_space<vmem>>, vector<8x8xf32>
    tpu.vector_store %arg20[%c0_59, %c24_60], %102 {strides = array<i32>} : memref<8x32xf32, #tpu.memory_space<vmem>>, vector<8x8xf32>,
    %c0_61 = arith.constant 0 : index
    %c0_62 = arith.constant 0 : index
    %104 = vector.load %arg20[%c0_61, %c0_62] : memref<8x32xf32, #tpu.memory_space<vmem>>, vector<8x32xf32>
    %105 = arith.truncf %104 : vector<8x32xf32> to vector<8x32xbf16>
    %c0_63 = arith.constant 0 : index
    %c0_64 = arith.constant 0 : index
    %106 = vector.load %arg7[%c0_63, %c0_64] : memref<32x32xbf16, #tpu.memory_space<vmem>>, vector<32x32xbf16>
    %cst_65 = arith.constant dense<0.000000e+00> : vector<8x32xf32>
    %107 = tpu.matmul %105, %106, %cst_65 {dimension_numbers = #tpu.dot_dimension_numbers<[1], [0], [0], [1], [0, 0, 1, 1], [], []>} : vector<8x32xbf16>, vector<32x32xbf16>, vector<8x32xf32> -> vector<8x32xf32>
    %c0_66 = arith.constant 0 : index
    %c0_67 = arith.constant 0 : index
    %108 = vector.load %arg8[%c0_66, %c0_67] : memref<1x32xf32, #tpu.memory_space<vmem>>, vector<1x32xf32>
    %109 = vector.broadcast %108 : vector<1x32xf32> to vector<8x32xf32>
    %110 = arith.addf %107, %109 : vector<8x32xf32>
    %c0_68 = arith.constant 0 : index
    %c0_69 = arith.constant 0 : index
    %111 = vector.load %arg9[%c0_68, %c0_69] : memref<1x32xf32, #tpu.memory_space<vmem>>, vector<1x32xf32>
    %c0_70 = arith.constant 0 : index
    %c0_71 = arith.constant 0 : index
    %112 = vector.load %arg10[%c0_70, %c0_71] : memref<1x32xf32, #tpu.memory_space<vmem>>, vector<1x32xf32>
    %cst_72 = arith.constant dense<0.000000e+00> : vector<8xf32>
    %113 = vector.multi_reduction <add>, %110, %cst_72 [1] : vector<8x32xf32> to vector<8xf32>
    %114 = vector.shape_cast %113 : vector<8xf32> to vector<8x1xf32>
    %cst_73 = arith.constant 3.200000e+01 : f32
    %115 = vector.broadcast %cst_73 : f32 to vector<8x1xf32>
    %116 = arith.divf %114, %115 : vector<8x1xf32>
    %117 = vector.broadcast %116 : vector<8x1xf32> to vector<8x32xf32>
    %118 = arith.subf %110, %117 : vector<8x32xf32>
    %119 = arith.mulf %118, %118 : vector<8x32xf32>
    %cst_74 = arith.constant dense<0.000000e+00> : vector<8xf32>
    %120 = vector.multi_reduction <add>, %119, %cst_74 [1] : vector<8x32xf32> to vector<8xf32>
    %121 = vector.shape_cast %120 : vector<8xf32> to vector<8x1xf32>
    %cst_75 = arith.constant 3.200000e+01 : f32
    %122 = vector.broadcast %cst_75 : f32 to vector<8x1xf32>
    %123 = arith.divf %121, %122 : vector<8x1xf32>
    %124 = vector.broadcast %116 : vector<8x1xf32> to vector<8x32xf32>
    %125 = arith.subf %110, %124 : vector<8x32xf32>
    %cst_76 = arith.constant 9.99999974E-6 : f32
    %126 = vector.broadcast %cst_76 : f32 to vector<8x1xf32>
    %127 = arith.addf %123, %126 : vector<8x1xf32>
    %128 = math.rsqrt %127 : vector<8x1xf32>
    %129 = vector.broadcast %128 : vector<8x1xf32> to vector<8x32xf32>
    %130 = arith.mulf %125, %129 : vector<8x32xf32>
    %131 = vector.broadcast %111 : vector<1x32xf32> to vector<8x32xf32>
    %132 = arith.mulf %130, %131 : vector<8x32xf32>
    %133 = vector.broadcast %112 : vector<1x32xf32> to vector<8x32xf32>
    %134 = arith.addf %132, %133 : vector<8x32xf32>
    %135 = arith.truncf %134 : vector<8x32xf32> to vector<8x32xbf16>
    %c0_77 = arith.constant 0 : index
    %c0_78 = arith.constant 0 : index
    %136 = vector.load %arg11[%c0_77, %c0_78] : memref<32x2048xbf16, #tpu.memory_space<vmem>>, vector<32x2048xbf16>
    %cst_79 = arith.constant dense<0.000000e+00> : vector<8x2048xf32>
    %137 = tpu.matmul %135, %136, %cst_79 {dimension_numbers = #tpu.dot_dimension_numbers<[1], [0], [0], [1], [0, 0, 1, 1], [], []>} : vector<8x32xbf16>, vector<32x2048xbf16>, vector<8x2048xf32> -> vector<8x2048xf32>
    %c0_80 = arith.constant 0 : index
    %c0_81 = arith.constant 0 : index
    %138 = vector.load %arg12[%c0_80, %c0_81] : memref<1x2048xf32, #tpu.memory_space<vmem>>, vector<1x2048xf32>
    %139 = vector.broadcast %138 : vector<1x2048xf32> to vector<8x2048xf32>
    %140 = arith.addf %137, %139 : vector<8x2048xf32>
    %cst_82 = arith.constant 0.000000e+00 : f32
    %141 = vector.broadcast %cst_82 : f32 to vector<8x2048xf32>
    %142 = arith.subf %141, %140 : vector<8x2048xf32>
    %143 = math.exp %142 : vector<8x2048xf32>
    %cst_83 = arith.constant 1.000000e+00 : f32
    %144 = vector.broadcast %cst_83 : f32 to vector<8x2048xf32>
    %145 = arith.addf %144, %143 : vector<8x2048xf32>
    %146 = tpu.reciprocal %145 {approx = true} : vector<8x2048xf32> -> vector<8x2048xf32>
    %147 = arith.mulf %140, %146 : vector<8x2048xf32>
    %148 = arith.truncf %147 : vector<8x2048xf32> to vector<8x2048xbf16>
    %c0_84 = arith.constant 0 : index
    %c0_85 = arith.constant 0 : index
    %149 = vector.load %arg13[%c0_84, %c0_85] : memref<2048x32xbf16, #tpu.memory_space<vmem>>, vector<2048x32xbf16>
    %cst_86 = arith.constant dense<0.000000e+00> : vector<8x32xf32>
    %150 = tpu.matmul %148, %149, %cst_86 {dimension_numbers = #tpu.dot_dimension_numbers<[1], [0], [0], [1], [0, 0, 1, 1], [], []>} : vector<8x2048xbf16>, vector<2048x32xbf16>, vector<8x32xf32> -> vector<8x32xf32>
    %c0_87 = arith.constant 0 : index
    %c0_88 = arith.constant 0 : index
    %151 = vector.load %arg14[%c0_87, %c0_88] : memref<1x32xf32, #tpu.memory_space<vmem>>, vector<1x32xf32>
    %152 = vector.broadcast %151 : vector<1x32xf32> to vector<8x32xf32>
    %153 = arith.addf %150, %152 : vector<8x32xf32>
    %154 = arith.addf %153, %134 : vector<8x32xf32>
    %c0_89 = arith.constant 0 : index
    %c0_90 = arith.constant 0 : index
    %155 = vector.load %arg15[%c0_89, %c0_90] : memref<1x32xf32, #tpu.memory_space<vmem>>, vector<1x32xf32>
    %c0_91 = arith.constant 0 : index
    %c0_92 = arith.constant 0 : index
    %156 = vector.load %arg16[%c0_91, %c0_92] : memref<1x32xf32, #tpu.memory_space<vmem>>, vector<1x32xf32>
    %cst_93 = arith.constant dense<0.000000e+00> : vector<8xf32>
    %157 = vector.multi_reduction <add>, %154, %cst_93 [1] : vector<8x32xf32> to vector<8xf32>
    %158 = vector.shape_cast %157 : vector<8xf32> to vector<8x1xf32>
    %cst_94 = arith.constant 3.200000e+01 : f32
    %159 = vector.broadcast %cst_94 : f32 to vector<8x1xf32>
    %160 = arith.divf %158, %159 : vector<8x1xf32>
    %161 = vector.broadcast %160 : vector<8x1xf32> to vector<8x32xf32>
    %162 = arith.subf %154, %161 : vector<8x32xf32>
    %163 = arith.mulf %162, %162 : vector<8x32xf32>
    %cst_95 = arith.constant dense<0.000000e+00> : vector<8xf32>
    %164 = vector.multi_reduction <add>, %163, %cst_95 [1] : vector<8x32xf32> to vector<8xf32>
    %165 = vector.shape_cast %164 : vector<8xf32> to vector<8x1xf32>
    %cst_96 = arith.constant 3.200000e+01 : f32
    %166 = vector.broadcast %cst_96 : f32 to vector<8x1xf32>
    %167 = arith.divf %165, %166 : vector<8x1xf32>
    %168 = vector.broadcast %160 : vector<8x1xf32> to vector<8x32xf32>
    %169 = arith.subf %154, %168 : vector<8x32xf32>
    %cst_97 = arith.constant 9.99999974E-6 : f32
    %170 = vector.broadcast %cst_97 : f32 to vector<8x1xf32>
    %171 = arith.addf %167, %170 : vector<8x1xf32>
    %172 = math.rsqrt %171 : vector<8x1xf32>
    %173 = vector.broadcast %172 : vector<8x1xf32> to vector<8x32xf32>
    %174 = arith.mulf %169, %173 : vector<8x32xf32>
    %175 = vector.broadcast %155 : vector<1x32xf32> to vector<8x32xf32>
    %176 = arith.mulf %174, %175 : vector<8x32xf32>
    %177 = vector.broadcast %156 : vector<1x32xf32> to vector<8x32xf32>
    %178 = arith.addf %176, %177 : vector<8x32xf32>
    %c0_98 = arith.constant 0 : index
    %c0_99 = arith.constant 0 : index
    %179 = vector.load %arg17[%c0_98, %c0_99] : memref<8x32xf32, #tpu.memory_space<vmem>>, vector<8x32xf32>
    tpu.vector_store %arg17[%c0_98, %c0_99], %178 {strides = array<i32>} : memref<8x32xf32, #tpu.memory_space<vmem>>, vector<8x32xf32>,
    return
  }
  func.func @transform_0(%arg0: i32) -> (i32, i32) {
    %c0_i32 = arith.constant 0 : i32
    %c0_i32_0 = arith.constant 0 : i32
    return %arg0, %c0_i32 : i32, i32
  }
  func.func @transform_1(%arg0: i32) -> (i32, i32) {
    %c0_i32 = arith.constant 0 : i32
    %c0_i32_0 = arith.constant 0 : i32
    return %arg0, %c0_i32 : i32, i32
  }
  func.func @transform_2(%arg0: i32) -> (i32, i32) {
    %c0_i32 = arith.constant 0 : i32
    %c0_i32_0 = arith.constant 0 : i32
    %c0_i32_1 = arith.constant 0 : i32
    return %c0_i32, %c0_i32_0 : i32, i32
  }
  func.func @transform_3(%arg0: i32) -> (i32, i32) {
    %c0_i32 = arith.constant 0 : i32
    %c0_i32_0 = arith.constant 0 : i32
    %c0_i32_1 = arith.constant 0 : i32
    return %c0_i32, %c0_i32_0 : i32, i32
  }
  func.func @transform_4(%arg0: i32) -> (i32, i32) {
    %c0_i32 = arith.constant 0 : i32
    %c0_i32_0 = arith.constant 0 : i32
    %c0_i32_1 = arith.constant 0 : i32
    return %c0_i32, %c0_i32_0 : i32, i32
  }
  func.func @transform_5(%arg0: i32) -> (i32, i32) {
    %c0_i32 = arith.constant 0 : i32
    %c0_i32_0 = arith.constant 0 : i32
    %c0_i32_1 = arith.constant 0 : i32
    return %c0_i32, %c0_i32_0 : i32, i32
  }
  func.func @transform_6(%arg0: i32) -> (i32, i32) {
    %c0_i32 = arith.constant 0 : i32
    %c0_i32_0 = arith.constant 0 : i32
    %c0_i32_1 = arith.constant 0 : i32
    return %c0_i32, %c0_i32_0 : i32, i32
  }
  func.func @transform_7(%arg0: i32) -> (i32, i32) {
    %c0_i32 = arith.constant 0 : i32
    %c0_i32_0 = arith.constant 0 : i32
    %c0_i32_1 = arith.constant 0 : i32
    return %c0_i32, %c0_i32_0 : i32, i32
  }
  func.func @transform_8(%arg0: i32) -> (i32, i32) {
    %c0_i32 = arith.constant 0 : i32
    %c0_i32_0 = arith.constant 0 : i32
    %c0_i32_1 = arith.constant 0 : i32
    return %c0_i32, %c0_i32_0 : i32, i32
  }
  func.func @transform_9(%arg0: i32) -> (i32, i32) {
    %c0_i32 = arith.constant 0 : i32
    %c0_i32_0 = arith.constant 0 : i32
    %c0_i32_1 = arith.constant 0 : i32
    return %c0_i32, %c0_i32_0 : i32, i32
  }
  func.func @transform_10(%arg0: i32) -> (i32, i32) {
    %c0_i32 = arith.constant 0 : i32
    %c0_i32_0 = arith.constant 0 : i32
    %c0_i32_1 = arith.constant 0 : i32
    return %c0_i32, %c0_i32_0 : i32, i32
  }
  func.func @transform_11(%arg0: i32) -> (i32, i32) {
    %c0_i32 = arith.constant 0 : i32
    %c0_i32_0 = arith.constant 0 : i32
    %c0_i32_1 = arith.constant 0 : i32
    return %c0_i32, %c0_i32_0 : i32, i32
  }
  func.func @transform_12(%arg0: i32) -> (i32, i32) {
    %c0_i32 = arith.constant 0 : i32
    %c0_i32_0 = arith.constant 0 : i32
    %c0_i32_1 = arith.constant 0 : i32
    return %c0_i32, %c0_i32_0 : i32, i32
  }
  func.func @transform_13(%arg0: i32) -> (i32, i32) {
    %c0_i32 = arith.constant 0 : i32
    %c0_i32_0 = arith.constant 0 : i32
    %c0_i32_1 = arith.constant 0 : i32
    return %c0_i32, %c0_i32_0 : i32, i32
  }
  func.func @transform_14(%arg0: i32) -> (i32, i32) {
    %c0_i32 = arith.constant 0 : i32
    %c0_i32_0 = arith.constant 0 : i32
    %c0_i32_1 = arith.constant 0 : i32
    return %c0_i32, %c0_i32_0 : i32, i32
  }
  func.func @transform_15(%arg0: i32) -> (i32, i32) {
    %c0_i32 = arith.constant 0 : i32
    %c0_i32_0 = arith.constant 0 : i32
    %c0_i32_1 = arith.constant 0 : i32
    return %c0_i32, %c0_i32_0 : i32, i32
  }
  func.func @transform_16(%arg0: i32) -> (i32, i32) {
    %c0_i32 = arith.constant 0 : i32
    %c0_i32_0 = arith.constant 0 : i32
    return %arg0, %c0_i32 : i32, i32
  }
}

module attributes {stable_mosaic.version = 11 : i64} {
  func.func @_reduction_kernel(%arg0: i32, %arg1: memref<8x32xf32, #tpu.memory_space<vmem>>, %arg2: memref<8x32xf32, #tpu.memory_space<vmem>>, %arg3: memref<32x32xbf16, #tpu.memory_space<vmem>>, %arg4: memref<32x32xbf16, #tpu.memory_space<vmem>>, %arg5: memref<1x32xf32, #tpu.memory_space<vmem>>, %arg6: memref<1x32xf32, #tpu.memory_space<vmem>>, %arg7: memref<1x32xf32, #tpu.memory_space<vmem>>, %arg8: memref<1x32xf32, #tpu.memory_space<vmem>>, %arg9: memref<8x32xf32, #tpu.memory_space<vmem>>, %arg10: memref<8x32xf32, #tpu.memory_space<vmem>>) attributes {dimension_semantics = [#tpu.dimension_semantics<parallel>], iteration_bounds = array<i64: 2>, scalar_prefetch = 0 : i64, scratch_operands = 0 : i64, tpu.core_type = #tpu.core_type<tc>, window_params = [{transform_indices = @transform_0, window_bounds = array<i64: 8, 32>}, {transform_indices = @transform_1, window_bounds = array<i64: 8, 32>}, {pipeline_mode = #tpu.pipeline_mode<synchronous>, transform_indices = @transform_2, window_bounds = array<i64: 32, 32>}, {pipeline_mode = #tpu.pipeline_mode<synchronous>, transform_indices = @transform_3, window_bounds = array<i64: 32, 32>}, {pipeline_mode = #tpu.pipeline_mode<synchronous>, transform_indices = @transform_4, window_bounds = array<i64: 1, 32>}, {pipeline_mode = #tpu.pipeline_mode<synchronous>, transform_indices = @transform_5, window_bounds = array<i64: 1, 32>}, {pipeline_mode = #tpu.pipeline_mode<synchronous>, transform_indices = @transform_6, window_bounds = array<i64: 1, 32>}, {pipeline_mode = #tpu.pipeline_mode<synchronous>, transform_indices = @transform_7, window_bounds = array<i64: 1, 32>}, {transform_indices = @transform_8, window_bounds = array<i64: 8, 32>}, {transform_indices = @transform_9, window_bounds = array<i64: 8, 32>}]} {
    %c0 = arith.constant 0 : index
    %c0_0 = arith.constant 0 : index
    %0 = vector.load %arg1[%c0, %c0_0] : memref<8x32xf32, #tpu.memory_space<vmem>>, vector<8x32xf32>
    %1 = arith.truncf %0 : vector<8x32xf32> to vector<8x32xbf16>
    %c0_1 = arith.constant 0 : index
    %c0_2 = arith.constant 0 : index
    %2 = vector.load %arg3[%c0_1, %c0_2] : memref<32x32xbf16, #tpu.memory_space<vmem>>, vector<32x32xbf16>
    %cst = arith.constant dense<0.000000e+00> : vector<8x32xf32>
    %3 = tpu.matmul %1, %2, %cst {dimension_numbers = #tpu.dot_dimension_numbers<[1], [0], [0], [1], [0, 0, 1, 1], [], []>} : vector<8x32xbf16>, vector<32x32xbf16>, vector<8x32xf32> -> vector<8x32xf32>
    %c0_3 = arith.constant 0 : index
    %c0_4 = arith.constant 0 : index
    %4 = vector.load %arg2[%c0_3, %c0_4] : memref<8x32xf32, #tpu.memory_space<vmem>>, vector<8x32xf32>
    %5 = arith.truncf %4 : vector<8x32xf32> to vector<8x32xbf16>
    %c0_5 = arith.constant 0 : index
    %c0_6 = arith.constant 0 : index
    %6 = vector.load %arg4[%c0_5, %c0_6] : memref<32x32xbf16, #tpu.memory_space<vmem>>, vector<32x32xbf16>
    %cst_7 = arith.constant dense<0.000000e+00> : vector<8x32xf32>
    %7 = tpu.matmul %5, %6, %cst_7 {dimension_numbers = #tpu.dot_dimension_numbers<[1], [0], [0], [1], [0, 0, 1, 1], [], []>} : vector<8x32xbf16>, vector<32x32xbf16>, vector<8x32xf32> -> vector<8x32xf32>
    %8 = arith.addf %3, %7 : vector<8x32xf32>
    %c0_8 = arith.constant 0 : index
    %c0_9 = arith.constant 0 : index
    %9 = vector.load %arg7[%c0_8, %c0_9] : memref<1x32xf32, #tpu.memory_space<vmem>>, vector<1x32xf32>
    %10 = vector.broadcast %9 : vector<1x32xf32> to vector<8x32xf32>
    %11 = arith.subf %8, %10 : vector<8x32xf32>
    %c0_10 = arith.constant 0 : index
    %c0_11 = arith.constant 0 : index
    %12 = vector.load %arg8[%c0_10, %c0_11] : memref<1x32xf32, #tpu.memory_space<vmem>>, vector<1x32xf32>
    %cst_12 = arith.constant 9.99999974E-6 : f32
    %13 = vector.broadcast %cst_12 : f32 to vector<1x32xf32>
    %14 = arith.addf %12, %13 : vector<1x32xf32>
    %15 = math.rsqrt %14 : vector<1x32xf32>
    %16 = vector.broadcast %15 : vector<1x32xf32> to vector<8x32xf32>
    %17 = arith.mulf %11, %16 : vector<8x32xf32>
    %c0_13 = arith.constant 0 : index
    %c0_14 = arith.constant 0 : index
    %18 = vector.load %arg5[%c0_13, %c0_14] : memref<1x32xf32, #tpu.memory_space<vmem>>, vector<1x32xf32>
    %19 = vector.broadcast %18 : vector<1x32xf32> to vector<8x32xf32>
    %20 = arith.mulf %17, %19 : vector<8x32xf32>
    %c0_15 = arith.constant 0 : index
    %c0_16 = arith.constant 0 : index
    %21 = vector.load %arg6[%c0_15, %c0_16] : memref<1x32xf32, #tpu.memory_space<vmem>>, vector<1x32xf32>
    %22 = vector.broadcast %21 : vector<1x32xf32> to vector<8x32xf32>
    %23 = arith.addf %20, %22 : vector<8x32xf32>
    %cst_17 = arith.constant 0.000000e+00 : f32
    %24 = vector.broadcast %cst_17 : f32 to vector<8x32xf32>
    %25 = arith.subf %24, %23 : vector<8x32xf32>
    %26 = math.exp %25 : vector<8x32xf32>
    %cst_18 = arith.constant 1.000000e+00 : f32
    %27 = vector.broadcast %cst_18 : f32 to vector<8x32xf32>
    %28 = arith.addf %27, %26 : vector<8x32xf32>
    %29 = tpu.reciprocal %28 {approx = true} : vector<8x32xf32> -> vector<8x32xf32>
    %30 = arith.mulf %23, %29 : vector<8x32xf32>
    %c0_19 = arith.constant 0 : index
    %c0_20 = arith.constant 0 : index
    %31 = vector.load %arg9[%c0_19, %c0_20] : memref<8x32xf32, #tpu.memory_space<vmem>>, vector<8x32xf32>
    %32 = arith.addf %30, %31 : vector<8x32xf32>
    %c0_21 = arith.constant 0 : index
    %c0_22 = arith.constant 0 : index
    %33 = vector.load %arg10[%c0_21, %c0_22] : memref<8x32xf32, #tpu.memory_space<vmem>>, vector<8x32xf32>
    tpu.vector_store %arg10[%c0_21, %c0_22], %32 {strides = array<i32>} : memref<8x32xf32, #tpu.memory_space<vmem>>, vector<8x32xf32>,
    return
  }
  func.func @transform_0(%arg0: i32) -> (i32, i32) {
    %c0_i32 = arith.constant 0 : i32
    %c0_i32_0 = arith.constant 0 : i32
    return %arg0, %c0_i32 : i32, i32
  }
  func.func @transform_1(%arg0: i32) -> (i32, i32) {
    %c0_i32 = arith.constant 0 : i32
    %c0_i32_0 = arith.constant 0 : i32
    return %arg0, %c0_i32 : i32, i32
  }
  func.func @transform_2(%arg0: i32) -> (i32, i32) {
    %c0_i32 = arith.constant 0 : i32
    %c0_i32_0 = arith.constant 0 : i32
    %c0_i32_1 = arith.constant 0 : i32
    return %c0_i32, %c0_i32_0 : i32, i32
  }
  func.func @transform_3(%arg0: i32) -> (i32, i32) {
    %c0_i32 = arith.constant 0 : i32
    %c0_i32_0 = arith.constant 0 : i32
    %c0_i32_1 = arith.constant 0 : i32
    return %c0_i32, %c0_i32_0 : i32, i32
  }
  func.func @transform_4(%arg0: i32) -> (i32, i32) {
    %c0_i32 = arith.constant 0 : i32
    %c0_i32_0 = arith.constant 0 : i32
    %c0_i32_1 = arith.constant 0 : i32
    return %c0_i32, %c0_i32_0 : i32, i32
  }
  func.func @transform_5(%arg0: i32) -> (i32, i32) {
    %c0_i32 = arith.constant 0 : i32
    %c0_i32_0 = arith.constant 0 : i32
    %c0_i32_1 = arith.constant 0 : i32
    return %c0_i32, %c0_i32_0 : i32, i32
  }
  func.func @transform_6(%arg0: i32) -> (i32, i32) {
    %c0_i32 = arith.constant 0 : i32
    %c0_i32_0 = arith.constant 0 : i32
    %c0_i32_1 = arith.constant 0 : i32
    return %c0_i32, %c0_i32_0 : i32, i32
  }
  func.func @transform_7(%arg0: i32) -> (i32, i32) {
    %c0_i32 = arith.constant 0 : i32
    %c0_i32_0 = arith.constant 0 : i32
    %c0_i32_1 = arith.constant 0 : i32
    return %c0_i32, %c0_i32_0 : i32, i32
  }
  func.func @transform_8(%arg0: i32) -> (i32, i32) {
    %c0_i32 = arith.constant 0 : i32
    %c0_i32_0 = arith.constant 0 : i32
    return %arg0, %c0_i32 : i32, i32
  }
  func.func @transform_9(%arg0: i32) -> (i32, i32) {
    %c0_i32 = arith.constant 0 : i32
    %c0_i32_0 = arith.constant 0 : i32
    return %arg0, %c0_i32 : i32, i32
  }
}

</mosaic_0001>

<bundles_post_ra>
// kernel: seperator_block.14
= control target key start
LH: loop header
LB: loop body
LE: loop exit
PB: predicated region body
PF: predicated region fallthrough
CT: control target
= control target key end

     0   :  { %s890_s0 = inlined_call_operand.vmem [shape: f32[16,32], index: 0, kind: input, shape index: {}]   ;;  %s891_s1 = inlined_call_operand.vmem [shape: f32[16,32], index: 1, kind: input, shape index: {}]   ;;  %s892_s2 = inlined_call_operand.vmem [shape: bf16[32,32], index: 2, kind: input, shape index: {}]   ;;  %s893_s3 = inlined_call_operand.vmem [shape: bf16[32,32], index: 3, kind: input, shape index: {}]   ;;  %s894_s4 = inlined_call_operand.vmem [shape: f32[1,32], index: 4, kind: input, shape index: {}]   ;;  %s895_s5 = inlined_call_operand.vmem [shape: f32[1,32], index: 5, kind: input, shape index: {}]   ;;  %s896_s6 = inlined_call_operand.vmem [shape: f32[1,32], index: 6, kind: input, shape index: {}]   ;;  %s897_s7 = inlined_call_operand.vmem [shape: f32[1,32], index: 7, kind: input, shape index: {}]   ;;  %s898_s8 = inlined_call_operand.vmem [shape: f32[16,32], index: 8, kind: input, shape index: {}]   ;;  %s899_s9 = inlined_call_operand.hbm [shape: f32[16,32], index: 9, kind: output, shape index: {}]  }
   0x1   :  { %900 = sst [smem:[#allocation5_spill]] %s890_s0 }
   0x2   :  { %901 = sst [smem:[#allocation6_spill]] %s891_s1 }
   0x3   :  { %14 = vsyncpa [#allocation3], 0 }
   0x4   :  { %16 = vsyncpa [#allocation3 + $0x1], 0  ;;  %s767_s30 = smov 0   ;;  %s769_s10 = smov 0  }
   0x5   :  { %s771_s11 = smov 0   ;;  %s773_s12 = smov 0  }
   0x6 LB: > { %s788_s13 = sadd.s32 4294967295, %s715_s12   ;;  %s571_s14 = sadd.s32 4294967294, %s715_s12   ;;  %s715_s12 = sphi %s773_s12, %s909_s12   ;;  %s711_s11 = sphi %s771_s11, %s908_s11   ;;  %s707_s10 = sphi %s769_s10, %s907_s10   ;;  %s703_s30 = sphi %s767_s30, %s906_s30  }
   0x7   : > { %s792_s15 = sadd.s32 1, %s715_s12   ;;  %s233_s16 = sadd.s32 1, %s711_s11 }
   0x8   : > { %s230_s17 = ssub.s32 %s715_s12, %s792_s15  ;;  %p243_p0 = scmp.ne.s32.totalorder %s711_s11, %s707_s10 }
   0x9   : > { %p231_p1 = scmp.eq.s32.totalorder %s230_s17, 0  ;;  %p244_p2 = scmp.eq.s32.totalorder %s788_s13, 1 }
   0xa   : > { %p249_p3 = scmp.ne.s32.totalorder %s707_s10, %s703_s30  ;;  %p250_p4 = scmp.eq.s32.totalorder %s571_s14, 1 }
   0xb   : > { %s803_s18 = scalar_select %p231_p1, %s711_s11, %s233_s16  }
   0xc   : > { %p805_p5 = por %p244_p2, %p243_p0  ;;  %p809_p6 = por %p250_p4, %p249_p3 }
   0xd   : > { %p574_p7 = scmp.ge.s32.totalorder %s715_s12, 1  ;;  %p307_p8 = scmp.lt.s32.totalorder %s715_s12, 3 }
   0xf   : > { %p308_p9 = pnand %p574_p7, %p307_p8 }
  0x10   : > { %p350_p10 = scmp.lt.s32.totalorder (!%p308_p9), %s788_s13, 1  ;;  %s904_s1 = sld [smem:[#allocation6_spill]] (!%p308_p9) }
  0x11   : > { %311 = sbr.rel (%p308_p9) target bundleno = 194 (0xc2), region = 56  ;;  %s905_s0 = sld [smem:[#allocation5_spill]] (!%p308_p9) }
  0x12   : > { %s347_s22 = sand.u32 (!%p308_p9), 1, %s707_s10  }
  0x13   : > { %s575_s23 = sshll.u32 (!%p308_p9), %s347_s22, 3 }
  0x14   : > { %s349_s17 = scalar_lea.vmem (!%p308_p9), [#allocation2], %s575_s23  ;;  %s673_s23 = scalar_lea.hbm (!%p308_p9), %s899_s9, 16 }
  0x16   : > { %v604_v0 = vld [vmem:[%s893_s3 + $0x8] sm:$0xff]  ;;  %v603_v2 = vld [vmem:[%s893_s3] sm:$0xff]  ;;  %s351_s29 = scalar_select %p350_p10, %s788_s13, 1  ;;  %vm387_vm0 = vcmask 261120  }
  0x17   : > { %v602_v1 = vld [vmem:[%s892_s2 + $0x8] sm:$0xff]  ;;  %397 = vmatpush.bf16.msra.mxu0 %v604_v0  ;;  %v601_v3 = vld [vmem:[%s892_s2] sm:$0xff] }
  0x18   : > { %425 = vmatpush.bf16.msra.mxu1 %v602_v1  ;;  %s829_s14 = sshll.u32 %s351_s29, 3  ;;  %v437_v8 = vld [vmem:[%s897_s7] sm:$0x1] }
  0x19   : > { %s357_s21 = scalar_lea.vmem %s904_s1, %s829_s14  ;;  %s353_s24 = scalar_lea.vmem %s905_s0, %s829_s14  ;;  %v438_v9 = vadd.f32 1e-05, %v437_v8  ;;  %v644_v18 = vld [vmem:[%s896_s6] ss:$0 sm:$0xff] }
  0x1a   : > { %v369_v4 = vld [vmem:[%s357_s21] sm:$0xff]  ;;  %s361_s27 = scalar_lea.vmem %s898_s8, %s829_s14  ;;  %s485_s21 = sshll.u32 %s349_s17, 4  ;;  %s486_s21 = int_to_ptr.vmem [resolvable:$true] %s485_s21 }
  0x1b   : > { %398 = vmatpush.bf16.msra.mxu0 %v603_v2  ;;  %v370_v5 = vpack.c.bf16 %v369_v4, %v369_v4  ;;  %v363_v6 = vld [vmem:[%s353_s24] sm:$0xff]  ;;  %647 = vrsqrt.f32 %v438_v9  ;;  %vm445_vm1 = vweird.f32 %v438_v9  ;;  %s598_s24 = sshll.u32 %s788_s13, 3  ;;  %s473_s13 = scalar_lea.sflag [#allocation3], %s347_s22 }
  0x1c   : > { %426 = vmatpush.bf16.msra.mxu1 %v601_v3  ;;  %v364_v7 = vpack.c.bf16 %v363_v6, %v363_v6  ;;  %v645_v23 = vld [vmem:[%s894_s4] ss:$0 sm:$0xff]  ;;  %s483_s16 = scalar_lea.hbm %s899_s9, %s598_s24 }
  0x1d   : > { %v646_v25 = vld [vmem:[%s895_s5] ss:$0 sm:$0xff]  ;;  %s487_s0 = sshll.u32 %s483_s16, 4  ;;  %s488_s0 = int_to_ptr.hbm [resolvable:$true] %s487_s0 }
  0x1e   : > { %587 = vmatmul.msk.bf16.vlgmr.msra.gmra.mxu0 %vm387_vm0, %v370_v5  ;;  %v469_v35 = vld [vmem:[%s361_s27] sm:$0xff]  ;;  %s667_s1 = sshra.s32 %s488_s0, 4  ;;  %s668_s1 = int_to_ptr.hbm [resolvable:$true] %s667_s1 }
  0x1f   : > { %596 = vmatmul.msk.bf16.vlgmr.msra.gmra.mxu1 %vm387_vm0, %v364_v7  ;;  %s669_s14 = scalar_lea.hbm %s668_s1, 8  ;;  %p674_p0 = scmp.lt.s32.totalorder %s668_s1, %s899_s9 }
  0x20   : > { %p670_p11 = scmp.ne.s32.totalorder %s668_s1, %s669_s14  ;;  %p675_p1 = scmp.lt.s32.totalorder %s673_s23, %s669_s14 }
  0x21   : > { %v648_v10 = vpop.eup %647 }
  0x22   : > { %v440_v11 = vmul.f32 %v648_v10, %v438_v9  ;;  %vm446_vm2 = vweird.f32 %v648_v10  ;;  %p671_p12 = pnand %p670_p11, %p805_p5  ;;  %p676_p2 = por %p675_p1, %p674_p0 }
  0x23   : > { %vm447_vm3 = vmor %vm445_vm1, %vm446_vm2 }
  0x24   : > { %v441_v12 = vmul.f32 %v648_v10, %v440_v11  ;;  %p672_p13 = pneg %p671_p12 }
  0x26   : > { %v442_v13 = vmul.f32 0.5, %v441_v12  ;;  %p677_p3 = pnand %p676_p2, %p672_p13 }
  0x28   : > { %v443_v14 = vsub.f32 1.5, %v442_v13 }
  0x2a   : > { %v444_v15 = vmul.f32 %v648_v10, %v443_v14 }
  0x2c   : > { %v448_v16 = vsel %vm447_vm3, %v648_v10, %v444_v15 }
  0x2d   : > { %v450_v21 = vperm.slane %v448_v16, 0 }
  0x9b   : > { %v400_v17 = vpop.f32.mrf.mxu0 }
  0x9c   : > { %v428_v19 = vpop.f32.mrf.mxu1 }
  0x9d   : > { %v429_v20 = vadd.f32 %v428_v19, %v400_v17 }
  0x9f   : > { %v436_v22 = vsub.f32 %v429_v20, %v644_v18 }
  0xa1   : > { %v452_v24 = vmul.f32 %v450_v21, %v436_v22 }
  0xa3   : > { %v457_v26 = vmul.f32 %v645_v23, %v452_v24  ;;  %v402_v27 = vpop.f32.mrf.mxu0 }
  0xa4   : > { %v430_v28 = vpop.f32.mrf.mxu1 }
  0xa5   : > { %v462_v29 = vadd.f32 %v646_v25, %v457_v26 }
  0xa7   : > { %v463_v30 = vsub.f32 0.0, %v462_v29 }
  0xa9   : > { %v464_v31 = vmul.f32 1.442695, %v463_v30 }
  0xab   : > { %649 = vpow2.f32 %v464_v31 }
  0xb1   : > { %v650_v32 = vpop.eup %649 }
  0xb2   : > { %v466_v33 = vadd.f32 1.0, %v650_v32 }
  0xb4   : > { %651 = vrcp.f32 %v466_v33 }
  0xba   : > { %v652_v34 = vpop.eup %651 }
  0xbb   : > { %v468_v36 = vmul.f32 %v652_v34, %v462_v29 }
  0xbd   : > { %v470_v37 = vadd.f32 %v469_v35, %v468_v36 }
  0xbf   : > { %471 = vst.msk [vmem:[%s349_s17] sm:$0xff] %vm387_vm0, %v470_v37 }
  0xc0   : > { %680 = shalt.err (!%p677_p3)
}
  0xc1   : > { %605 = dma.vmem_to_hbm [thread:$0]  (%p805_p5), %s486_s21, 128, %s488_s0, %s473_s13  }
  0xc2 PF: > { %p611_p4 = scmp.ge.s32.totalorder %s715_s12, 2  ;;  %s499_s22 = sand.u32 1, %s703_s30  }
  0xc3   : > { %s500_s28 = scalar_lea.sflag [#allocation3], %s499_s22 }
  0xc4   : > { %p608_p7 = pnand %p611_p4, %p809_p6 }
  0xc6   : > { %p609_p8 = pneg %p608_p7 }
  0xc8   : > { %698 = dma.done.wait (%p609_p8), %s500_s28, 128  }
  0xc9   : > { %700 = vsyncadd (%p609_p8), %s500_s28, 4294967168  ;;  %p19_p9 = scmp.ge.s32.totalorder %s792_s15, 4   ;;  %s906_s30 = smov %s707_s10 }
  0xca   : > { %s907_s10 = smov %s711_s11  ;;  %s908_s11 = smov %s803_s18 }
  0xcb   : > { %s909_s12 = smov %s792_s15  ;;  %21 = sbr.rel (!%p19_p9) target bundleno = 6 (0x6), region = 97 }
  0xd0   :  { %506 = vsyncpa [#allocation3], 1 }
  0xd1   :  { %508 = vsyncpa [#allocation3 + $0x1], 1 }

// kernel: seperator_block.12
= control target key start
LH: loop header
LB: loop body
LE: loop exit
PB: predicated region body
PF: predicated region fallthrough
CT: control target
= control target key end

     0   :  { %s3931_s21 = smov 0   ;;  %s4748_s0 = inlined_call_operand.vmem [shape: f32[16,32], index: 0, kind: input, shape index: {}]   ;;  %s4749_s1 = inlined_call_operand.vmem [shape: f32[16,32], index: 1, kind: input, shape index: {}]   ;;  %s4750_s2 = inlined_call_operand.vmem [shape: bf16[32,32], index: 2, kind: input, shape index: {}]   ;;  %s4751_s3 = inlined_call_operand.vmem [shape: f32[1,32], index: 3, kind: input, shape index: {}]   ;;  %s4752_s4 = inlined_call_operand.vmem [shape: bf16[32,64], index: 4, kind: input, shape index: {}]   ;;  %s4753_s5 = inlined_call_operand.vmem [shape: f32[1,64], index: 5, kind: input, shape index: {}]   ;;  %s4754_s6 = inlined_call_operand.vmem [shape: bf16[32,32], index: 6, kind: input, shape index: {}]   ;;  %s4755_s7 = inlined_call_operand.vmem [shape: f32[1,32], index: 7, kind: input, shape index: {}]   ;;  %s4756_s8 = inlined_call_operand.vmem [shape: f32[1,32], index: 8, kind: input, shape index: {}]   ;;  %s4757_s9 = inlined_call_operand.vmem [shape: f32[1,32], index: 9, kind: input, shape index: {}]   ;;  %s4758_s10 = inlined_call_operand.vmem [shape: bf16[32,2048], index: 10, kind: input, shape index: {}]   ;;  %s4759_s11 = inlined_call_operand.vmem [shape: f32[1,2048], index: 11, kind: input, shape index: {}]   ;;  %s4760_s12 = inlined_call_operand.vmem [shape: bf16[2048,32], index: 12, kind: input, shape index: {}]   ;;  %s4761_s13 = inlined_call_operand.vmem [shape: f32[1,32], index: 13, kind: input, shape index: {}]   ;;  %s4762_s14 = inlined_call_operand.vmem [shape: f32[1,32], index: 14, kind: input, shape index: {}]   ;;  %s4763_s15 = inlined_call_operand.vmem [shape: f32[1,32], index: 15, kind: input, shape index: {}]   ;;  %s4764_s16 = inlined_call_operand.vmem [shape: f32[16,32], index: 16, kind: output, shape index: {}]  }
   0x1   :  { %4765 = sst [smem:[#allocation5_spill]] %s4748_s0 }
   0x2 LB: > { %s2847_s22 = sadd.s32 4294967295, %s3833_s21   ;;  %p2851_p0 = scmp.ge.s32.totalorder %s3833_s21, 1  ;;  %s3833_s21 = sphi %s3931_s21, %s26_s21  }
   0x3   : > { %p470_p1 = scmp.lt.s32.totalorder %s3833_s21, 3 }
   0x5   : > { %p471_p2 = pnand %p2851_p0, %p470_p1 }
   0x6   : > { %p522_p3 = scmp.lt.s32.totalorder (!%p471_p2), %s2847_s22, 1  ;;  %s4766_s19 = sld [smem:[#allocation5_spill]] (!%p471_p2) }
   0x7   : > { %474 = sbr.rel (%p471_p2) target bundleno = 2255 (0x8cf), region = 84  ;;  %s3835_s29 = smov (!%p471_p2), 120  }
   0x8   : > { %s3836_s30 = smov (!%p471_p2), 96   ;;  %s3837_s17 = smov (!%p471_p2), 112  }
   0x9   : > { %s3838_s18 = smov (!%p471_p2), 104   ;;  %s3841_s23 = smov (!%p471_p2), 72  }
   0xa   : > { %s3842_s24 = smov (!%p471_p2), 8  }
   0xc   : > { %v3549_v0 = vld [vmem:[%s4750_s2 + $0x8] sm:$0xff]  ;;  %v3548_v2 = vld [vmem:[%s4750_s2] sm:$0xff]  ;;  %s4768_s22 = smov (!%p522_p3, %s2847_s22), 1  ;;  %vm557_vm0 = vcmask 261120   ;;  %vm613_vm1 = vcmask 523264   ;;  %vm619_vm2 = vcmask 64512  }
   0xd   : > { %v3551_v1 = vld [vmem:[%s4752_s4 + $0x8] sm:$0xff]  ;;  %567 = vmatpush.bf16.msra.mxu0 %v3549_v0  ;;  %v3550_v3 = vld [vmem:[%s4752_s4] sm:$0xff]  ;;  %s3951_s0 = sshll.u32 %s4768_s22, 3  ;;  %vm658_vm3 = vcmask 1043456   ;;  %s3844_s22 = smov 24   ;;  %vm743_vm4 = vcmask 130112  }
   0xe   : > { %606 = vmatpush.bf16.msra.mxu1 %v3551_v1  ;;  %s525_s20 = scalar_lea.vmem %s4766_s19, %s3951_s0  ;;  %s529_s25 = scalar_lea.vmem %s4749_s1, %s3951_s0  ;;  %v3733_v8 = vld [vmem:[%s4751_s3] ss:$0 sm:$0xff]  ;;  %vm812_vm5 = vcmask 195712   ;;  %vm881_vm6 = vcmask 261312  }
   0xf   : > { %v535_v4 = vld [vmem:[%s525_s20] sm:$0xff]  ;;  %s3839_s19 = smov 88   ;;  %s3840_s20 = smov 80  }
  0x10   : > { %v536_v5 = vpack.c.bf16 %v535_v4, %v535_v4  ;;  %v575_v6 = vld [vmem:[%s529_s25] sm:$0xff]  ;;  %s3843_s25 = smov 16  }
  0x11   : > { %568 = vmatpush.bf16.msra.mxu0 %v3548_v2  ;;  %v576_v7 = vpack.c.bf16 %v575_v6, %v575_v6  ;;  %v3734_v9 = vld [vmem:[%s4753_s5] ss:$0 sm:$0xff] }
  0x12   : > { %607 = vmatpush.bf16.msra.mxu1 %v3550_v3 }
  0x14   : > { %2863 = vmatmul.msk.bf16.vlgmr.msra.gmra.mxu0 %vm557_vm0, %v536_v5 }
  0x15   : > { %2872 = vmatmul.msk.bf16.vlgmr.msra.gmra.mxu1 %vm557_vm0, %v576_v7 }
  0x91   : > { %v570_v10 = vpop.f32.mrf.mxu0 }
  0x92   : > { %v571_v11 = vadd.f32 %v3733_v8, %v570_v10  ;;  %v609_v12 = vpop.f32.mrf.mxu1 }
  0x93   : > { %v610_v13 = vadd.f32 %v3734_v9, %v609_v12 }
  0x94   : > { %574 = vst.msk [vmem:[#allocation2] sm:$0xff] %vm557_vm0, %v571_v11 }
  0x95   : > { %614 = vst.msk [vmem:[#allocation3] sm:$0xff] %vm613_vm1, %v610_v13 }
  0x99   : > { %v572_v14 = vpop.f32.mrf.mxu0 }
  0x9a   : > { %v611_v15 = vpop.f32.mrf.mxu1 }
  0x9b   : > { %v676_v16 = vld [vmem:[#allocation2] sm:$0xff] }
  0x9c   : > { %v617_v17 = vld [vmem:[#allocation3] sm:$0xff]  ;;  %v677_v18 = vpack.c.bf16 %v676_v16, %v676_v16 }
  0x9d   : > { %v3970_v19 = vpack.c.bf16 %v617_v17, %v617_v17 }
  0x9e   : > { %681 = vrot.lane.b32.xlu2 %v677_v18, %s3835_s29 }
  0x9f   : > { %653 = vrot.lane.b32.xlu1 %v3970_v19, %s3836_s30  ;;  %v624_v20 = vsel %vm619_vm2, %v3970_v19, 0 }
  0xa0   : > { %633 = vmatpush.bf16.xpose.msra.mxu2 %v624_v20 }
  0xa6   : > { %753 = vrot.lane.b32.xlu2 %v3970_v19, %s3837_s17 }
  0xa7   : > { %684 = vrot.lane.b32.xlu1 %v3970_v19, %s3835_s29  ;;  %2873 = vmatmul.msk.bf16.vlgmr.msra.gmra.mxu2 %vm619_vm2, %v677_v18  ;;  %s533_s29 = scalar_lea.vmem %s4764_s16, %s3951_s0 }
  0xae   : > { %819 = vrot.lane.b32.xlu2 %v677_v18, %s3838_s18 }
  0xaf   : > { %750 = vrot.lane.b32.xlu1 %v677_v18, %s3837_s17 }
  0xf8   : > { %v682_v21 = vpop.permute.xlu2 %681 }
 0x100   : > { %v754_v22 = vpop.permute.xlu2 %753 }
 0x101   : > { %v759_v23 = vsel %vm619_vm2, %v754_v22, 0 }
 0x102   : > { %768 = vmatpush.bf16.xpose.msrb.mxu1 %v759_v23 }
 0x108   : > { %v820_v42 = vpop.permute.xlu2 %819 }
 0x111   : > { %v654_v24 = vpop.permute.xlu1 %653 }
 0x112   : > { %v660_v25 = vsel %vm658_vm3, %v654_v24, 0 }
 0x113   : > { %669 = vmatpush.bf16.msra.mxu3 %v660_v25 }
 0x119   : > { %v685_v26 = vpop.permute.xlu1 %684 }
 0x11a   : > { %v690_v27 = vsel %vm619_vm2, %v685_v26, 0 }
 0x11b   : > { %699 = vmatpush.bf16.xpose.msrb.mxu3 %v690_v27 }
 0x121   : > { %v751_v28 = vpop.permute.xlu1 %750 }
 0x122   : > { %2877 = vmatmul.msk.bf16.vlgmr.msrb.gmra.mxu1 %vm619_vm2, %v751_v28 }
 0x12a   : > { %v635_v29 = vpop.f32.mrf.mxu2 }
 0x12b   : > { %v639_v30 = vmul.f32 0.35355338, %v635_v29 }
 0x12d   : > { %v640_v31 = vsel %vm619_vm2, %v639_v30, -inf }
 0x12e   : > { %641 = vmax.xlane.f32.xlu0 %v640_v31 }
 0x132   : > { %v637_v32 = vpop.f32.mrf.mxu2 }
 0x19f   : > { %v770_v33 = vpop.f32.mrf.mxu1 }
 0x1a0   : > { %v774_v34 = vmul.f32 0.35355338, %v770_v33 }
 0x1a1   : > { %v642_v35 = vpop.xlane.xlu0 %641 }
 0x1a2   : > { %v643_v36 = vsub.f32 %v639_v30, %v642_v35  ;;  %v775_v37 = vsel %vm619_vm2, %v774_v34, -inf  ;;  %v3552_v35 = vld [vmem:[%s4754_s6] sm:$0xff] }
 0x1a3   : > { %776 = vmax.xlane.f32.xlu2 %v775_v37 }
 0x1a4   : > { %v644_v38 = vmul.f32 1.442695, %v643_v36 }
 0x1a6   : > { %3741 = vpow2.f32 %v644_v38 }
 0x1a7   : > { %v772_v39 = vpop.f32.mrf.mxu1 }
 0x1ac   : > { %v3742_v40 = vpop.eup %3741 }
 0x1ad   : > { %v646_v41 = vsel %vm619_vm2, %v3742_v40, 0.0 }
 0x1ae   : > { %647 = vadd.xlane.f32.xlu0 %v646_v41  ;;  %v3735_v41 = vld [vmem:[%s4755_s7] ss:$0 sm:$0xff] }
 0x1c2   : > { %822 = vrot.lane.b32.xlu0 %v3970_v19, %s3838_s18 }
 0x216   : > { %v777_v43 = vpop.xlane.xlu2 %776 }
 0x217   : > { %v778_v44 = vsub.f32 %v774_v34, %v777_v43  ;;  %v3553_v34 = vld [vmem:[%s4754_s6 + $0x8] sm:$0xff] }
 0x218   : > { %914 = vmatpush.bf16.msra.mxu1 %v3553_v34  ;;  %v3564_v34 = vld [vmem:[%s4758_s10 + $0x4c] sm:$0xf0] }
 0x219   : > { %v779_v45 = vmul.f32 1.442695, %v778_v44 }
 0x21b   : > { %3743 = vpow2.f32 %v779_v45 }
 0x21c   : > { %915 = vmatpush.bf16.msra.mxu1 %v3552_v35  ;;  %v3556_v35 = vld [vmem:[%s4758_s10 + $0x14] sm:$0xf] }
 0x221   : > { %v3744_v46 = vpop.eup %3743  ;;  %v648_v47 = vpop.xlane.xlu0 %647 }
 0x222   : > { %3745 = vrcp.f32 %v648_v47  ;;  %v781_v48 = vsel %vm619_vm2, %v3744_v46, 0.0 }
 0x223   : > { %782 = vadd.xlane.f32.xlu2 %v781_v48 }
 0x228   : > { %v3746_v49 = vpop.eup %3745 }
 0x229   : > { %v650_v50 = vmul.f32 %v3746_v49, %v3742_v40 }
 0x22b   : > { %v651_v51 = vpack.c.bf16 %v650_v50, %v650_v50 }
 0x22d   : > { %2874 = vmatmul.msk.bf16.vlgmr.msra.gmra.mxu3 %vm619_vm2, %v651_v51 }
 0x234   : > { %v823_v52 = vpop.permute.xlu0 %822 }
 0x235   : > { %v828_v53 = vsel %vm619_vm2, %v823_v52, 0 }
 0x236   : > { %837 = vmatpush.bf16.xpose.msra.mxu3 %v828_v53 }
 0x23d   : > { %2875 = vmatmul.msk.bf16.vlgmr.msrb.gmra.mxu3 %vm619_vm2, %v682_v21 }
 0x24d   : > { %2879 = vmatmul.msk.bf16.vlgmr.msra.gmra.mxu3 %vm619_vm2, %v820_v42 }
 0x296   : > { %v783_v12 = vpop.xlane.xlu2 %782 }
 0x2b0   : > { %v671_v54 = vpop.f32.mrf.mxu3 }
 0x2b1   : > { %675 = vst.msk [vmem:[#allocation4] sm:$0xff] %vm619_vm2, %v671_v54 }
 0x2b8   : > { %v673_v55 = vpop.f32.mrf.mxu3 }
 0x2c0   : > { %v701_v56 = vpop.f32.mrf.mxu3 }
 0x2c1   : > { %v705_v57 = vmul.f32 0.35355338, %v701_v56 }
 0x2c3   : > { %v706_v58 = vsel %vm619_vm2, %v705_v57, -inf }
 0x2c4   : > { %707 = vmax.xlane.f32.xlu1 %v706_v58  ;;  %v2956_v58 = vld [vmem:[%s4758_s10 + $0x80] sm:$0xf] }
 0x2c8   : > { %v703_v59 = vpop.f32.mrf.mxu3 }
 0x2c9   : > { %v3578_v59 = vld [vmem:[%s4758_s10 + $0xbc] sm:$0xf0] }
 0x2d0   : > { %v839_v60 = vpop.f32.mrf.mxu3 }
 0x2d1   : > { %v843_v61 = vmul.f32 0.35355338, %v839_v60  ;;  %v3570_v60 = vld [vmem:[%s4758_s10 + $0x84] sm:$0xf] }
 0x2d3   : > { %v844_v62 = vsel %vm619_vm2, %v843_v61, -inf }
 0x2d4   : > { %845 = vmax.xlane.f32.xlu0 %v844_v62  ;;  %v2958_v62 = vld [vmem:[%s4758_s10 + $0xc0] sm:$0xf0] }
 0x2d8   : > { %v841_v63 = vpop.f32.mrf.mxu3 }
 0x2d9   : > { %v2964_v63 = vld [vmem:[%s4758_s10 + $0x88] sm:$0xf] }
 0x2dd   : > { %718 = vrot.lane.b32.xlu1 %v3970_v19, %s3839_s19 }
 0x337   : > { %v708_v0 = vpop.xlane.xlu1 %707 }
 0x338   : > { %v709_v1 = vsub.f32 %v705_v57, %v708_v0  ;;  %v3579_v0 = vld [vmem:[%s4758_s10 + $0xc4] sm:$0xf0] }
 0x33a   : > { %v710_v2 = vmul.f32 1.442695, %v709_v1  ;;  %v2961_v1 = vor.u32 %v3570_v60, %v2958_v62  ;;  %v3574_v60 = vld [vmem:[%s4758_s10 + $0xa4] sm:$0xf] }
 0x33c   : > { %3747 = vpow2.f32 %v710_v2  ;;  %v2965_v2 = vor.u32 %v3579_v0, %v2964_v63  ;;  %1211 = vmatpush.bf16.msrb.mxu3 %v2961_v1  ;;  %v3583_v63 = vld [vmem:[%s4758_s10 + $0xe4] sm:$0xf0]  ;;  %v3575_v0 = vld [vmem:[%s4758_s10 + $0xac] sm:$0xf] }
 0x33d   : > { %v2998_v1 = vld [vmem:[%s4758_s10 + $0xe8] sm:$0xf0] }
 0x342   : > { %v3748_v3 = vpop.eup %3747 }
 0x343   : > { %v712_v4 = vsel %vm619_vm2, %v3748_v3, 0.0 }
 0x344   : > { %713 = vadd.xlane.f32.xlu2 %v712_v4  ;;  %v2966_v4 = vld [vmem:[%s4758_s10 + $0xc8] sm:$0xf0] }
 0x347   : > { %v846_v5 = vpop.xlane.xlu0 %845 }
 0x348   : > { %v847_v6 = vsub.f32 %v843_v61, %v846_v5  ;;  %v2957_v61 = vor.u32 %v3578_v59, %v2956_v58  ;;  %v2988_v58 = vld [vmem:[%s4758_s10 + $0xa0] sm:$0xf] }
 0x349   : > { %v3582_v59 = vld [vmem:[%s4758_s10 + $0xdc] sm:$0xf0] }
 0x34a   : > { %v848_v7 = vmul.f32 1.442695, %v847_v6  ;;  %v2892_v6 = vld [vmem:[%s4758_s10] sm:$0xf] }
 0x34c   : > { %3749 = vpow2.f32 %v848_v7  ;;  %v3562_v7 = vld [vmem:[%s4758_s10 + $0x3c] sm:$0xf0] }
 0x34d   : > { %3751 = vrcp.f32 %v783_v12  ;;  %v3563_v12 = vld [vmem:[%s4758_s10 + $0x44] sm:$0xf0] }
 0x34f   : > { %v719_v8 = vpop.permute.xlu1 %718 }
 0x350   : > { %v724_v9 = vsel %vm658_vm3, %v719_v8, 0  ;;  %v3554_v8 = vld [vmem:[%s4758_s10 + $0x4] sm:$0xf] }
 0x351   : > { %733 = vmatpush.bf16.msrb.mxu0 %v724_v9  ;;  %v2893_v9 = vor.u32 %v3562_v7, %v2892_v6  ;;  %v3566_v6 = vld [vmem:[%s4758_s10 + $0x5c] sm:$0xf0] }
 0x352   : > { %v3750_v10 = vpop.eup %3749 }
 0x353   : > { %v850_v11 = vsel %vm619_vm2, %v3750_v10, 0.0  ;;  %v3752_v14 = vpop.eup %3751 }
 0x354   : > { %851 = vadd.xlane.f32.xlu0 %v850_v11  ;;  %v785_v16 = vmul.f32 %v3752_v14, %v3744_v46  ;;  %v3845_v46 = vmov 32.0   ;;  %v2900_v11 = vld [vmem:[%s4758_s10 + $0x8] sm:$0xf] }
 0x355   : > { %v2901_v14 = vor.u32 %v3563_v12, %v2900_v11  ;;  %v2932_v11 = vld [vmem:[%s4758_s10 + $0x28] sm:$0xf] }
 0x356   : > { %v786_v22 = vpack.c.bf16 %v785_v16, %v785_v16  ;;  %v2902_v16 = vld [vmem:[%s4758_s10 + $0x48] sm:$0xf0]  ;;  %v3567_v12 = vld [vmem:[%s4758_s10 + $0x64] sm:$0xf0] }
 0x35c   : > { %787 = vrot.lane.b32.xlu2 %v3970_v19, %s3840_s20 }
 0x368   : > { %856 = vrot.lane.b32.xlu0 %v3970_v19, %s3841_s23 }
 0x3b7   : > { %v714_v13 = vpop.xlane.xlu2 %713 }
 0x3b8   : > { %3753 = vrcp.f32 %v714_v13 }
 0x3be   : > { %v3754_v15 = vpop.eup %3753 }
 0x3bf   : > { %v716_v17 = vmul.f32 %v3754_v15, %v3748_v3  ;;  %v788_v18 = vpop.permute.xlu2 %787  ;;  %v3571_v3 = vld [vmem:[%s4758_s10 + $0x8c] sm:$0xf] }
 0x3c0   : > { %v793_v20 = vsel %vm658_vm3, %v788_v18, 0  ;;  %v2969_v5 = vor.u32 %v3571_v3, %v2966_v4  ;;  %v3555_v15 = vld [vmem:[%s4758_s10 + $0xc] sm:$0xf]  ;;  %v2989_v3 = vor.u32 %v3582_v59, %v2988_v58  ;;  %v3614_v58 = vld [vmem:[%s4760_s12 + $0xe0] sm:$0xff] }
 0x3c1   : > { %802 = vmatpush.bf16.msrb.mxu2 %v793_v20  ;;  %v717_v21 = vpack.c.bf16 %v716_v17, %v716_v17  ;;  %v2905_v17 = vor.u32 %v3555_v15, %v2902_v16  ;;  %v2972_v20 = vld [vmem:[%s4758_s10 + $0x90] sm:$0xf]  ;;  %v3590_v59 = vld [vmem:[%s4760_s12 + $0x20] sm:$0xff] }
 0x3c2   : > { %1237 = vmatpush.bf16.msrb.mxu1 %v2969_v5  ;;  %v2924_v5 = vld [vmem:[%s4758_s10 + $0x20] sm:$0xf] }
 0x3c3   : > { %2876 = vmatmul.msk.bf16.vlgmr.msrb.gmra.mxu0 %vm619_vm2, %v717_v21  ;;  %v3580_v21 = vld [vmem:[%s4758_s10 + $0xcc] sm:$0xf0]  ;;  %v2925_v15 = vor.u32 %v3566_v6, %v2924_v5  ;;  %v3603_v5 = vld [vmem:[%s4760_s12 + $0x88] sm:$0xff] }
 0x3c4   : > { %2878 = vmatmul.msk.bf16.vlgmr.msrb.gmra.mxu2 %vm619_vm2, %v786_v22  ;;  %v3572_v22 = vld [vmem:[%s4758_s10 + $0x94] sm:$0xf]  ;;  %v3611_v6 = vld [vmem:[%s4760_s12 + $0xc8] sm:$0xff] }
 0x3c5   : > { %1198 = vmatpush.bf16.msra.mxu2 %v2957_v61  ;;  %v2990_v61 = vld [vmem:[%s4758_s10 + $0xe0] sm:$0xf0] }
 0x3c6   : > { %1238 = vmatpush.bf16.msrb.mxu1 %v2905_v17  ;;  %v2993_v4 = vor.u32 %v3574_v60, %v2990_v61  ;;  %v2933_v17 = vor.u32 %v3567_v12, %v2932_v11  ;;  %v3598_v60 = vld [vmem:[%s4760_s12 + $0x60] sm:$0xff]  ;;  %v3605_v61 = vld [vmem:[%s4760_s12 + $0x98] sm:$0xff] }
 0x3c7   : > { %v852_v23 = vpop.xlane.xlu0 %851  ;;  %v3641_v11 = vld [vmem:[%s4760_s12 + $0x1b8] sm:$0xff] }
 0x3c8   : > { %3755 = vrcp.f32 %v852_v23  ;;  %v3649_v12 = vld [vmem:[%s4760_s12 + $0x1f8] sm:$0xff] }
 0x3c9   : > { %3757 = vrcp.f32 %v3845_v46  ;;  %1199 = vmatpush.bf16.msra.mxu2 %v2893_v9  ;;  %v3558_v9 = vld [vmem:[%s4758_s10 + $0x24] sm:$0xf] }
 0x3ce   : > { %v3756_v19 = vpop.eup %3755 }
 0x3cf   : > { %v854_v24 = vmul.f32 %v3756_v19, %v3750_v10  ;;  %v3758_v47 = vpop.eup %3757  ;;  %v2894_v10 = vld [vmem:[%s4758_s10 + $0x40] sm:$0xf0]  ;;  %v2973_v19 = vor.u32 %v3580_v21, %v2972_v20  ;;  %v3004_v20 = vld [vmem:[%s4758_s10 + $0xb0] sm:$0xf] }
 0x3d0   : > { %v927_v48 = vmul.f32 32.0, %v3758_v47  ;;  %vm931_vm7 = vweird.f32 %v3758_v47  ;;  %v2897_v13 = vor.u32 %v3554_v8, %v2894_v10  ;;  %v3001_v8 = vor.u32 %v3575_v0, %v2998_v1  ;;  %v2926_v10 = vld [vmem:[%s4758_s10 + $0x60] sm:$0xf0]  ;;  %v3584_v21 = vld [vmem:[%s4758_s10 + $0xec] sm:$0xf0]  ;;  %v3597_v0 = vld [vmem:[%s4760_s12 + $0x58] sm:$0xff] }
 0x3d1   : > { %v855_v27 = vpack.c.bf16 %v854_v24, %v854_v24  ;;  %v2974_v24 = vld [vmem:[%s4758_s10 + $0xd0] sm:$0xf0]  ;;  %1250 = vmatpush.bf16.msrb.mxu2 %v2973_v19  ;;  %v2929_v16 = vor.u32 %v3558_v9, %v2926_v10  ;;  %v3012_v19 = vld [vmem:[%s4758_s10 + $0xb8] sm:$0xf]  ;;  %v3602_v9 = vld [vmem:[%s4760_s12 + $0x80] sm:$0xff] }
 0x3d2   : > { %v928_v49 = vsub.f32 1.0, %v927_v48  ;;  %1212 = vmatpush.bf16.msrb.mxu3 %v2897_v13  ;;  %v3559_v13 = vld [vmem:[%s4758_s10 + $0x2c] sm:$0xf]  ;;  %v3604_v1 = vld [vmem:[%s4760_s12 + $0x90] sm:$0xff]  ;;  %v3610_v10 = vld [vmem:[%s4760_s12 + $0xc0] sm:$0xff] }
 0x3d4   : > { %v929_v50 = vmul.f32 %v3758_v47, %v928_v49 }
 0x3d6   : > { %v930_v51 = vadd.f32 %v3758_v47, %v929_v50 }
 0x3d8   : > { %v4018_v52 = vsel %vm931_vm7, %v3758_v47, %v930_v51  ;;  %v3736_v51 = vld [vmem:[%s4756_s8] ss:$0 sm:$0xff] }
 0x3da   : > { %v857_v25 = vpop.permute.xlu0 %856 }
 0x3db   : > { %v862_v26 = vsel %vm658_vm3, %v857_v25, 0  ;;  %v2980_v25 = vld [vmem:[%s4758_s10 + $0x98] sm:$0xf] }
 0x3dc   : > { %871 = vmatpush.bf16.msra.mxu0 %v862_v26  ;;  %v3581_v26 = vld [vmem:[%s4758_s10 + $0xd4] sm:$0xf0] }
 0x3df   : > { %2880 = vmatmul.msk.bf16.vlgmr.msra.gmra.mxu0 %vm619_vm2, %v855_v27  ;;  %v2977_v27 = vor.u32 %v3572_v22, %v2974_v24  ;;  %v3576_v22 = vld [vmem:[%s4758_s10 + $0xb4] sm:$0xf]  ;;  %v3585_v24 = vld [vmem:[%s4758_s10 + $0xf4] sm:$0xf0] }
 0x3e0   : > { %1224 = vmatpush.bf16.msrb.mxu0 %v2965_v2 }
 0x3e1   : > { %1263 = vmatpush.bf16.msra.mxu3 %v2977_v27  ;;  %v3005_v27 = vor.u32 %v3584_v21, %v3004_v20  ;;  %v3639_v20 = vld [vmem:[%s4760_s12 + $0x1a8] sm:$0xff] }
 0x3e2   : > { %v3647_v21 = vld [vmem:[%s4760_s12 + $0x1e8] sm:$0xff] }
 0x3e4   : > { %1225 = vmatpush.bf16.msrb.mxu0 %v2901_v14  ;;  %v2934_v14 = vld [vmem:[%s4758_s10 + $0x68] sm:$0xf0] }
 0x440   : > { %v735_v28 = vpop.f32.mrf.mxu0 }
 0x441   : > { %740 = vrot.lane.b32.xlu1 %v735_v28, %s3842_s24  ;;  %v2981_v28 = vor.u32 %v3581_v26, %v2980_v25  ;;  %v3577_v25 = vld [vmem:[%s4758_s10 + $0xbc] sm:$0xf] }
 0x442   : > { %v3014_v26 = vld [vmem:[%s4758_s10 + $0xf8] sm:$0xf0] }
 0x443   : > { %1276 = vmatpush.bf16.msra.mxu0 %v2981_v28 }
 0x447   : > { %v804_v29 = vpop.f32.mrf.mxu2 }
 0x448   : > { %v737_v30 = vpop.f32.mrf.mxu0 }
 0x449   : > { %809 = vrot.lane.b32.xlu1 %v804_v29, %s3843_s25  ;;  %v3573_v29 = vld [vmem:[%s4758_s10 + $0x9c] sm:$0xf] }
 0x44a   : > { %v2982_v30 = vld [vmem:[%s4758_s10 + $0xd8] sm:$0xf0] }
 0x44f   : > { %v806_v31 = vpop.f32.mrf.mxu2 }
 0x450   : > { %v2908_v31 = vld [vmem:[%s4758_s10 + $0x10] sm:$0xf] }
 0x45c   : > { %v873_v32 = vpop.f32.mrf.mxu0 }
 0x45d   : > { %878 = vrot.lane.b32.xlu2 %v873_v32, %s3844_s22 }
 0x464   : > { %v875_v33 = vpop.f32.mrf.mxu0 }
 0x465   : > { %v2985_v33 = vor.u32 %v3573_v29, %v2982_v30  ;;  %v2940_v29 = vld [vmem:[%s4758_s10 + $0x30] sm:$0xf] }
 0x466   : > { %v3568_v30 = vld [vmem:[%s4758_s10 + $0x6c] sm:$0xf0] }
 0x4b3   : > { %v741_v36 = vpop.permute.xlu1 %740 }
 0x4b4   : > { %744 = vst.msk [vmem:[#allocation4] sm:$0xff] %vm743_vm4, %v741_v36  ;;  %v2909_v36 = vor.u32 %v3564_v34, %v2908_v31  ;;  %v3013_v31 = vor.u32 %v3585_v24, %v3012_v19  ;;  %v2942_v34 = vld [vmem:[%s4758_s10 + $0x70] sm:$0xf0]  ;;  %v3638_v19 = vld [vmem:[%s4760_s12 + $0x1a0] sm:$0xff] }
 0x4b5   : > { %v3646_v24 = vld [vmem:[%s4760_s12 + $0x1e0] sm:$0xff] }
 0x4b6   : > { %1251 = vmatpush.bf16.msrb.mxu2 %v2909_v36  ;;  %v3569_v36 = vld [vmem:[%s4758_s10 + $0x74] sm:$0xf0] }
 0x4b7   : > { %v879_v38 = vpop.permute.xlu2 %878 }
 0x4bb   : > { %v810_v37 = vpop.permute.xlu1 %809 }
 0x4bc   : > { %813 = vst.msk [vmem:[#allocation4] sm:$0xff] %vm812_vm5, %v810_v37  ;;  %v2910_v37 = vld [vmem:[%s4758_s10 + $0x50] sm:$0xf0] }
 0x4bd   : > { %882 = vst.msk [vmem:[#allocation4] sm:$0xff] %vm881_vm6, %v879_v38  ;;  %v2916_v38 = vld [vmem:[%s4758_s10 + $0x18] sm:$0xf] }
 0x4c4   : > { %v883_v39 = vld [vmem:[#allocation4] sm:$0xff] }
 0x4c5   : > { %v884_v40 = vpack.c.bf16 %v883_v39, %v883_v39  ;;  %v3565_v39 = vld [vmem:[%s4758_s10 + $0x54] sm:$0xf0] }
 0x4c7   : > { %2889 = vmatmul.msk.bf16.vlgmr.msra.gmra.mxu1 %vm557_vm0, %v884_v40  ;;  %v2913_v40 = vor.u32 %v3556_v35, %v2910_v37  ;;  %v2948_v35 = vld [vmem:[%s4758_s10 + $0x38] sm:$0xf]  ;;  %v3561_v37 = vld [vmem:[%s4758_s10 + $0x3c] sm:$0xf] }
 0x4c8   : > { %1289 = vmatpush.bf16.msra.mxu1 %v2985_v33  ;;  %v3560_v33 = vld [vmem:[%s4758_s10 + $0x34] sm:$0xf] }
 0x4c9   : > { %1264 = vmatpush.bf16.msra.mxu3 %v2913_v40  ;;  %v2945_v40 = vor.u32 %v3560_v33, %v2942_v34  ;;  %v3621_v33 = vld [vmem:[%s4760_s12 + $0x118] sm:$0xff] }
 0x4ca   : > { %v3629_v34 = vld [vmem:[%s4760_s12 + $0x158] sm:$0xff] }
 0x544   : > { %v917_v42 = vpop.f32.mrf.mxu1 }
 0x545   : > { %v918_v43 = vadd.f32 %v3735_v41, %v917_v42  ;;  %v2917_v41 = vor.u32 %v3565_v39, %v2916_v38  ;;  %v3557_v42 = vld [vmem:[%s4758_s10 + $0x1c] sm:$0xf]  ;;  %v2941_v39 = vor.u32 %v3568_v30, %v2940_v29  ;;  %v3622_v29 = vld [vmem:[%s4760_s12 + $0x120] sm:$0xff] }
 0x546   : > { %v2950_v38 = vld [vmem:[%s4758_s10 + $0x78] sm:$0xf0]  ;;  %v3630_v30 = vld [vmem:[%s4760_s12 + $0x160] sm:$0xff] }
 0x547   : > { %v923_v44 = vsel %vm557_vm0, %v918_v43, 0.0  ;;  %1277 = vmatpush.bf16.msra.mxu0 %v2917_v41  ;;  %v2949_v41 = vor.u32 %v3569_v36, %v2948_v35  ;;  %v3635_v35 = vld [vmem:[%s4760_s12 + $0x188] sm:$0xff] }
 0x548   : > { %924 = vadd.xlane.f32.xlu0 %v923_v44  ;;  %v3643_v36 = vld [vmem:[%s4760_s12 + $0x1c8] sm:$0xff] }
 0x54c   : > { %v919_v45 = vpop.f32.mrf.mxu1 }
 0x5bb   : > { %v925_v53 = vpop.xlane.xlu0 %924 }
 0x5bc   : > { %v933_v54 = vmul.f32 %v4018_v52, %v925_v53 }
 0x5be   : > { %v4021_v55 = vsub.f32 %v918_v43, %v933_v54  ;;  %v2918_v43 = vld [vmem:[%s4758_s10 + $0x58] sm:$0xf0]  ;;  %v3737_v54 = vld [vmem:[%s4757_s9] ss:$0 sm:$0xff] }
 0x5bf   : > { %v2921_v44 = vor.u32 %v3557_v42, %v2918_v43  ;;  %v2953_v42 = vor.u32 %v3561_v37, %v2950_v38  ;;  %v3609_v43 = vld [vmem:[%s4760_s12 + $0xb8] sm:$0xff]  ;;  %v3620_v37 = vld [vmem:[%s4760_s12 + $0x110] sm:$0xff] }
 0x5c0   : > { %v935_v56 = vmul.f32 %v4021_v55, %v4021_v55  ;;  %v3628_v38 = vld [vmem:[%s4760_s12 + $0x150] sm:$0xff] }
 0x5c1   : > { %1290 = vmatpush.bf16.msra.mxu1 %v2921_v44  ;;  %v3617_v44 = vld [vmem:[%s4760_s12 + $0xf8] sm:$0xff] }
 0x5c2   : > { %v936_v57 = vsel %vm557_vm0, %v935_v56, 0.0 }
 0x5c3   : > { %937 = vadd.xlane.f32.xlu1 %v936_v57 }
 0x636   : > { %v938_v18 = vpop.xlane.xlu1 %937 }
 0x637   : > { %v939_v23 = vmul.f32 %v938_v18, %v4018_v52  ;;  %v2937_v18 = vor.u32 %v3559_v13, %v2934_v14  ;;  %v3640_v13 = vld [vmem:[%s4760_s12 + $0x1b0] sm:$0xff] }
 0x638   : > { %v3648_v14 = vld [vmem:[%s4760_s12 + $0x1f0] sm:$0xff] }
 0x639   : > { %v940_v32 = vadd.f32 1e-05, %v939_v23  ;;  %v3006_v23 = vld [vmem:[%s4758_s10 + $0xf0] sm:$0xf0] }
 0x63a   : > { %v3009_v28 = vor.u32 %v3576_v22, %v3006_v23  ;;  %v3624_v22 = vld [vmem:[%s4760_s12 + $0x130] sm:$0xff] }
 0x63b   : > { %3759 = vrsqrt.f32 %v940_v32  ;;  %vm947_vm9 = vweird.f32 %v940_v32  ;;  %v3632_v23 = vld [vmem:[%s4760_s12 + $0x170] sm:$0xff] }
 0x641   : > { %v3760_v45 = vpop.eup %3759 }
 0x642   : > { %v942_v46 = vmul.f32 %v3760_v45, %v940_v32  ;;  %vm948_vm8 = vweird.f32 %v3760_v45  ;;  %v3017_v32 = vor.u32 %v3577_v25, %v3014_v26  ;;  %v3623_v25 = vld [vmem:[%s4760_s12 + $0x128] sm:$0xff] }
 0x643   : > { %vm949_vm10 = vmor %vm947_vm9, %vm948_vm8  ;;  %v3631_v26 = vld [vmem:[%s4760_s12 + $0x168] sm:$0xff] }
 0x644   : > { %v943_v47 = vmul.f32 %v3760_v45, %v942_v46  ;;  %v3601_v46 = vld [vmem:[%s4760_s12 + $0x78] sm:$0xff] }
 0x646   : > { %v944_v48 = vmul.f32 0.5, %v943_v47  ;;  %v3608_v47 = vld [vmem:[%s4760_s12 + $0xb0] sm:$0xff] }
 0x648   : > { %v945_v49 = vsub.f32 1.5, %v944_v48  ;;  %v3616_v48 = vld [vmem:[%s4760_s12 + $0xf0] sm:$0xff] }
 0x64a   : > { %v946_v50 = vmul.f32 %v3760_v45, %v945_v49  ;;  %v3592_v49 = vld [vmem:[%s4760_s12 + $0x30] sm:$0xff] }
 0x64c   : > { %v950_v53 = vsel %vm949_vm10, %v3760_v45, %v946_v50  ;;  %v3593_v45 = vld [vmem:[%s4760_s12 + $0x38] sm:$0xff]  ;;  %v3600_v50 = vld [vmem:[%s4760_s12 + $0x70] sm:$0xff] }
 0x64d   : > { %v951_v56 = vmul.f32 %v950_v53, %v4021_v55  ;;  %v2996_v55 = vld [vmem:[%s4758_s10 + $0xa8] sm:$0xf] }
 0x64e   : > { %v2997_v7 = vor.u32 %v3583_v63, %v2996_v55  ;;  %v3615_v53 = vld [vmem:[%s4760_s12 + $0xe8] sm:$0xff]  ;;  %v3613_v55 = vld [vmem:[%s4760_s12 + $0xd8] sm:$0xff] }
 0x64f   : > { %v955_v57 = vmul.f32 %v3736_v51, %v951_v56  ;;  %v3607_v51 = vld [vmem:[%s4760_s12 + $0xa8] sm:$0xff]  ;;  %v3589_v63 = vld [vmem:[%s4760_s12 + $0x18] sm:$0xff] }
 0x650   : > { %v3599_v56 = vld [vmem:[%s4760_s12 + $0x68] sm:$0xff] }
 0x651   : > { %v4145_v62 = vadd.f32 %v3737_v54, %v955_v57  ;;  %v3591_v54 = vld [vmem:[%s4760_s12 + $0x28] sm:$0xff]  ;;  %v3606_v57 = vld [vmem:[%s4760_s12 + $0xa0] sm:$0xff] }
 0x653   : > { %v4158_v2 = vpack.c.bf16 %v4145_v62, %v4145_v62 }
 0x655   : > { %3018 = vmatmul.msk.bf16.vlgmr.msra.gmra.mxu2 %vm557_vm0, %v4158_v2  ;;  %3019 = vmatmul.msk.bf16.vlgmr.msrb.gmra.mxu3 %vm557_vm0, %v4158_v2 }
 0x656   : > { %3020 = vmatmul.msk.bf16.vlgmr.msrb.gmra.mxu0 %vm557_vm0, %v4158_v2  ;;  %3021 = vmatmul.msk.bf16.vlgmr.msrb.gmra.mxu1 %vm557_vm0, %v4158_v2 }
 0x657   : > { %1302 = vmatpush.bf16.msra.mxu2 %v2989_v3  ;;  %1315 = vmatpush.bf16.msrb.mxu3 %v2993_v4  ;;  %v3612_v3 = vld [vmem:[%s4760_s12 + $0xd0] sm:$0xff] }
 0x658   : > { %1328 = vmatpush.bf16.msrb.mxu0 %v2997_v7  ;;  %1341 = vmatpush.bf16.msrb.mxu1 %v3001_v8  ;;  %v3588_v4 = vld [vmem:[%s4760_s12 + $0x10] sm:$0xff]  ;;  %v3587_v7 = vld [vmem:[%s4760_s12 + $0x8] sm:$0xff] }
 0x659   : > { %v3595_v8 = vld [vmem:[%s4760_s12 + $0x48] sm:$0xff] }
 0x65b   : > { %1303 = vmatpush.bf16.msra.mxu2 %v2925_v15  ;;  %1316 = vmatpush.bf16.msrb.mxu3 %v2929_v16  ;;  %v3586_v15 = vld [vmem:[%s4760_s12] sm:$0xff] }
 0x65c   : > { %1329 = vmatpush.bf16.msrb.mxu0 %v2933_v17  ;;  %1342 = vmatpush.bf16.msrb.mxu1 %v2937_v18  ;;  %v3594_v16 = vld [vmem:[%s4760_s12 + $0x40] sm:$0xff]  ;;  %v3625_v17 = vld [vmem:[%s4760_s12 + $0x138] sm:$0xff] }
 0x65d   : > { %v3633_v18 = vld [vmem:[%s4760_s12 + $0x178] sm:$0xff] }
 0x665   : > { %3022 = vmatmul.msk.bf16.vlgmr.msrb.gmra.mxu2 %vm557_vm0, %v4158_v2  ;;  %3023 = vmatmul.msk.bf16.vlgmr.msra.gmra.mxu3 %vm557_vm0, %v4158_v2 }
 0x666   : > { %3024 = vmatmul.msk.bf16.vlgmr.msra.gmra.mxu0 %vm557_vm0, %v4158_v2  ;;  %3025 = vmatmul.msk.bf16.vlgmr.msra.gmra.mxu1 %vm557_vm0, %v4158_v2 }
 0x667   : > { %1354 = vmatpush.bf16.msrb.mxu2 %v3005_v27  ;;  %1367 = vmatpush.bf16.msra.mxu3 %v3009_v28  ;;  %v3637_v27 = vld [vmem:[%s4760_s12 + $0x198] sm:$0xff] }
 0x668   : > { %1380 = vmatpush.bf16.msra.mxu0 %v3013_v31  ;;  %1393 = vmatpush.bf16.msra.mxu1 %v3017_v32  ;;  %v3645_v28 = vld [vmem:[%s4760_s12 + $0x1d8] sm:$0xff]  ;;  %v3636_v31 = vld [vmem:[%s4760_s12 + $0x190] sm:$0xff] }
 0x669   : > { %v3644_v32 = vld [vmem:[%s4760_s12 + $0x1d0] sm:$0xff] }
 0x66b   : > { %1355 = vmatpush.bf16.msrb.mxu2 %v2941_v39  ;;  %1368 = vmatpush.bf16.msra.mxu3 %v2945_v40  ;;  %v3634_v39 = vld [vmem:[%s4760_s12 + $0x180] sm:$0xff] }
 0x66c   : > { %1381 = vmatpush.bf16.msra.mxu0 %v2949_v41  ;;  %1394 = vmatpush.bf16.msra.mxu1 %v2953_v42  ;;  %v3642_v40 = vld [vmem:[%s4760_s12 + $0x1c0] sm:$0xff]  ;;  %v3619_v42 = vld [vmem:[%s4760_s12 + $0x108] sm:$0xff] }
 0x66d   : > { %v4447_v41 = vld [vmem:[%s4759_s11] sm:$0xff] }
 0x675   : > { %3026 = vmatmul.msk.bf16.vlgmr.msra.gmra.mxu2 %vm557_vm0, %v4158_v2  ;;  %3027 = vmatmul.msk.bf16.vlgmr.msrb.gmra.mxu3 %vm557_vm0, %v4158_v2 }
 0x676   : > { %3028 = vmatmul.msk.bf16.vlgmr.msrb.gmra.mxu0 %vm557_vm0, %v4158_v2  ;;  %3029 = vmatmul.msk.bf16.vlgmr.msrb.gmra.mxu1 %vm557_vm0, %v4158_v2 }
 0x677   : > { %2566 = vmatpush.bf16.msrb.mxu0 %v3609_v43  ;;  %2579 = vmatpush.bf16.msrb.mxu1 %v3617_v44  ;;  %v3627_v43 = vld [vmem:[%s4760_s12 + $0x148] sm:$0xff]  ;;  %v999_v44 = vperm.slane %v4447_v41, 2 }
 0x678   : > { %2540 = vmatpush.bf16.msra.mxu2 %v3593_v45  ;;  %2553 = vmatpush.bf16.msrb.mxu3 %v3601_v46  ;;  %v1000_v45 = vperm.slane %v4447_v41, 3 }
 0x67b   : > { %2567 = vmatpush.bf16.msrb.mxu0 %v3608_v47  ;;  %2580 = vmatpush.bf16.msrb.mxu1 %v3616_v48  ;;  %v3618_v48 = vld [vmem:[%s4760_s12 + $0x100] sm:$0xff] }
 0x67c   : > { %2541 = vmatpush.bf16.msra.mxu2 %v3592_v49  ;;  %2554 = vmatpush.bf16.msrb.mxu3 %v3600_v50  ;;  %v3626_v49 = vld [vmem:[%s4760_s12 + $0x140] sm:$0xff] }
 0x67f   : > { %2568 = vmatpush.bf16.msrb.mxu0 %v3607_v51  ;;  %2581 = vmatpush.bf16.msrb.mxu1 %v3615_v53  ;;  %v997_v53 = vperm.slane %v4447_v41, 0 }
 0x680   : > { %2542 = vmatpush.bf16.msra.mxu2 %v3591_v54  ;;  %2555 = vmatpush.bf16.msrb.mxu3 %v3599_v56  ;;  %v998_v54 = vperm.slane %v4447_v41, 1 }
 0x683   : > { %2569 = vmatpush.bf16.msrb.mxu0 %v3606_v57  ;;  %2582 = vmatpush.bf16.msrb.mxu1 %v3614_v58 }
 0x684   : > { %2543 = vmatpush.bf16.msra.mxu2 %v3590_v59  ;;  %2556 = vmatpush.bf16.msrb.mxu3 %v3598_v60 }
 0x685   : > { %3030 = vmatmul.msk.bf16.vlgmr.msrb.gmra.mxu2 %vm557_vm0, %v4158_v2  ;;  %3031 = vmatmul.msk.bf16.vlgmr.msra.gmra.mxu3 %vm557_vm0, %v4158_v2 }
 0x686   : > { %3032 = vmatmul.msk.bf16.vlgmr.msra.gmra.mxu0 %vm557_vm0, %v4158_v2  ;;  %3033 = vmatmul.msk.bf16.vlgmr.msra.gmra.mxu1 %vm557_vm0, %v4158_v2  ;;  %v3596_v2 = vld [vmem:[%s4760_s12 + $0x50] sm:$0xff] }
 0x687   : > { %2570 = vmatpush.bf16.msrb.mxu0 %v3605_v61  ;;  %2583 = vmatpush.bf16.msrb.mxu1 %v3613_v55 }
 0x688   : > { %2544 = vmatpush.bf16.msra.mxu2 %v3589_v63  ;;  %2557 = vmatpush.bf16.msrb.mxu3 %v3597_v0 }
 0x68b   : > { %2571 = vmatpush.bf16.msrb.mxu0 %v3604_v1  ;;  %2584 = vmatpush.bf16.msrb.mxu1 %v3612_v3 }
 0x68c   : > { %2545 = vmatpush.bf16.msra.mxu2 %v3588_v4  ;;  %2558 = vmatpush.bf16.msrb.mxu3 %v3596_v2 }
 0x68f   : > { %2572 = vmatpush.bf16.msrb.mxu0 %v3603_v5  ;;  %2585 = vmatpush.bf16.msrb.mxu1 %v3611_v6 }
 0x690   : > { %2546 = vmatpush.bf16.msra.mxu2 %v3587_v7  ;;  %2559 = vmatpush.bf16.msrb.mxu3 %v3595_v8 }
 0x693   : > { %2573 = vmatpush.bf16.msrb.mxu0 %v3602_v9  ;;  %2586 = vmatpush.bf16.msrb.mxu1 %v3610_v10  ;;  %v1003_v9 = vperm.slane %v4447_v41, 6  ;;  %v1004_v10 = vperm.slane %v4447_v41, 7 }
 0x694   : > { %2547 = vmatpush.bf16.msra.mxu2 %v3586_v15  ;;  %2560 = vmatpush.bf16.msrb.mxu3 %v3594_v16 }
 0x697   : > { %2618 = vmatpush.bf16.msra.mxu0 %v3641_v11  ;;  %2631 = vmatpush.bf16.msra.mxu1 %v3649_v12 }
 0x698   : > { %2592 = vmatpush.bf16.msrb.mxu2 %v3625_v17  ;;  %2605 = vmatpush.bf16.msra.mxu3 %v3633_v18 }
 0x69b   : > { %2619 = vmatpush.bf16.msra.mxu0 %v3640_v13  ;;  %2632 = vmatpush.bf16.msra.mxu1 %v3648_v14 }
 0x69c   : > { %2593 = vmatpush.bf16.msrb.mxu2 %v3624_v22  ;;  %2606 = vmatpush.bf16.msra.mxu3 %v3632_v23 }
 0x69f   : > { %2620 = vmatpush.bf16.msra.mxu0 %v3639_v20  ;;  %2633 = vmatpush.bf16.msra.mxu1 %v3647_v21  ;;  %v1001_v20 = vperm.slane %v4447_v41, 4  ;;  %v1002_v21 = vperm.slane %v4447_v41, 5 }
 0x6a0   : > { %2594 = vmatpush.bf16.msrb.mxu2 %v3623_v25  ;;  %2607 = vmatpush.bf16.msra.mxu3 %v3631_v26 }
 0x6a3   : > { %2621 = vmatpush.bf16.msra.mxu0 %v3638_v19  ;;  %2634 = vmatpush.bf16.msra.mxu1 %v3646_v24 }
 0x6a4   : > { %2595 = vmatpush.bf16.msrb.mxu2 %v3622_v29  ;;  %2608 = vmatpush.bf16.msra.mxu3 %v3630_v30 }
 0x6a7   : > { %2622 = vmatpush.bf16.msra.mxu0 %v3637_v27  ;;  %2635 = vmatpush.bf16.msra.mxu1 %v3645_v28 }
 0x6a8   : > { %2596 = vmatpush.bf16.msrb.mxu2 %v3621_v33  ;;  %2609 = vmatpush.bf16.msra.mxu3 %v3629_v34 }
 0x6ab   : > { %2623 = vmatpush.bf16.msra.mxu0 %v3636_v31  ;;  %2636 = vmatpush.bf16.msra.mxu1 %v3644_v32 }
 0x6ac   : > { %2597 = vmatpush.bf16.msrb.mxu2 %v3620_v37  ;;  %2610 = vmatpush.bf16.msra.mxu3 %v3628_v38 }
 0x6af   : > { %2624 = vmatpush.bf16.msra.mxu0 %v3635_v35  ;;  %2637 = vmatpush.bf16.msra.mxu1 %v3643_v36 }
 0x6b0   : > { %2598 = vmatpush.bf16.msrb.mxu2 %v3619_v42  ;;  %2611 = vmatpush.bf16.msra.mxu3 %v3627_v43  ;;  %v3681_v42 = vld [vmem:[%s4760_s12 + $0x2f8] sm:$0xff] }
 0x6b3   : > { %2625 = vmatpush.bf16.msra.mxu0 %v3634_v39  ;;  %2638 = vmatpush.bf16.msra.mxu1 %v3642_v40  ;;  %v3673_v40 = vld [vmem:[%s4760_s12 + $0x2b8] sm:$0xff] }
 0x6b4   : > { %2599 = vmatpush.bf16.msrb.mxu2 %v3618_v48  ;;  %2612 = vmatpush.bf16.msra.mxu3 %v3626_v49 }
 0x6d3   : > { %v1227_v46 = vpop.f32.mrf.mxu0  ;;  %v1240_v47 = vpop.f32.mrf.mxu1 }
 0x6d4   : > { %v1228_v50 = vadd.f32 %v1227_v46, %v999_v44  ;;  %v1241_v51 = vadd.f32 %v1240_v47, %v1000_v45  ;;  %v4493_v46 = vld [vmem:[%s4759_s11 + $0x8] sm:$0xff] }
 0x6d6   : > { %v1402_v56 = vsub.f32 0.0, %v1228_v50  ;;  %v1403_v57 = vsub.f32 0.0, %v1241_v51 }
 0x6d8   : > { %v1420_v58 = vmul.f32 1.442695, %v1402_v56  ;;  %v1422_v59 = vmul.f32 1.442695, %v1403_v57  ;;  %v1201_v60 = vpop.f32.mrf.mxu2  ;;  %v1214_v61 = vpop.f32.mrf.mxu3  ;;  %v3680_v57 = vld [vmem:[%s4760_s12 + $0x2f0] sm:$0xff] }
 0x6d9   : > { %v1202_v55 = vadd.f32 %v1201_v60, %v997_v53  ;;  %v4465_v63 = vadd.f32 %v1214_v61, %v998_v54 }
 0x6da   : > { %3761 = vpow2.f32 %v1420_v58  ;;  %v1007_v58 = vperm.slane %v4493_v46, 2 }
 0x6db   : > { %3763 = vpow2.f32 %v1422_v59  ;;  %v1400_v0 = vsub.f32 0.0, %v1202_v55  ;;  %v1401_v1 = vsub.f32 0.0, %v4465_v63  ;;  %v1229_v3 = vpop.f32.mrf.mxu0  ;;  %v1242_v4 = vpop.f32.mrf.mxu1  ;;  %v1008_v59 = vperm.slane %v4493_v46, 3 }
 0x6dd   : > { %v1416_v2 = vmul.f32 1.442695, %v1400_v0  ;;  %v1418_v5 = vmul.f32 1.442695, %v1401_v1  ;;  %v3657_v0 = vld [vmem:[%s4760_s12 + $0x238] sm:$0xff] }
 0x6df   : > { %3765 = vpow2.f32 %v1416_v2 }
 0x6e0   : > { %v3762_v6 = vpop.eup %3761  ;;  %3767 = vpow2.f32 %v1418_v5  ;;  %v1203_v7 = vpop.f32.mrf.mxu2  ;;  %v3671_v5 = vld [vmem:[%s4760_s12 + $0x2a8] sm:$0xff] }
 0x6e1   : > { %v1216_v8 = vpop.f32.mrf.mxu3  ;;  %v3764_v11 = vpop.eup %3763  ;;  %v1450_v12 = vadd.f32 1.0, %v3762_v6 }
 0x6e2   : > { %v1451_v13 = vadd.f32 1.0, %v3764_v11  ;;  %v3679_v8 = vld [vmem:[%s4760_s12 + $0x2e8] sm:$0xff]  ;;  %v3664_v11 = vld [vmem:[%s4760_s12 + $0x270] sm:$0xff] }
 0x6e3   : > { %3769 = vrcp.f32 %v1450_v12  ;;  %v1279_v14 = vpop.f32.mrf.mxu0  ;;  %v1292_v15 = vpop.f32.mrf.mxu1  ;;  %v1005_v12 = vperm.slane %v4493_v46, 0 }
 0x6e4   : > { %3771 = vrcp.f32 %v1451_v13  ;;  %v4470_v16 = vadd.f32 %v1279_v14, %v1003_v9  ;;  %v4472_v17 = vadd.f32 %v1292_v15, %v1004_v10  ;;  %v3656_v10 = vld [vmem:[%s4760_s12 + $0x230] sm:$0xff]  ;;  %v1006_v13 = vperm.slane %v4493_v46, 1 }
 0x6e5   : > { %v3766_v18 = vpop.eup %3765 }
 0x6e6   : > { %v3768_v22 = vpop.eup %3767  ;;  %v1448_v23 = vadd.f32 1.0, %v3766_v18  ;;  %v1406_v19 = vsub.f32 0.0, %v4470_v16  ;;  %v1407_v24 = vsub.f32 0.0, %v4472_v17 }
 0x6e7   : > { %v1449_v25 = vadd.f32 1.0, %v3768_v22  ;;  %v3670_v22 = vld [vmem:[%s4760_s12 + $0x2a0] sm:$0xff] }
 0x6e8   : > { %3773 = vrcp.f32 %v1448_v23  ;;  %v1428_v26 = vmul.f32 1.442695, %v1406_v19  ;;  %v1430_v27 = vmul.f32 1.442695, %v1407_v24  ;;  %v1253_v28 = vpop.f32.mrf.mxu2 }
 0x6e9   : > { %v1266_v29 = vpop.f32.mrf.mxu3  ;;  %v3770_v30 = vpop.eup %3769  ;;  %3775 = vrcp.f32 %v1449_v25  ;;  %v4478_v31 = vadd.f32 %v1253_v28, %v1001_v20 }
 0x6ea   : > { %v4480_v32 = vadd.f32 %v1266_v29, %v1002_v21  ;;  %v3772_v33 = vpop.eup %3771  ;;  %v1482_v34 = vmul.f32 %v3770_v30, %v1228_v50  ;;  %3777 = vpow2.f32 %v1428_v26  ;;  %v3672_v50 = vld [vmem:[%s4760_s12 + $0x2b0] sm:$0xff]  ;;  %v3678_v26 = vld [vmem:[%s4760_s12 + $0x2e0] sm:$0xff]  ;;  %v3655_v30 = vld [vmem:[%s4760_s12 + $0x228] sm:$0xff] }
 0x6eb   : > { %v1483_v35 = vmul.f32 %v3772_v33, %v1241_v51  ;;  %3779 = vpow2.f32 %v1430_v27  ;;  %v1404_v36 = vsub.f32 0.0, %v4478_v31  ;;  %v1281_v38 = vpop.f32.mrf.mxu0  ;;  %v1294_v39 = vpop.f32.mrf.mxu1  ;;  %v3663_v33 = vld [vmem:[%s4760_s12 + $0x268] sm:$0xff] }
 0x6ec   : > { %v1405_v37 = vsub.f32 0.0, %v4480_v32  ;;  %v1498_v41 = vpack.c.bf16 %v1482_v34, %v1482_v34 }
 0x6ed   : > { %v1499_v43 = vpack.c.bf16 %v1483_v35, %v1483_v35  ;;  %v1424_v44 = vmul.f32 1.442695, %v1404_v36 }
 0x6ee   : > { %v1426_v45 = vmul.f32 1.442695, %v1405_v37  ;;  %v3774_v47 = vpop.eup %3773  ;;  %2574 = vmatmul.bf16.vlgmr.msrb.gmra.mxu0 %v1498_v41  ;;  %v3669_v41 = vld [vmem:[%s4760_s12 + $0x298] sm:$0xff] }
 0x6ef   : > { %v3776_v48 = vpop.eup %3775  ;;  %v1480_v49 = vmul.f32 %v3774_v47, %v1202_v55  ;;  %3781 = vpow2.f32 %v1424_v44  ;;  %2587 = vmatmul.bf16.vlgmr.msrb.gmra.mxu1 %v1499_v43  ;;  %2670 = vmatpush.bf16.msrb.mxu0 %v3673_v40  ;;  %v3662_v47 = vld [vmem:[%s4760_s12 + $0x260] sm:$0xff] }
 0x6f0   : > { %v3778_v51 = vpop.eup %3777  ;;  %v1481_v53 = vmul.f32 %v3776_v48, %v4465_v63  ;;  %3783 = vpow2.f32 %v1426_v45  ;;  %2683 = vmatpush.bf16.msrb.mxu1 %v3681_v42  ;;  %v1255_v54 = vpop.f32.mrf.mxu2  ;;  %v3665_v63 = vld [vmem:[%s4760_s12 + $0x278] sm:$0xff]  ;;  %v3654_v45 = vld [vmem:[%s4760_s12 + $0x220] sm:$0xff] }
 0x6f1   : > { %v1268_v56 = vpop.f32.mrf.mxu3  ;;  %v3780_v60 = vpop.eup %3779  ;;  %v1496_v61 = vpack.c.bf16 %v1480_v49, %v1480_v49  ;;  %v1454_v55 = vadd.f32 1.0, %v3778_v51  ;;  %v3668_v51 = vld [vmem:[%s4760_s12 + $0x290] sm:$0xff] }
 0x6f2   : > { %v1497_v1 = vpack.c.bf16 %v1481_v53, %v1481_v53  ;;  %v1455_v3 = vadd.f32 1.0, %v3780_v60 }
 0x6f3   : > { %3785 = vrcp.f32 %v1454_v55  ;;  %2671 = vmatpush.bf16.msrb.mxu0 %v3672_v50  ;;  %v1331_v4 = vpop.f32.mrf.mxu0  ;;  %v1344_v2 = vpop.f32.mrf.mxu1  ;;  %2548 = vmatmul.bf16.vlgmr.msra.gmra.mxu2 %v1496_v61 }
 0x6f4   : > { %3787 = vrcp.f32 %v1455_v3  ;;  %2684 = vmatpush.bf16.msrb.mxu1 %v3680_v57  ;;  %v4513_v6 = vadd.f32 %v1331_v4, %v1007_v58  ;;  %v4515_v7 = vadd.f32 %v1344_v2, %v1008_v59  ;;  %2561 = vmatmul.bf16.vlgmr.msrb.gmra.mxu3 %v1497_v1  ;;  %v3676_v58 = vld [vmem:[%s4760_s12 + $0x2d0] sm:$0xff]  ;;  %v1012_v59 = vperm.slane %v4493_v46, 7  ;;  %v3667_v2 = vld [vmem:[%s4760_s12 + $0x288] sm:$0xff] }
 0x6f5   : > { %v3782_v9 = vpop.eup %3781  ;;  %2644 = vmatpush.bf16.msra.mxu2 %v3657_v0  ;;  %2657 = vmatpush.bf16.msrb.mxu3 %v3665_v63  ;;  %v3661_v0 = vld [vmem:[%s4760_s12 + $0x258] sm:$0xff] }
 0x6f6   : > { %v3784_v14 = vpop.eup %3783  ;;  %v1452_v15 = vadd.f32 1.0, %v3782_v9  ;;  %v1410_v18 = vsub.f32 0.0, %v4513_v6  ;;  %v1411_v20 = vsub.f32 0.0, %v4515_v7  ;;  %v3675_v9 = vld [vmem:[%s4760_s12 + $0x2c8] sm:$0xff] }
 0x6f7   : > { %v1453_v21 = vadd.f32 1.0, %v3784_v14  ;;  %2672 = vmatpush.bf16.msrb.mxu0 %v3671_v5 }
 0x6f8   : > { %3789 = vrcp.f32 %v1452_v15  ;;  %v1436_v23 = vmul.f32 1.442695, %v1410_v18  ;;  %v1438_v19 = vmul.f32 1.442695, %v1411_v20  ;;  %2685 = vmatpush.bf16.msrb.mxu1 %v3679_v8  ;;  %v1305_v24 = vpop.f32.mrf.mxu2  ;;  %v1010_v18 = vperm.slane %v4493_v46, 5 }
 0x6f9   : > { %v1318_v25 = vpop.f32.mrf.mxu3  ;;  %v3786_v27 = vpop.eup %3785  ;;  %3791 = vrcp.f32 %v1453_v21  ;;  %2645 = vmatpush.bf16.msra.mxu2 %v3656_v10  ;;  %2658 = vmatpush.bf16.msrb.mxu3 %v3664_v11  ;;  %v4536_v28 = vadd.f32 %v1305_v24, %v1005_v12  ;;  %v3652_v11 = vld [vmem:[%s4760_s12 + $0x210] sm:$0xff] }
 0x6fa   : > { %v4538_v29 = vadd.f32 %v1318_v25, %v1006_v13  ;;  %v3788_v34 = vpop.eup %3787  ;;  %v1486_v35 = vmul.f32 %v3786_v27, %v4470_v16  ;;  %3793 = vpow2.f32 %v1436_v23  ;;  %v3677_v16 = vld [vmem:[%s4760_s12 + $0x2d8] sm:$0xff]  ;;  %v3660_v12 = vld [vmem:[%s4760_s12 + $0x250] sm:$0xff]  ;;  %v1009_v13 = vperm.slane %v4493_v46, 4  ;;  %v3674_v25 = vld [vmem:[%s4760_s12 + $0x2c0] sm:$0xff] }
 0x6fb   : > { %v1487_v36 = vmul.f32 %v3788_v34, %v4472_v17  ;;  %3795 = vpow2.f32 %v1438_v19  ;;  %v1408_v37 = vsub.f32 0.0, %v4536_v28  ;;  %2673 = vmatpush.bf16.msrb.mxu0 %v3670_v22  ;;  %v1333_v39 = vpop.f32.mrf.mxu0  ;;  %v1346_v40 = vpop.f32.mrf.mxu1  ;;  %v3666_v22 = vld [vmem:[%s4760_s12 + $0x280] sm:$0xff] }
 0x6fc   : > { %v1409_v38 = vsub.f32 0.0, %v4538_v29  ;;  %v1502_v42 = vpack.c.bf16 %v1486_v35, %v1486_v35  ;;  %2686 = vmatpush.bf16.msrb.mxu1 %v3678_v26 }
 0x6fd   : > { %v1503_v43 = vpack.c.bf16 %v1487_v36, %v1487_v36  ;;  %v1432_v17 = vmul.f32 1.442695, %v1408_v37  ;;  %2646 = vmatpush.bf16.msra.mxu2 %v3655_v30  ;;  %2659 = vmatpush.bf16.msrb.mxu3 %v3663_v33  ;;  %v3713_v30 = vld [vmem:[%s4760_s12 + $0x3f8] sm:$0xff]  ;;  %v3651_v33 = vld [vmem:[%s4760_s12 + $0x208] sm:$0xff] }
 0x6fe   : > { %v1434_v44 = vmul.f32 1.442695, %v1409_v38  ;;  %v3790_v48 = vpop.eup %3789  ;;  %2626 = vmatmul.bf16.vlgmr.msra.gmra.mxu0 %v1502_v42  ;;  %v3659_v37 = vld [vmem:[%s4760_s12 + $0x248] sm:$0xff] }
 0x6ff   : > { %v3792_v49 = vpop.eup %3791  ;;  %v1484_v50 = vmul.f32 %v3790_v48, %v4478_v31  ;;  %3797 = vpow2.f32 %v1432_v17  ;;  %2639 = vmatmul.bf16.vlgmr.msra.gmra.mxu1 %v1503_v43  ;;  %2674 = vmatpush.bf16.msrb.mxu0 %v3669_v41  ;;  %v1011_v31 = vperm.slane %v4493_v46, 6  ;;  %v3705_v46 = vld [vmem:[%s4760_s12 + $0x3b8] sm:$0xff]  ;;  %v3658_v48 = vld [vmem:[%s4760_s12 + $0x240] sm:$0xff] }
 0x700   : > { %v3794_v53 = vpop.eup %3793  ;;  %v1485_v54 = vmul.f32 %v3792_v49, %v4480_v32  ;;  %3799 = vpow2.f32 %v1434_v44  ;;  %2687 = vmatpush.bf16.msrb.mxu1 %v3677_v16  ;;  %v1307_v56 = vpop.f32.mrf.mxu2  ;;  %v3653_v32 = vld [vmem:[%s4760_s12 + $0x218] sm:$0xff]  ;;  %v3650_v44 = vld [vmem:[%s4760_s12 + $0x200] sm:$0xff] }
 0x701   : > { %v1320_v57 = vpop.f32.mrf.mxu3  ;;  %v3796_v60 = vpop.eup %3795  ;;  %v1500_v61 = vpack.c.bf16 %v1484_v50, %v1484_v50  ;;  %v1458_v55 = vadd.f32 1.0, %v3794_v53  ;;  %2647 = vmatpush.bf16.msra.mxu2 %v3654_v45  ;;  %2660 = vmatpush.bf16.msrb.mxu3 %v3662_v47  ;;  %v3689_v49 = vld [vmem:[%s4760_s12 + $0x338] sm:$0xff] }
 0x702   : > { %v1501_v63 = vpack.c.bf16 %v1485_v54, %v1485_v54  ;;  %v1459_v1 = vadd.f32 1.0, %v3796_v60  ;;  %v3697_v53 = vld [vmem:[%s4760_s12 + $0x378] sm:$0xff] }
 0x703   : > { %3801 = vrcp.f32 %v1458_v55  ;;  %2675 = vmatpush.bf16.msrb.mxu0 %v3668_v51  ;;  %v1383_v3 = vpop.f32.mrf.mxu0  ;;  %v1396_v4 = vpop.f32.mrf.mxu1  ;;  %2600 = vmatmul.bf16.vlgmr.msrb.gmra.mxu2 %v1500_v61  ;;  %v3696_v55 = vld [vmem:[%s4760_s12 + $0x370] sm:$0xff] }
 0x704   : > { %3803 = vrcp.f32 %v1459_v1  ;;  %2688 = vmatpush.bf16.msrb.mxu1 %v3676_v58  ;;  %v4581_v5 = vadd.f32 %v1383_v3, %v1011_v31  ;;  %v4583_v8 = vadd.f32 %v1396_v4, %v1012_v59  ;;  %2613 = vmatmul.bf16.vlgmr.msra.gmra.mxu3 %v1501_v63  ;;  %v3703_v58 = vld [vmem:[%s4760_s12 + $0x3a8] sm:$0xff]  ;;  %v3710_v63 = vld [vmem:[%s4760_s12 + $0x3e0] sm:$0xff] }
 0x705   : > { %v3798_v10 = vpop.eup %3797  ;;  %2648 = vmatpush.bf16.msra.mxu2 %v3653_v32  ;;  %2661 = vmatpush.bf16.msrb.mxu3 %v3661_v0  ;;  %v3702_v32 = vld [vmem:[%s4760_s12 + $0x3a0] sm:$0xff]  ;;  %v3687_v3 = vld [vmem:[%s4760_s12 + $0x328] sm:$0xff] }
 0x706   : > { %v3800_v14 = vpop.eup %3799  ;;  %v1456_v15 = vadd.f32 1.0, %v3798_v10  ;;  %v1414_v21 = vsub.f32 0.0, %v4581_v5  ;;  %v1415_v23 = vsub.f32 0.0, %v4583_v8  ;;  %v3695_v4 = vld [vmem:[%s4760_s12 + $0x368] sm:$0xff] }
 0x707   : > { %v1457_v20 = vadd.f32 1.0, %v3800_v14  ;;  %2676 = vmatpush.bf16.msrb.mxu0 %v3667_v2  ;;  %v3694_v14 = vld [vmem:[%s4760_s12 + $0x360] sm:$0xff] }
 0x708   : > { %3805 = vrcp.f32 %v1456_v15  ;;  %2689 = vmatpush.bf16.msrb.mxu1 %v3675_v9  ;;  %v1357_v19 = vpop.f32.mrf.mxu2  ;;  %v1444_v39 = vmul.f32 1.442695, %v1414_v21  ;;  %v1446_v16 = vmul.f32 1.442695, %v1415_v23  ;;  %v3701_v9 = vld [vmem:[%s4760_s12 + $0x398] sm:$0xff] }
 0x709   : > { %v1370_v24 = vpop.f32.mrf.mxu3  ;;  %v3802_v26 = vpop.eup %3801  ;;  %3807 = vrcp.f32 %v1457_v20  ;;  %2649 = vmatpush.bf16.msra.mxu2 %v3652_v11  ;;  %2662 = vmatpush.bf16.msrb.mxu3 %v3660_v12  ;;  %v4607_v27 = vadd.f32 %v1357_v19, %v1009_v13  ;;  %v3709_v11 = vld [vmem:[%s4760_s12 + $0x3d8] sm:$0xff]  ;;  %v3686_v12 = vld [vmem:[%s4760_s12 + $0x320] sm:$0xff]  ;;  %v3708_v20 = vld [vmem:[%s4760_s12 + $0x3d0] sm:$0xff] }
 0x70a   : > { %v3804_v34 = vpop.eup %3803  ;;  %v1490_v35 = vmul.f32 %v3802_v26, %v4513_v6  ;;  %v4616_v36 = vadd.f32 %v1370_v24, %v1010_v18  ;;  %v3704_v6 = vld [vmem:[%s4760_s12 + $0x3b0] sm:$0xff]  ;;  %3809 = vpow2.f32 %v1444_v39  ;;  %v3693_v19 = vld [vmem:[%s4760_s12 + $0x358] sm:$0xff]  ;;  %v3699_v24 = vld [vmem:[%s4760_s12 + $0x388] sm:$0xff] }
 0x70b   : > { %v1491_v38 = vmul.f32 %v3804_v34, %v4515_v7  ;;  %2677 = vmatpush.bf16.msrb.mxu0 %v3666_v22  ;;  %v1385_v40 = vpop.f32.mrf.mxu0  ;;  %v1398_v41 = vpop.f32.mrf.mxu1  ;;  %v1412_v17 = vsub.f32 0.0, %v4607_v27  ;;  %v3712_v7 = vld [vmem:[%s4760_s12 + $0x3f0] sm:$0xff]  ;;  %3811 = vpow2.f32 %v1446_v16  ;;  %v3685_v22 = vld [vmem:[%s4760_s12 + $0x318] sm:$0xff]  ;;  %v3698_v34 = vld [vmem:[%s4760_s12 + $0x380] sm:$0xff] }
 0x70c   : > { %v1506_v42 = vpack.c.bf16 %v1490_v35, %v1490_v35  ;;  %2690 = vmatpush.bf16.msrb.mxu1 %v3674_v25  ;;  %v1413_v47 = vsub.f32 0.0, %v4616_v36  ;;  %v3700_v18 = vld [vmem:[%s4760_s12 + $0x390] sm:$0xff]  ;;  %v3707_v25 = vld [vmem:[%s4760_s12 + $0x3c8] sm:$0xff] }
 0x70d   : > { %v1507_v43 = vpack.c.bf16 %v1491_v38, %v1491_v38  ;;  %2650 = vmatpush.bf16.msra.mxu2 %v3651_v33  ;;  %2663 = vmatpush.bf16.msrb.mxu3 %v3659_v37  ;;  %v1440_v59 = vmul.f32 1.442695, %v1412_v17  ;;  %v3684_v26 = vld [vmem:[%s4760_s12 + $0x310] sm:$0xff]  ;;  %v3706_v37 = vld [vmem:[%s4760_s12 + $0x3c0] sm:$0xff]  ;;  %v3683_v39 = vld [vmem:[%s4760_s12 + $0x308] sm:$0xff] }
 0x70e   : > { %v3806_v45 = vpop.eup %3805  ;;  %2678 = vmatmul.bf16.vlgmr.msrb.gmra.mxu0 %v1506_v42  ;;  %v1442_v61 = vmul.f32 1.442695, %v1413_v47  ;;  %v3692_v33 = vld [vmem:[%s4760_s12 + $0x350] sm:$0xff]  ;;  %v3691_v40 = vld [vmem:[%s4760_s12 + $0x348] sm:$0xff] }
 0x70f   : > { %2722 = vmatpush.bf16.msra.mxu0 %v3705_v46  ;;  %v3808_v50 = vpop.eup %3807  ;;  %v1488_v51 = vmul.f32 %v3806_v45, %v4536_v28  ;;  %2691 = vmatmul.bf16.vlgmr.msrb.gmra.mxu1 %v1507_v43  ;;  %v3711_v28 = vld [vmem:[%s4760_s12 + $0x3e8] sm:$0xff]  ;;  %3813 = vpow2.f32 %v1440_v59  ;;  %v3690_v43 = vld [vmem:[%s4760_s12 + $0x340] sm:$0xff] }
 0x710   : > { %2735 = vmatpush.bf16.msra.mxu1 %v3713_v30  ;;  %v1489_v54 = vmul.f32 %v3808_v50, %v4538_v29  ;;  %v1359_v56 = vpop.f32.mrf.mxu2  ;;  %v3688_v29 = vld [vmem:[%s4760_s12 + $0x330] sm:$0xff]  ;;  %v3810_v0 = vpop.eup %3809  ;;  %3815 = vpow2.f32 %v1442_v61 }
 0x711   : > { %v1372_v57 = vpop.f32.mrf.mxu3  ;;  %v1504_v31 = vpack.c.bf16 %v1488_v51, %v1488_v51  ;;  %2651 = vmatpush.bf16.msra.mxu2 %v3650_v44  ;;  %2664 = vmatpush.bf16.msrb.mxu3 %v3658_v48  ;;  %v3812_v1 = vpop.eup %3811  ;;  %v1462_v2 = vadd.f32 1.0, %v3810_v0 }
 0x712   : > { %v1505_v60 = vpack.c.bf16 %v1489_v54, %v1489_v54  ;;  %v1463_v10 = vadd.f32 1.0, %v3812_v1 }
 0x713   : > { %2723 = vmatpush.bf16.msra.mxu0 %v3704_v6  ;;  %3817 = vrcp.f32 %v1462_v2 }
 0x714   : > { %2736 = vmatpush.bf16.msra.mxu1 %v3712_v7  ;;  %2652 = vmatmul.bf16.vlgmr.msra.gmra.mxu2 %v1504_v31  ;;  %3819 = vrcp.f32 %v1463_v10  ;;  %v3738_v31 = vld [vmem:[%s4761_s13] ss:$0 sm:$0xff] }
 0x715   : > { %2696 = vmatpush.bf16.msrb.mxu2 %v3689_v49  ;;  %2709 = vmatpush.bf16.msra.mxu3 %v3697_v53  ;;  %v3814_v13 = vpop.eup %3813 }
 0x716   : > { %2665 = vmatmul.bf16.vlgmr.msrb.gmra.mxu3 %v1505_v60  ;;  %v3816_v15 = vpop.eup %3815  ;;  %v1460_v21 = vadd.f32 1.0, %v3814_v13 }
 0x717   : > { %2724 = vmatpush.bf16.msra.mxu0 %v3703_v58  ;;  %v1461_v23 = vadd.f32 1.0, %v3816_v15 }
 0x718   : > { %2737 = vmatpush.bf16.msra.mxu1 %v3711_v28  ;;  %3821 = vrcp.f32 %v1460_v21 }
 0x719   : > { %2697 = vmatpush.bf16.msrb.mxu2 %v3688_v29  ;;  %2710 = vmatpush.bf16.msra.mxu3 %v3696_v55  ;;  %v3818_v46 = vpop.eup %3817  ;;  %3823 = vrcp.f32 %v1461_v23 }
 0x71a   : > { %v3820_v30 = vpop.eup %3819  ;;  %v1494_v35 = vmul.f32 %v3818_v46, %v4581_v5 }
 0x71b   : > { %2725 = vmatpush.bf16.msra.mxu0 %v3702_v32  ;;  %v1495_v38 = vmul.f32 %v3820_v30, %v4583_v8  ;;  %v3682_v8 = vld [vmem:[%s4760_s12 + $0x300] sm:$0xff] }
 0x71c   : > { %2738 = vmatpush.bf16.msra.mxu1 %v3710_v63  ;;  %v1510_v42 = vpack.c.bf16 %v1494_v35, %v1494_v35 }
 0x71d   : > { %2698 = vmatpush.bf16.msrb.mxu2 %v3687_v3  ;;  %2711 = vmatpush.bf16.msra.mxu3 %v3695_v4  ;;  %v1511_v16 = vpack.c.bf16 %v1495_v38, %v1495_v38 }
 0x71e   : > { %v3822_v41 = vpop.eup %3821 }
 0x71f   : > { %2726 = vmatpush.bf16.msra.mxu0 %v3701_v9  ;;  %v3824_v5 = vpop.eup %3823  ;;  %v1492_v6 = vmul.f32 %v3822_v41, %v4607_v27 }
 0x720   : > { %2739 = vmatpush.bf16.msra.mxu1 %v3709_v11  ;;  %v1493_v17 = vmul.f32 %v3824_v5, %v4616_v36 }
 0x721   : > { %2699 = vmatpush.bf16.msrb.mxu2 %v3686_v12  ;;  %2712 = vmatpush.bf16.msra.mxu3 %v3694_v14  ;;  %v1508_v7 = vpack.c.bf16 %v1492_v6, %v1492_v6 }
 0x722   : > { %v1509_v44 = vpack.c.bf16 %v1493_v17, %v1493_v17 }
 0x723   : > { %2727 = vmatpush.bf16.msra.mxu0 %v3700_v18 }
 0x724   : > { %2740 = vmatpush.bf16.msra.mxu1 %v3708_v20 }
 0x725   : > { %2700 = vmatpush.bf16.msrb.mxu2 %v3685_v22  ;;  %2713 = vmatpush.bf16.msra.mxu3 %v3693_v19 }
 0x727   : > { %2728 = vmatpush.bf16.msra.mxu0 %v3699_v24 }
 0x728   : > { %2741 = vmatpush.bf16.msra.mxu1 %v3707_v25 }
 0x729   : > { %2701 = vmatpush.bf16.msrb.mxu2 %v3684_v26  ;;  %2714 = vmatpush.bf16.msra.mxu3 %v3692_v33 }
 0x72b   : > { %2729 = vmatpush.bf16.msra.mxu0 %v3698_v34 }
 0x72c   : > { %2742 = vmatpush.bf16.msra.mxu1 %v3706_v37 }
 0x72d   : > { %2702 = vmatpush.bf16.msrb.mxu2 %v3683_v39  ;;  %2715 = vmatpush.bf16.msra.mxu3 %v3691_v40 }
 0x72e   : > { %2730 = vmatmul.bf16.vlgmr.msra.gmra.mxu0 %v1510_v42 }
 0x72f   : > { %2743 = vmatmul.bf16.vlgmr.msra.gmra.mxu1 %v1511_v16 }
 0x731   : > { %2703 = vmatpush.bf16.msrb.mxu2 %v3682_v8  ;;  %2716 = vmatpush.bf16.msra.mxu3 %v3690_v43 }
 0x734   : > { %2704 = vmatmul.bf16.vlgmr.msrb.gmra.mxu2 %v1508_v7  ;;  %2717 = vmatmul.bf16.vlgmr.msra.gmra.mxu3 %v1509_v44 }
 0x76b   : > { %v2575_v45 = vpop.f32.mrf.mxu0 }
 0x76c   : > { %v2588_v47 = vpop.f32.mrf.mxu1 }
 0x773   : > { %v2577_v48 = vpop.f32.mrf.mxu0 }
 0x774   : > { %v2590_v49 = vpop.f32.mrf.mxu1  ;;  %v3739_v48 = vld [vmem:[%s4762_s14] ss:$0 sm:$0xff] }
 0x776   : > { %v2549_v27 = vpop.f32.mrf.mxu2 }
 0x777   : > { %v2562_v50 = vpop.f32.mrf.mxu3  ;;  %v2550_v28 = vadd.f32 %v3738_v31, %v2549_v27 }
 0x779   : > { %v2563_v55 = vadd.f32 %v2562_v50, %v2550_v28 }
 0x77b   : > { %v2627_v51 = vpop.f32.mrf.mxu0  ;;  %v2576_v0 = vadd.f32 %v2575_v45, %v2563_v55 }
 0x77c   : > { %v2640_v53 = vpop.f32.mrf.mxu1 }
 0x77d   : > { %v2589_v3 = vadd.f32 %v2588_v47, %v2576_v0 }
 0x77e   : > { %v2551_v54 = vpop.f32.mrf.mxu2 }
 0x77f   : > { %v2564_v56 = vpop.f32.mrf.mxu3 }
 0x783   : > { %v2629_v57 = vpop.f32.mrf.mxu0 }
 0x784   : > { %v2642_v58 = vpop.f32.mrf.mxu1 }
 0x786   : > { %v2601_v36 = vpop.f32.mrf.mxu2 }
 0x787   : > { %v2614_v59 = vpop.f32.mrf.mxu3  ;;  %v2602_v9 = vadd.f32 %v2601_v36, %v2589_v3 }
 0x789   : > { %v2615_v10 = vadd.f32 %v2614_v59, %v2602_v9 }
 0x78b   : > { %v2679_v60 = vpop.f32.mrf.mxu0  ;;  %v2628_v13 = vadd.f32 %v2627_v51, %v2615_v10 }
 0x78c   : > { %v2692_v61 = vpop.f32.mrf.mxu1 }
 0x78d   : > { %v2641_v14 = vadd.f32 %v2640_v53, %v2628_v13 }
 0x78e   : > { %v2603_v29 = vpop.f32.mrf.mxu2 }
 0x78f   : > { %v2616_v32 = vpop.f32.mrf.mxu3 }
 0x793   : > { %v2681_v63 = vpop.f32.mrf.mxu0 }
 0x794   : > { %v2694_v1 = vpop.f32.mrf.mxu1 }
 0x797   : > { %v2653_v4 = vpop.f32.mrf.mxu2 }
 0x798   : > { %v2654_v15 = vadd.f32 %v2653_v4, %v2641_v14 }
 0x799   : > { %v2666_v2 = vpop.f32.mrf.mxu3 }
 0x79a   : > { %v2667_v21 = vadd.f32 %v2666_v2, %v2654_v15 }
 0x79c   : > { %v2680_v22 = vadd.f32 %v2679_v60, %v2667_v21 }
 0x79e   : > { %v2693_v24 = vadd.f32 %v2692_v61, %v2680_v22 }
 0x79f   : > { %v2655_v11 = vpop.f32.mrf.mxu2 }
 0x7a1   : > { %v2668_v12 = vpop.f32.mrf.mxu3 }
 0x7ab   : > { %v2731_v18 = vpop.f32.mrf.mxu0 }
 0x7ac   : > { %v2744_v20 = vpop.f32.mrf.mxu1 }
 0x7b3   : > { %v2733_v23 = vpop.f32.mrf.mxu0 }
 0x7b4   : > { %v2746_v19 = vpop.f32.mrf.mxu1 }
 0x7b7   : > { %v2705_v25 = vpop.f32.mrf.mxu2  ;;  %v2718_v26 = vpop.f32.mrf.mxu3 }
 0x7b8   : > { %v2706_v46 = vadd.f32 %v2705_v25, %v2693_v24 }
 0x7ba   : > { %v2719_v30 = vadd.f32 %v2718_v26, %v2706_v46 }
 0x7bc   : > { %v2732_v33 = vadd.f32 %v2731_v18, %v2719_v30 }
 0x7be   : > { %v2745_v34 = vadd.f32 %v2744_v20, %v2732_v33 }
 0x7bf   : > { %v2707_v35 = vpop.f32.mrf.mxu2  ;;  %v2720_v37 = vpop.f32.mrf.mxu3 }
 0x7c0   : > { %v2748_v38 = vadd.f32 %v2745_v34, %v4145_v62 }
 0x7c2   : > { %v2751_v39 = vsel %vm557_vm0, %v2748_v38, 0.0 }
 0x7c3   : > { %2752 = vadd.xlane.f32.xlu2 %v2751_v39 }
 0x836   : > { %v2753_v40 = vpop.xlane.xlu2 %2752 }
 0x837   : > { %v2754_v41 = vmul.f32 %v2753_v40, %v4018_v52 }
 0x839   : > { %v2755_v5 = vsub.f32 %v2748_v38, %v2754_v41 }
 0x83b   : > { %v2756_v42 = vmul.f32 %v2755_v5, %v2755_v5 }
 0x83d   : > { %v2757_v16 = vsel %vm557_vm0, %v2756_v42, 0.0 }
 0x83e   : > { %2758 = vadd.xlane.f32.xlu0 %v2757_v16 }
 0x8b1   : > { %v2759_v8 = vpop.xlane.xlu0 %2758 }
 0x8b2   : > { %v2760_v6 = vmul.f32 %v2759_v8, %v4018_v52  ;;  %v3740_v52 = vld [vmem:[%s4763_s15] ss:$0 sm:$0xff] }
 0x8b4   : > { %v2761_v43 = vadd.f32 1e-05, %v2760_v6 }
 0x8b6   : > { %3825 = vrsqrt.f32 %v2761_v43  ;;  %vm2768_vm12 = vweird.f32 %v2761_v43 }
 0x8bc   : > { %v3826_v17 = vpop.eup %3825 }
 0x8bd   : > { %v2763_v7 = vmul.f32 %v3826_v17, %v2761_v43  ;;  %vm2769_vm11 = vweird.f32 %v3826_v17 }
 0x8be   : > { %vm2770_vm13 = vmor %vm2768_vm12, %vm2769_vm11 }
 0x8bf   : > { %v2764_v62 = vmul.f32 %v3826_v17, %v2763_v7 }
 0x8c1   : > { %v2765_v44 = vmul.f32 0.5, %v2764_v62 }
 0x8c3   : > { %v2766_v45 = vsub.f32 1.5, %v2765_v44 }
 0x8c5   : > { %v2767_v47 = vmul.f32 %v3826_v17, %v2766_v45 }
 0x8c7   : > { %v2771_v49 = vsel %vm2770_vm13, %v3826_v17, %v2767_v47 }
 0x8c8   : > { %v2772_v27 = vmul.f32 %v2771_v49, %v2755_v5 }
 0x8ca   : > { %v2776_v50 = vmul.f32 %v3739_v48, %v2772_v27 }
 0x8cc   : > { %v2780_v51 = vadd.f32 %v3740_v52, %v2776_v50 }
 0x8ce   : > { %2781 = vst.msk [vmem:[%s533_s29] sm:$0xff] %vm557_vm0, %v2780_v51 }
 0x8cf PF: > { %s26_s21 = sadd.s32 1, %s3833_s21  }
 0x8d0   : > { %p23_p4 = scmp.ge.s32.totalorder %s26_s21, 4  }
 0x8d2   :  { %25 = sbr.rel (!%p23_p4) target bundleno = 2 (0x2), region = 117 }

// kernel: seperator_block.8
= control target key start
LH: loop header
LB: loop body
LE: loop exit
PB: predicated region body
PF: predicated region fallthrough
CT: control target
= control target key end

     0   :  { %s4448_s25 = smov 0   ;;  %s5539_s0 = inlined_call_operand.vmem [shape: f32[16,32], index: 0, kind: input, shape index: {}]   ;;  %s5540_s1 = inlined_call_operand.vmem [shape: bf16[32,96], index: 1, kind: input, shape index: {}]   ;;  %s5541_s2 = inlined_call_operand.vmem [shape: f32[1,96], index: 2, kind: input, shape index: {}]   ;;  %s5542_s3 = inlined_call_operand.vmem [shape: bf16[32,32], index: 3, kind: input, shape index: {}]   ;;  %s5543_s4 = inlined_call_operand.vmem [shape: f32[1,32], index: 4, kind: input, shape index: {}]   ;;  %s5544_s5 = inlined_call_operand.vmem [shape: f32[1,32], index: 5, kind: input, shape index: {}]   ;;  %s5545_s6 = inlined_call_operand.vmem [shape: f32[1,32], index: 6, kind: input, shape index: {}]   ;;  %s5546_s7 = inlined_call_operand.vmem [shape: bf16[32,2048], index: 7, kind: input, shape index: {}]   ;;  %s5547_s8 = inlined_call_operand.vmem [shape: f32[1,2048], index: 8, kind: input, shape index: {}]   ;;  %s5548_s9 = inlined_call_operand.vmem [shape: bf16[2048,32], index: 9, kind: input, shape index: {}]   ;;  %s5549_s10 = inlined_call_operand.vmem [shape: f32[1,32], index: 10, kind: input, shape index: {}]   ;;  %s5550_s11 = inlined_call_operand.vmem [shape: f32[1,32], index: 11, kind: input, shape index: {}]   ;;  %s5551_s12 = inlined_call_operand.vmem [shape: f32[1,32], index: 12, kind: input, shape index: {}]   ;;  %s5552_s13 = inlined_call_operand.vmem [shape: f32[16,32], index: 13, kind: output, shape index: {}]  }
   0x1 LB: > { %s3375_s26 = sadd.s32 4294967295, %s4361_s25   ;;  %p3379_p0 = scmp.ge.s32.totalorder %s4361_s25, 1  ;;  %s4361_s25 = sphi %s4448_s25, %s23_s25  }
   0x2   : > { %p386_p1 = scmp.lt.s32.totalorder %s4361_s25, 3 }
   0x4   : > { %p387_p2 = pnand %p3379_p0, %p386_p1 }
   0x5   : > { %p428_p3 = scmp.lt.s32.totalorder (!%p387_p2), %s3375_s26, 1  ;;  %s4363_s20 = smov (!%p387_p2), 104  }
   0x6   : > { %390 = sbr.rel (%p387_p2) target bundleno = 2118 (0x846), region = 72  ;;  %s4364_s21 = smov (!%p387_p2), 120  }
   0x7   : > { %s4365_s22 = smov (!%p387_p2), 96   ;;  %s4366_s23 = smov (!%p387_p2), 80  }
   0x8   : > { %s4367_s24 = smov (!%p387_p2), 72   ;;  %s4368_s27 = smov (!%p387_p2), 88  }
   0x9   : > { %s4369_s28 = smov (!%p387_p2), 112   ;;  %s4370_s29 = smov (!%p387_p2), 40  }
   0xa   : > { %s4371_s30 = smov (!%p387_p2), 64   ;;  %s4372_s15 = smov (!%p387_p2), 48  }
   0xb   : > { %v4091_v0 = vld [vmem:[%s5540_s1 + $0x8] sm:$0xff]  ;;  %v4090_v1 = vld [vmem:[%s5540_s1] sm:$0xff]  ;;  %s5554_s26 = smov (!%p428_p3, %s3375_s26), 1  ;;  %vm459_vm0 = vcmask 261120   ;;  %vm476_vm1 = vcmask 785408   ;;  %s4373_s16 = smov 56  }
   0xc   : > { %469 = vmatpush.bf16.msra.mxu0 %v4091_v0  ;;  %s3380_s14 = sshll.u32 %s5554_s26, 3  ;;  %v4277_v4 = vld [vmem:[%s5541_s2] ss:$0 sm:$0xff]  ;;  %vm483_vm2 = vcmask 64512   ;;  %vm523_vm3 = vcmask 1040384   ;;  %vm504_vm4 = vcmask 9216  }
   0xd   : > { %s4470_s17 = scalar_lea.vmem %s5539_s0, %s3380_s14  ;;  %vm519_vm5 = vcmask 15360   ;;  %vm540_vm6 = vcmask 58368   ;;  %s4374_s18 = smov 16   ;;  %vm606_vm7 = vcmask 123968   ;;  %vm672_vm8 = vcmask 189568  }
   0xe   : > { %v437_v2 = vld [vmem:[%s4470_s17] sm:$0xff]  ;;  %s4375_s19 = smov 8   ;;  %vm738_vm9 = vcmask 255168  }
   0xf   : > { %v438_v3 = vpack.c.bf16 %v437_v2, %v437_v2 }
  0x10   : > { %470 = vmatpush.bf16.msra.mxu0 %v4090_v1 }
  0x13   : > { %3390 = vmatmul.msk.bf16.vlgmr.msra.gmra.mxu0 %vm459_vm0, %v438_v3 }
  0x90   : > { %v472_v5 = vpop.f32.mrf.mxu0 }
  0x91   : > { %v473_v6 = vadd.f32 %v4277_v4, %v472_v5 }
  0x93   : > { %477 = vst.msk [vmem:[#allocation2] sm:$0xff] %vm476_vm1, %v473_v6 }
  0x98   : > { %v474_v7 = vpop.f32.mrf.mxu0 }
  0x9a   : > { %v674_v8 = vld [vmem:[#allocation2] sm:$0x3]  ;;  %v799_v16 = vld [vmem:[#allocation2 + $0x2] sm:$0x3]  ;;  %v1053_v23 = vld [vmem:[#allocation2 + $0x4] sm:$0x3] }
  0x9b   : > { %v542_v9 = vld [vmem:[#allocation2] sm:$0x3]  ;;  %v4477_v11 = vpack.c.bf16 %v674_v8, %v674_v8  ;;  %v800_v17 = vpack.c.bf16 %v799_v16, %v799_v16  ;;  %v929_v18 = vld [vmem:[#allocation2 + $0x2] sm:$0x3]  ;;  %v4503_v25 = vpack.c.bf16 %v1053_v23, %v1053_v23  ;;  %v1183_v26 = vld [vmem:[#allocation2 + $0x4] sm:$0x3] }
  0x9c   : > { %v478_v10 = vld [vmem:[#allocation2] sm:$0x3]  ;;  %v4479_v12 = vpack.c.bf16 %v542_v9, %v542_v9  ;;  %v740_v19 = vld [vmem:[#allocation2 + $0x2] sm:$0x3]  ;;  %v930_v20 = vpack.c.bf16 %v929_v18, %v929_v18  ;;  %v994_v27 = vld [vmem:[#allocation2 + $0x4] sm:$0x3]  ;;  %v4509_v28 = vpack.c.bf16 %v1183_v26, %v1183_v26 }
  0x9d   : > { %v4481_v13 = vpack.c.bf16 %v478_v10, %v478_v10  ;;  %677 = vrot.lane.b32.xlu2 %v4477_v11, %s4363_s20  ;;  %v608_v14 = vld [vmem:[#allocation2] sm:$0x3]  ;;  %v4497_v21 = vpack.c.bf16 %v740_v19, %v740_v19  ;;  %v864_v22 = vld [vmem:[#allocation2 + $0x2] sm:$0x3]  ;;  %v4511_v29 = vpack.c.bf16 %v994_v27, %v994_v27  ;;  %v1307_v30 = vld [vmem:[#allocation2 + $0x6] sm:$0x3] }
  0x9e   : > { %545 = vrot.lane.b32.xlu1 %v4479_v12, %s4364_s21  ;;  %v609_v15 = vpack.c.bf16 %v608_v14, %v608_v14  ;;  %v865_v24 = vpack.c.bf16 %v864_v22, %v864_v22  ;;  %v1118_v31 = vld [vmem:[#allocation2 + $0x4] sm:$0x3]  ;;  %v4519_v32 = vpack.c.bf16 %v1307_v30, %v1307_v30  ;;  %v1248_v34 = vld [vmem:[#allocation2 + $0x6] sm:$0x3] }
  0x9f   : > { %481 = vrot.lane.b32.xlu0 %v4481_v13, %s4365_s22  ;;  %v4521_v33 = vpack.c.bf16 %v1118_v31, %v1118_v31  ;;  %v4529_v35 = vpack.c.bf16 %v1248_v34, %v1248_v34  ;;  %v1372_v36 = vld [vmem:[#allocation2 + $0x6] sm:$0x3] }
  0xa0   : > { %v1437_v37 = vld [vmem:[#allocation2 + $0x6] sm:$0x3]  ;;  %v4537_v38 = vpack.c.bf16 %v1372_v36, %v1372_v36 }
  0xa1   : > { %v4539_v39 = vpack.c.bf16 %v1437_v37, %v1437_v37 }
  0xa5   : > { %613 = vrot.lane.b32.xlu2 %v609_v15, %s4366_s23 }
  0xa6   : > { %679 = vrot.lane.b32.xlu1 %v4477_v11, %s4367_s24 }
  0xa7   : > { %547 = vrot.lane.b32.xlu0 %v4479_v12, %s4368_s27 }
  0xad   : > { %802 = vrot.lane.b32.xlu2 %v800_v17, %s4364_s21 }
  0xae   : > { %611 = vrot.lane.b32.xlu1 %v609_v15, %s4369_s28 }
  0xaf   : > { %804 = vrot.lane.b32.xlu0 %v800_v17, %s4368_s27 }
  0xb5   : > { %932 = vrot.lane.b32.xlu2 %v930_v20, %s4363_s20 }
  0xb6   : > { %934 = vrot.lane.b32.xlu1 %v930_v20, %s4367_s24 }
  0xb7   : > { %743 = vrot.lane.b32.xlu0 %v4497_v21, %s4365_s22 }
  0xbd   : > { %867 = vrot.lane.b32.xlu2 %v865_v24, %s4369_s28 }
  0xbe   : > { %1058 = vrot.lane.b32.xlu1 %v4503_v25, %s4368_s27 }
  0xbf   : > { %869 = vrot.lane.b32.xlu0 %v865_v24, %s4366_s23 }
  0xc5   : > { %1188 = vrot.lane.b32.xlu2 %v4509_v28, %s4367_s24 }
  0xc6   : > { %997 = vrot.lane.b32.xlu1 %v4511_v29, %s4365_s22 }
  0xc7   : > { %1056 = vrot.lane.b32.xlu0 %v4503_v25, %s4364_s21 }
  0xcd   : > { %1312 = vrot.lane.b32.xlu2 %v4519_v32, %s4368_s27 }
  0xce   : > { %1123 = vrot.lane.b32.xlu1 %v4521_v33, %s4366_s23 }
  0xcf   : > { %1186 = vrot.lane.b32.xlu0 %v4509_v28, %s4363_s20 }
  0xd5   : > { %1251 = vrot.lane.b32.xlu2 %v4529_v35, %s4365_s22 }
  0xd6   : > { %1310 = vrot.lane.b32.xlu1 %v4519_v32, %s4364_s21  ;;  %s435_s21 = scalar_lea.vmem %s5552_s13, %s3380_s14 }
  0xd7   : > { %1121 = vrot.lane.b32.xlu0 %v4521_v33, %s4369_s28 }
  0xdd   : > { %1377 = vrot.lane.b32.xlu2 %v4537_v38, %s4366_s23 }
  0xde   : > { %1440 = vrot.lane.b32.xlu1 %v4539_v39, %s4363_s20  ;;  %s4376_s20 = smov 24  }
  0xdf   : > { %1442 = vrot.lane.b32.xlu0 %v4539_v39, %s4367_s24 }
  0xe5   : > { %713 = vrot.lane.b32.xlu2 %v4477_v11, %s4370_s29 }
  0xe6   : > { %517 = vrot.lane.b32.xlu1 %v4481_v13, %s4371_s30 }
  0xe7   : > { %1375 = vrot.lane.b32.xlu0 %v4537_v38, %s4369_s28 }
  0xed   : > { %777 = vrot.lane.b32.xlu2 %v4497_v21, %s4371_s30 }
  0xee   : > { %647 = vrot.lane.b32.xlu1 %v609_v15, %s4372_s15 }
  0xef   : > { %581 = vrot.lane.b32.xlu0 %v4479_v12, %s4373_s16 }
  0xf6   : > { %968 = vrot.lane.b32.xlu1 %v930_v20, %s4370_s29 }
  0xf7   : > { %838 = vrot.lane.b32.xlu0 %v800_v17, %s4373_s16  ;;  %v678_v40 = vpop.permute.xlu2 %677 }
  0xff   : > { %903 = vrot.lane.b32.xlu0 %v865_v24, %s4372_s15  ;;  %v614_v41 = vpop.permute.xlu2 %613 }
 0x100   : > { %v619_v42 = vsel %vm483_vm2, %v614_v41, 0 }
 0x101   : > { %628 = vmatpush.bf16.xpose.msrb.mxu0 %v619_v42 }
 0x107   : > { %v803_v44 = vpop.permute.xlu2 %802 }
 0x10f   : > { %v933_v51 = vpop.permute.xlu2 %932 }
 0x110   : > { %v546_v43 = vpop.permute.xlu1 %545 }
 0x111   : > { %v482_v45 = vpop.permute.xlu0 %481 }
 0x112   : > { %v488_v46 = vsel %vm483_vm2, %v482_v45, 0 }
 0x113   : > { %497 = vmatpush.bf16.xpose.msra.mxu1 %v488_v46 }
 0x117   : > { %v868_v55 = vpop.permute.xlu2 %867 }
 0x118   : > { %v680_v47 = vpop.permute.xlu1 %679 }
 0x119   : > { %v548_v48 = vpop.permute.xlu0 %547  ;;  %v685_v49 = vsel %vm483_vm2, %v680_v47, 0 }
 0x11a   : > { %3391 = vmatmul.msk.bf16.vlgmr.msra.gmra.mxu1 %vm483_vm2, %v4481_v13  ;;  %v553_v50 = vsel %vm483_vm2, %v548_v48, 0 }
 0x11b   : > { %562 = vmatpush.bf16.xpose.msra.mxu3 %v553_v50 }
 0x11f   : > { %v1189_v59 = vpop.permute.xlu2 %1188 }
 0x120   : > { %v612_v52 = vpop.permute.xlu1 %611  ;;  %v1194_v14 = vsel %vm483_vm2, %v1189_v59, 0 }
 0x121   : > { %v805_v53 = vpop.permute.xlu0 %804  ;;  %3395 = vmatmul.msk.bf16.vlgmr.msrb.gmra.mxu0 %vm483_vm2, %v612_v52 }
 0x122   : > { %v810_v54 = vsel %vm483_vm2, %v805_v53, 0  ;;  %3393 = vmatmul.msk.bf16.vlgmr.msra.gmra.mxu3 %vm483_vm2, %v546_v43 }
 0x123   : > { %694 = vmatpush.bf16.xpose.msrb.mxu3 %v685_v49 }
 0x127   : > { %v1313_v1 = vpop.permute.xlu2 %1312 }
 0x128   : > { %v935_v56 = vpop.permute.xlu1 %934  ;;  %v1318_v24 = vsel %vm483_vm2, %v1313_v1, 0 }
 0x129   : > { %v744_v57 = vpop.permute.xlu0 %743  ;;  %v940_v62 = vsel %vm483_vm2, %v935_v56, 0 }
 0x12a   : > { %v749_v58 = vsel %vm483_vm2, %v744_v57, 0 }
 0x12b   : > { %819 = vmatpush.bf16.xpose.msra.mxu3 %v810_v54  ;;  %758 = vmatpush.bf16.xpose.msra.mxu0 %v749_v58 }
 0x12f   : > { %v1252_v8 = vpop.permute.xlu2 %1251 }
 0x130   : > { %v1059_v60 = vpop.permute.xlu1 %1058  ;;  %v1257_v15 = vsel %vm483_vm2, %v1252_v8, 0 }
 0x131   : > { %v870_v61 = vpop.permute.xlu0 %869  ;;  %v1064_v7 = vsel %vm483_vm2, %v1059_v60, 0 }
 0x132   : > { %v875_v63 = vsel %vm483_vm2, %v870_v61, 0  ;;  %3397 = vmatmul.msk.bf16.vlgmr.msrb.gmra.mxu3 %vm483_vm2, %v678_v40  ;;  %3399 = vmatmul.msk.bf16.vlgmr.msra.gmra.mxu0 %vm483_vm2, %v4497_v21 }
 0x133   : > { %949 = vmatpush.bf16.xpose.msrb.mxu3 %v940_v62  ;;  %884 = vmatpush.bf16.xpose.msrb.mxu0 %v875_v63 }
 0x137   : > { %v1378_v11 = vpop.permute.xlu2 %1377 }
 0x138   : > { %v998_v0 = vpop.permute.xlu1 %997  ;;  %v1383_v26 = vsel %vm483_vm2, %v1378_v11, 0 }
 0x139   : > { %v1003_v2 = vsel %vm483_vm2, %v998_v0, 0  ;;  %v1057_v3 = vpop.permute.xlu0 %1056 }
 0x13b   : > { %1012 = vmatpush.bf16.xpose.msra.mxu0 %v1003_v2 }
 0x13f   : > { %v4586_v16 = vpop.permute.xlu2 %713 }
 0x140   : > { %v1124_v4 = vpop.permute.xlu1 %1123 }
 0x141   : > { %v1129_v5 = vsel %vm483_vm2, %v1124_v4, 0  ;;  %v1187_v6 = vpop.permute.xlu0 %1186 }
 0x142   : > { %3401 = vmatmul.msk.bf16.vlgmr.msra.gmra.mxu3 %vm483_vm2, %v803_v44  ;;  %3403 = vmatmul.msk.bf16.vlgmr.msrb.gmra.mxu0 %vm483_vm2, %v868_v55 }
 0x143   : > { %1073 = vmatpush.bf16.xpose.msra.mxu3 %v1064_v7  ;;  %1138 = vmatpush.bf16.xpose.msrb.mxu0 %v1129_v5 }
 0x147   : > { %v778_v21 = vpop.permute.xlu2 %777 }
 0x148   : > { %v1311_v9 = vpop.permute.xlu1 %1310  ;;  %v783_v30 = vsel %vm523_vm3, %v778_v21, 0 }
 0x149   : > { %v1122_v10 = vpop.permute.xlu0 %1121 }
 0x150   : > { %v1441_v12 = vpop.permute.xlu1 %1440 }
 0x151   : > { %v1443_v13 = vpop.permute.xlu0 %1442 }
 0x152   : > { %3405 = vmatmul.msk.bf16.vlgmr.msrb.gmra.mxu3 %vm483_vm2, %v933_v51  ;;  %3407 = vmatmul.msk.bf16.vlgmr.msra.gmra.mxu0 %vm483_vm2, %v4511_v29  ;;  %v1448_v31 = vsel %vm483_vm2, %v1443_v13, 0 }
 0x153   : > { %1203 = vmatpush.bf16.xpose.msrb.mxu3 %v1194_v14  ;;  %1266 = vmatpush.bf16.xpose.msra.mxu0 %v1257_v15 }
 0x158   : > { %v518_v17 = vpop.permute.xlu1 %517 }
 0x159   : > { %v1376_v18 = vpop.permute.xlu0 %1375  ;;  %v525_v19 = vsel %vm523_vm3, %v518_v17, 0 }
 0x15a   : > { %534 = vmatpush.bf16.msra.mxu2 %v525_v19 }
 0x160   : > { %v648_v20 = vpop.permute.xlu1 %647 }
 0x161   : > { %v582_v22 = vpop.permute.xlu0 %581  ;;  %v653_v23 = vsel %vm523_vm3, %v648_v20, 0 }
 0x162   : > { %3409 = vmatmul.msk.bf16.vlgmr.msra.gmra.mxu3 %vm483_vm2, %v1057_v3  ;;  %3411 = vmatmul.msk.bf16.vlgmr.msrb.gmra.mxu0 %vm483_vm2, %v1122_v10  ;;  %v587_v27 = vsel %vm523_vm3, %v582_v22, 0 }
 0x163   : > { %1327 = vmatpush.bf16.xpose.msra.mxu3 %v1318_v24  ;;  %1392 = vmatpush.bf16.xpose.msrb.mxu0 %v1383_v26 }
 0x164   : > { %596 = vmatpush.bf16.msrb.mxu2 %v587_v27  ;;  %662 = vmatpush.bf16.msrb.mxu1 %v653_v23 }
 0x168   : > { %792 = vmatpush.bf16.msra.mxu1 %v783_v30 }
 0x172   : > { %3413 = vmatmul.msk.bf16.vlgmr.msrb.gmra.mxu3 %vm483_vm2, %v1187_v6  ;;  %3415 = vmatmul.msk.bf16.vlgmr.msra.gmra.mxu0 %vm483_vm2, %v4529_v35 }
 0x173   : > { %1457 = vmatpush.bf16.xpose.msrb.mxu3 %v1448_v31 }
 0x182   : > { %3417 = vmatmul.msk.bf16.vlgmr.msra.gmra.mxu3 %vm483_vm2, %v1311_v9  ;;  %3419 = vmatmul.msk.bf16.vlgmr.msrb.gmra.mxu0 %vm483_vm2, %v1376_v18 }
 0x192   : > { %3421 = vmatmul.msk.bf16.vlgmr.msrb.gmra.mxu3 %vm483_vm2, %v1441_v12 }
 0x197   : > { %v499_v34 = vpop.f32.mrf.mxu1 }
 0x198   : > { %v4603_v36 = vmul.f32 0.35355338, %v499_v34 }
 0x19a   : > { %v505_v37 = vsel %vm504_vm4, %v4603_v36, -inf }
 0x19b   : > { %506 = vmax.xlane.f32.xlu1 %v505_v37  ;;  %v4659_v37 = vpop.permute.xlu1 %968 }
 0x19e   : > { %v630_v40 = vpop.f32.mrf.mxu0 }
 0x19f   : > { %v501_v41 = vpop.f32.mrf.mxu1  ;;  %v4607_v42 = vmul.f32 0.35355338, %v630_v40 }
 0x1a1   : > { %v635_v43 = vsel %vm504_vm4, %v4607_v42, -inf }
 0x1a2   : > { %636 = vmax.xlane.f32.xlu2 %v635_v43 }
 0x1a5   : > { %v564_v44 = vpop.f32.mrf.mxu3 }
 0x1a6   : > { %v4611_v45 = vmul.f32 0.35355338, %v564_v44  ;;  %v632_v46 = vpop.f32.mrf.mxu0 }
 0x1a8   : > { %v569_v47 = vsel %vm504_vm4, %v4611_v45, -inf }
 0x1aa   : > { %570 = vmax.xlane.f32.xlu2 %v569_v47 }
 0x1ad   : > { %v566_v48 = vpop.f32.mrf.mxu3 }
 0x1af   : > { %v760_v49 = vpop.f32.mrf.mxu0 }
 0x1b0   : > { %v4615_v50 = vmul.f32 0.35355338, %v760_v49  ;;  %v4668_v49 = vpop.permute.xlu0 %838 }
 0x1b2   : > { %v765_v51 = vsel %vm504_vm4, %v4615_v50, -inf }
 0x1b3   : > { %766 = vmax.xlane.f32.xlu0 %v765_v51 }
 0x1b5   : > { %v696_v52 = vpop.f32.mrf.mxu3 }
 0x1b6   : > { %v4619_v53 = vmul.f32 0.35355338, %v696_v52 }
 0x1b7   : > { %v762_v54 = vpop.f32.mrf.mxu0 }
 0x1b8   : > { %v701_v55 = vsel %vm504_vm4, %v4619_v53, -inf }
 0x1bb   : > { %702 = vmax.xlane.f32.xlu0 %v701_v55 }
 0x1bd   : > { %v698_v56 = vpop.f32.mrf.mxu3 }
 0x1bf   : > { %v886_v57 = vpop.f32.mrf.mxu0 }
 0x1c0   : > { %v4623_v58 = vmul.f32 0.35355338, %v886_v57  ;;  %v4678_v57 = vpop.permute.xlu0 %903 }
 0x1c2   : > { %v891_v59 = vsel %vm504_vm4, %v4623_v58, -inf }
 0x1c3   : > { %892 = vmax.xlane.f32.xlu2 %v891_v59 }
 0x1c5   : > { %v821_v60 = vpop.f32.mrf.mxu3 }
 0x1c6   : > { %v4627_v61 = vmul.f32 0.35355338, %v821_v60 }
 0x1c7   : > { %v888_v62 = vpop.f32.mrf.mxu0 }
 0x1c8   : > { %v826_v63 = vsel %vm504_vm4, %v4627_v61, -inf }
 0x1c9   : > { %827 = vmax.xlane.f32.xlu1 %v826_v63 }
 0x1cd   : > { %v823_v0 = vpop.f32.mrf.mxu3 }
 0x1cf   : > { %v1014_v1 = vpop.f32.mrf.mxu0 }
 0x1d0   : > { %v4631_v2 = vmul.f32 0.35355338, %v1014_v1 }
 0x1d2   : > { %v1019_v3 = vsel %vm504_vm4, %v4631_v2, -inf }
 0x1d3   : > { %1020 = vmax.xlane.f32.xlu2 %v1019_v3 }
 0x1d5   : > { %v951_v4 = vpop.f32.mrf.mxu3 }
 0x1d6   : > { %v4635_v5 = vmul.f32 0.35355338, %v951_v4 }
 0x1d7   : > { %v1016_v6 = vpop.f32.mrf.mxu0 }
 0x1d8   : > { %v956_v7 = vsel %vm504_vm4, %v4635_v5, -inf }
 0x1db   : > { %957 = vmax.xlane.f32.xlu2 %v956_v7 }
 0x1dd   : > { %v953_v8 = vpop.f32.mrf.mxu3 }
 0x1df   : > { %v1140_v9 = vpop.f32.mrf.mxu0 }
 0x1e0   : > { %v4639_v10 = vmul.f32 0.35355338, %v1140_v9 }
 0x1e2   : > { %v1145_v11 = vsel %vm504_vm4, %v4639_v10, -inf }
 0x1e3   : > { %1146 = vmax.xlane.f32.xlu0 %v1145_v11 }
 0x1e5   : > { %v1075_v12 = vpop.f32.mrf.mxu3 }
 0x1e6   : > { %v4643_v13 = vmul.f32 0.35355338, %v1075_v12 }
 0x1e7   : > { %v1142_v14 = vpop.f32.mrf.mxu0 }
 0x1e8   : > { %v1080_v15 = vsel %vm504_vm4, %v4643_v13, -inf }
 0x1e9   : > { %1081 = vmax.xlane.f32.xlu2 %v1080_v15 }
 0x1ed   : > { %v1077_v17 = vpop.f32.mrf.mxu3 }
 0x1ef   : > { %v1268_v18 = vpop.f32.mrf.mxu0 }
 0x1f0   : > { %v4647_v19 = vmul.f32 0.35355338, %v1268_v18 }
 0x1f2   : > { %v1273_v20 = vsel %vm504_vm4, %v4647_v19, -inf }
 0x1f3   : > { %1274 = vmax.xlane.f32.xlu1 %v1273_v20 }
 0x1f5   : > { %v1205_v21 = vpop.f32.mrf.mxu3 }
 0x1f6   : > { %v4651_v22 = vmul.f32 0.35355338, %v1205_v21 }
 0x1f7   : > { %v1270_v23 = vpop.f32.mrf.mxu0 }
 0x1f8   : > { %v1210_v24 = vsel %vm504_vm4, %v4651_v22, -inf }
 0x1f9   : > { %1211 = vmax.xlane.f32.xlu2 %v1210_v24 }
 0x1fd   : > { %v1207_v26 = vpop.f32.mrf.mxu3 }
 0x1ff   : > { %v1394_v27 = vpop.f32.mrf.mxu0 }
 0x200   : > { %v4655_v30 = vmul.f32 0.35355338, %v1394_v27 }
 0x202   : > { %v1399_v31 = vsel %vm504_vm4, %v4655_v30, -inf }
 0x203   : > { %1400 = vmax.xlane.f32.xlu2 %v1399_v31 }
 0x205   : > { %v1329_v34 = vpop.f32.mrf.mxu3 }
 0x206   : > { %v4661_v40 = vmul.f32 0.35355338, %v1329_v34 }
 0x207   : > { %v1396_v41 = vpop.f32.mrf.mxu0 }
 0x208   : > { %v1334_v43 = vsel %vm504_vm4, %v4661_v40, -inf }
 0x20b   : > { %1335 = vmax.xlane.f32.xlu2 %v1334_v43 }
 0x20c   : > { %1031 = vrot.lane.b32.xlu1 %v4511_v29, %s4371_s30 }
 0x20d   : > { %v1331_v44 = vpop.f32.mrf.mxu3 }
 0x20e   : > { %v507_v46 = vpop.xlane.xlu1 %506 }
 0x20f   : > { %v508_v47 = vsub.f32 %v4603_v36, %v507_v46 }
 0x211   : > { %v509_v48 = vmul.f32 1.442695, %v508_v47 }
 0x213   : > { %4284 = vpow2.f32 %v509_v48 }
 0x215   : > { %v1459_v51 = vpop.f32.mrf.mxu3  ;;  %v637_v0 = vpop.xlane.xlu2 %636 }
 0x216   : > { %v4670_v52 = vmul.f32 0.35355338, %v1459_v51  ;;  %v638_v7 = vsub.f32 %v4607_v42, %v637_v0 }
 0x218   : > { %v1464_v54 = vsel %vm504_vm4, %v4670_v52, -inf  ;;  %v639_v8 = vmul.f32 1.442695, %v638_v7 }
 0x219   : > { %v4674_v55 = vpop.eup %4284  ;;  %1465 = vmax.xlane.f32.xlu0 %v1464_v54 }
 0x21a   : > { %v511_v29 = vsel %vm504_vm4, %v4674_v55, 0.0 }
 0x21b   : > { %512 = vadd.xlane.f32.xlu2 %v511_v29 }
 0x21d   : > { %v1461_v56 = vpop.f32.mrf.mxu3  ;;  %v571_v6 = vpop.xlane.xlu2 %570 }
 0x226   : > { %v767_v36 = vpop.xlane.xlu0 %766 }
 0x227   : > { %v768_v59 = vsub.f32 %v4615_v50, %v767_v36 }
 0x229   : > { %v769_v60 = vmul.f32 1.442695, %v768_v59 }
 0x22b   : > { %4286 = vpow2.f32 %v769_v60 }
 0x22d   : > { %1222 = vrot.lane.b32.xlu0 %v4509_v28, %s4370_s29 }
 0x22e   : > { %v703_v62 = vpop.xlane.xlu0 %702 }
 0x22f   : > { %v704_v63 = vsub.f32 %v4619_v53, %v703_v62 }
 0x231   : > { %v705_v1 = vmul.f32 1.442695, %v704_v63  ;;  %v4684_v3 = vpop.eup %4286 }
 0x232   : > { %v771_v4 = vsel %vm504_vm4, %v4684_v3, 0.0 }
 0x233   : > { %1092 = vrot.lane.b32.xlu2 %v4503_v25, %s4373_s16  ;;  %4288 = vpow2.f32 %v705_v1  ;;  %v572_v25 = vsub.f32 %v4611_v45, %v571_v6 }
 0x234   : > { %4290 = vpow2.f32 %v639_v8 }
 0x235   : > { %v573_v14 = vmul.f32 1.442695, %v572_v25  ;;  %v719_v25 = vsel %vm523_vm3, %v4586_v16, 0 }
 0x236   : > { %772 = vadd.xlane.f32.xlu1 %v771_v4  ;;  %v893_v53 = vpop.xlane.xlu2 %892 }
 0x237   : > { %v894_v9 = vsub.f32 %v4623_v58, %v893_v53 }
 0x239   : > { %v4690_v50 = vpop.eup %4288  ;;  %v895_v12 = vmul.f32 1.442695, %v894_v9 }
 0x23a   : > { %v707_v28 = vsel %vm504_vm4, %v4690_v50, 0.0  ;;  %v4697_v17 = vpop.eup %4290 }
 0x23b   : > { %4292 = vpow2.f32 %v895_v12  ;;  %v641_v42 = vsel %vm504_vm4, %v4697_v17, 0.0 }
 0x23c   : > { %v828_v15 = vpop.xlane.xlu1 %827  ;;  %4294 = vpow2.f32 %v573_v14 }
 0x23d   : > { %v829_v20 = vsub.f32 %v4627_v61, %v828_v15 }
 0x23e   : > { %708 = vadd.xlane.f32.xlu1 %v707_v28 }
 0x23f   : > { %v830_v58 = vmul.f32 1.442695, %v829_v20 }
 0x241   : > { %v4702_v21 = vpop.eup %4292  ;;  %4296 = vpow2.f32 %v830_v58 }
 0x242   : > { %v4704_v23 = vpop.eup %4294  ;;  %v897_v45 = vsel %vm504_vm4, %v4702_v21, 0.0 }
 0x243   : > { %v575_v61 = vsel %vm504_vm4, %v4704_v23, 0.0 }
 0x246   : > { %v1021_v11 = vpop.xlane.xlu2 %1020 }
 0x247   : > { %v1022_v26 = vsub.f32 %v4631_v2, %v1021_v11  ;;  %v4712_v41 = vpop.eup %4296 }
 0x248   : > { %v832_v46 = vsel %vm504_vm4, %v4712_v41, 0.0 }
 0x249   : > { %v1023_v34 = vmul.f32 1.442695, %v1022_v26 }
 0x24e   : > { %v958_v18 = vpop.xlane.xlu2 %957 }
 0x24f   : > { %v959_v43 = vsub.f32 %v4635_v5, %v958_v18 }
 0x251   : > { %v960_v48 = vmul.f32 1.442695, %v959_v43 }
 0x256   : > { %v1147_v54 = vpop.xlane.xlu0 %1146 }
 0x257   : > { %642 = vadd.xlane.f32.xlu0 %v641_v42  ;;  %v1148_v56 = vsub.f32 %v4639_v10, %v1147_v54 }
 0x259   : > { %v1149_v62 = vmul.f32 1.442695, %v1148_v56 }
 0x25c   : > { %v1082_v24 = vpop.xlane.xlu2 %1081  ;;  %898 = vadd.xlane.f32.xlu2 %v897_v45 }
 0x25d   : > { %v1083_v27 = vsub.f32 %v4643_v13, %v1082_v24 }
 0x25f   : > { %v1084_v31 = vmul.f32 1.442695, %v1083_v27  ;;  %576 = vadd.xlane.f32.xlu0 %v575_v61 }
 0x261   : > { %4298 = vpow2.f32 %v1084_v31 }
 0x262   : > { %4300 = vpow2.f32 %v1023_v34  ;;  %v909_v34 = vsel %vm523_vm3, %v4678_v57, 0 }
 0x266   : > { %v1275_v44 = vpop.xlane.xlu1 %1274 }
 0x267   : > { %v4717_v47 = vpop.eup %4298  ;;  %v1276_v2 = vsub.f32 %v4647_v19, %v1275_v44  ;;  %833 = vadd.xlane.f32.xlu0 %v832_v46 }
 0x268   : > { %v1086_v13 = vsel %vm504_vm4, %v4717_v47, 0.0  ;;  %v4722_v29 = vpop.eup %4300 }
 0x269   : > { %v1277_v51 = vmul.f32 1.442695, %v1276_v2  ;;  %1087 = vadd.xlane.f32.xlu1 %v1086_v13  ;;  %v1025_v19 = vsel %vm504_vm4, %v4722_v29, 0.0 }
 0x26b   : > { %4302 = vpow2.f32 %v1277_v51 }
 0x26c   : > { %v1212_v5 = vpop.xlane.xlu2 %1211  ;;  %4304 = vpow2.f32 %v960_v48 }
 0x26d   : > { %v1213_v36 = vsub.f32 %v4651_v22, %v1212_v5 }
 0x26f   : > { %v1214_v59 = vmul.f32 1.442695, %v1213_v36  ;;  %1026 = vadd.xlane.f32.xlu0 %v1025_v19  ;;  %v974_v19 = vsel %vm523_vm3, %v4659_v37, 0 }
 0x271   : > { %v4728_v60 = vpop.eup %4302  ;;  %4306 = vpow2.f32 %v1214_v59 }
 0x272   : > { %v1279_v63 = vsel %vm504_vm4, %v4728_v60, 0.0  ;;  %v4732_v0 = vpop.eup %4304  ;;  %4308 = vpow2.f32 %v1149_v62 }
 0x273   : > { %1280 = vadd.xlane.f32.xlu2 %v1279_v63  ;;  %v962_v10 = vsel %vm504_vm4, %v4732_v0, 0.0 }
 0x276   : > { %v1401_v6 = vpop.xlane.xlu2 %1400 }
 0x277   : > { %v4736_v22 = vpop.eup %4306  ;;  %963 = vadd.xlane.f32.xlu0 %v962_v10 }
 0x278   : > { %v1216_v1 = vsel %vm504_vm4, %v4736_v22, 0.0  ;;  %v4740_v4 = vpop.eup %4308 }
 0x279   : > { %v1151_v28 = vsel %vm504_vm4, %v4740_v4, 0.0 }
 0x27b   : > { %1217 = vadd.xlane.f32.xlu2 %v1216_v1 }
 0x27e   : > { %v1336_v53 = vpop.xlane.xlu2 %1335  ;;  %v1032_v58 = vpop.permute.xlu1 %1031 }
 0x27f   : > { %1152 = vadd.xlane.f32.xlu0 %v1151_v28  ;;  %v1337_v12 = vsub.f32 %v4661_v40, %v1336_v53  ;;  %v1037_v54 = vsel %vm523_vm3, %v1032_v58, 0 }
 0x282   : > { %1157 = vrot.lane.b32.xlu1 %v4521_v33, %s4372_s15  ;;  %v1338_v33 = vmul.f32 1.442695, %v1337_v12 }
 0x28e   : > { %v513_v7 = vpop.xlane.xlu2 %512 }
 0x28f   : > { %4310 = vrcp.f32 %v513_v7 }
 0x290   : > { %4312 = vpow2.f32 %v1338_v33 }
 0x293   : > { %1285 = vrot.lane.b32.xlu2 %v4529_v35, %s4371_s30  ;;  %1346 = vrot.lane.b32.xlu0 %v4519_v32, %s4373_s16  ;;  %v1466_v35 = vpop.xlane.xlu0 %1465  ;;  %v1402_v32 = vsub.f32 %v4655_v30, %v1401_v6 }
 0x294   : > { %v1467_v15 = vsub.f32 %v4670_v52, %v1466_v35 }
 0x295   : > { %v4311_v8 = vpop.eup %4310  ;;  %v1403_v18 = vmul.f32 1.442695, %v1402_v32 }
 0x296   : > { %v515_v9 = vmul.f32 %v4311_v8, %v4674_v55  ;;  %v4755_v14 = vpop.eup %4312  ;;  %v1468_v16 = vmul.f32 1.442695, %v1467_v15  ;;  %v1093_v44 = vpop.permute.xlu2 %1092 }
 0x297   : > { %v1340_v55 = vsel %vm504_vm4, %v4755_v14, 0.0  ;;  %4314 = vpow2.f32 %v1403_v18  ;;  %v1098_v8 = vsel %vm523_vm3, %v1093_v44, 0 }
 0x298   : > { %v516_v11 = vpack.c.bf16 %v515_v9, %v515_v9  ;;  %4316 = vpow2.f32 %v1468_v16 }
 0x29a   : > { %3392 = vmatmul.msk.bf16.vlgmr.msra.gmra.mxu2 %vm519_vm5, %v516_v11 }
 0x29b   : > { %728 = vmatpush.bf16.msra.mxu2 %v719_v25 }
 0x29d   : > { %v4761_v40 = vpop.eup %4314 }
 0x29e   : > { %v4763_v20 = vpop.eup %4316  ;;  %v1405_v42 = vsel %vm504_vm4, %v4761_v40, 0.0 }
 0x29f   : > { %v1470_v30 = vsel %vm504_vm4, %v4763_v20, 0.0  ;;  %v4769_v52 = vpop.permute.xlu0 %1222 }
 0x2a0   : > { %v1228_v15 = vsel %vm523_vm3, %v4769_v52, 0 }
 0x2a9   : > { %v773_v26 = vpop.xlane.xlu1 %772 }
 0x2ac   : > { %1341 = vadd.xlane.f32.xlu1 %v1340_v55 }
 0x2b1   : > { %v709_v46 = vpop.xlane.xlu1 %708 }
 0x2bc   : > { %1406 = vadd.xlane.f32.xlu2 %v1405_v42 }
 0x2bd   : > { %1471 = vadd.xlane.f32.xlu0 %v1470_v30 }
 0x2c5   : > { %1476 = vrot.lane.b32.xlu1 %v4539_v39, %s4370_s29 }
 0x2ca   : > { %v643_v45 = vpop.xlane.xlu0 %642 }
 0x2cb   : > { %4318 = vrcp.f32 %v643_v45 }
 0x2cf   : > { %v899_v48 = vpop.xlane.xlu2 %898 }
 0x2d1   : > { %v4319_v24 = vpop.eup %4318  ;;  %1411 = vrot.lane.b32.xlu0 %v4537_v38, %s4372_s15 }
 0x2d2   : > { %v645_v27 = vmul.f32 %v4319_v24, %v4697_v17  ;;  %v577_v61 = vpop.xlane.xlu0 %576  ;;  %v844_v17 = vsel %vm523_vm3, %v4668_v49, 0 }
 0x2d3   : > { %4320 = vrcp.f32 %v577_v61 }
 0x2d4   : > { %v646_v31 = vpack.c.bf16 %v645_v27, %v645_v27  ;;  %4322 = vrcp.f32 %v773_v26 }
 0x2d5   : > { %4324 = vrcp.f32 %v709_v46 }
 0x2d6   : > { %3396 = vmatmul.msk.bf16.vlgmr.msrb.gmra.mxu1 %vm519_vm5, %v646_v31  ;;  %4326 = vrcp.f32 %v899_v48 }
 0x2d7   : > { %918 = vmatpush.bf16.msrb.mxu1 %v909_v34 }
 0x2d9   : > { %v4321_v39 = vpop.eup %4320 }
 0x2da   : > { %v579_v43 = vmul.f32 %v4321_v39, %v4704_v23  ;;  %v4323_v38 = vpop.eup %4322  ;;  %v834_v5 = vpop.xlane.xlu0 %833 }
 0x2db   : > { %v775_v57 = vmul.f32 %v4323_v38, %v4684_v3  ;;  %v4325_v51 = vpop.eup %4324  ;;  %4328 = vrcp.f32 %v834_v5 }
 0x2dc   : > { %v580_v2 = vpack.c.bf16 %v579_v43, %v579_v43  ;;  %v711_v23 = vmul.f32 %v4325_v51, %v4690_v50  ;;  %v1088_v49 = vpop.xlane.xlu1 %1087  ;;  %v4327_v36 = vpop.eup %4326 }
 0x2dd   : > { %v776_v13 = vpack.c.bf16 %v775_v57, %v775_v57  ;;  %v901_v59 = vmul.f32 %v4327_v36, %v4702_v21 }
 0x2de   : > { %3394 = vmatmul.msk.bf16.vlgmr.msrb.gmra.mxu2 %vm519_vm5, %v580_v2  ;;  %v712_v56 = vpack.c.bf16 %v711_v23, %v711_v23 }
 0x2df   : > { %853 = vmatpush.bf16.msrb.mxu2 %v844_v17  ;;  %v902_v63 = vpack.c.bf16 %v901_v59, %v901_v59 }
 0x2e1   : > { %v4329_v1 = vpop.eup %4328 }
 0x2e2   : > { %v1027_v62 = vpop.xlane.xlu0 %1026  ;;  %v836_v50 = vmul.f32 %v4329_v1, %v4712_v41 }
 0x2e3   : > { %4330 = vrcp.f32 %v1027_v62 }
 0x2e4   : > { %v837_v53 = vpack.c.bf16 %v836_v50, %v836_v50 }
 0x2e6   : > { %3400 = vmatmul.msk.bf16.vlgmr.msra.gmra.mxu1 %vm519_vm5, %v776_v13  ;;  %v1281_v3 = vpop.xlane.xlu2 %1280 }
 0x2e7   : > { %1046 = vmatpush.bf16.msra.mxu1 %v1037_v54 }
 0x2e9   : > { %v4331_v7 = vpop.eup %4330 }
 0x2ea   : > { %v964_v28 = vpop.xlane.xlu0 %963  ;;  %v1029_v21 = vmul.f32 %v4331_v7, %v4722_v29 }
 0x2eb   : > { %4332 = vrcp.f32 %v964_v28 }
 0x2ec   : > { %v1030_v11 = vpack.c.bf16 %v1029_v21, %v1029_v21 }
 0x2ee   : > { %3398 = vmatmul.msk.bf16.vlgmr.msra.gmra.mxu2 %vm519_vm5, %v712_v56  ;;  %v1218_v37 = vpop.xlane.xlu2 %1217 }
 0x2ef   : > { %983 = vmatpush.bf16.msra.mxu2 %v974_v19 }
 0x2f1   : > { %v4333_v12 = vpop.eup %4332 }
 0x2f2   : > { %v1153_v25 = vpop.xlane.xlu0 %1152  ;;  %v966_v41 = vmul.f32 %v4333_v12, %v4732_v0 }
 0x2f3   : > { %4334 = vrcp.f32 %v1153_v25 }
 0x2f4   : > { %v1158_v10 = vpop.permute.xlu1 %1157  ;;  %v967_v35 = vpack.c.bf16 %v966_v41, %v966_v41  ;;  %4336 = vrcp.f32 %v1088_v49 }
 0x2f5   : > { %v1163_v6 = vsel %vm523_vm3, %v1158_v10, 0  ;;  %4338 = vrcp.f32 %v1281_v3 }
 0x2f6   : > { %3404 = vmatmul.msk.bf16.vlgmr.msrb.gmra.mxu1 %vm519_vm5, %v902_v63  ;;  %v1286_v9 = vpop.permute.xlu2 %1285  ;;  %4340 = vrcp.f32 %v1218_v37 }
 0x2f7   : > { %1172 = vmatpush.bf16.msrb.mxu1 %v1163_v6  ;;  %v1291_v33 = vsel %vm523_vm3, %v1286_v9, 0 }
 0x2f9   : > { %v4335_v32 = vpop.eup %4334 }
 0x2fa   : > { %v1155_v29 = vmul.f32 %v4335_v32, %v4740_v4  ;;  %v4337_v18 = vpop.eup %4336 }
 0x2fb   : > { %v1090_v16 = vmul.f32 %v4337_v18, %v4717_v47  ;;  %v4339_v30 = vpop.eup %4338 }
 0x2fc   : > { %v1156_v55 = vpack.c.bf16 %v1155_v29, %v1155_v29  ;;  %v1283_v4 = vmul.f32 %v4339_v30, %v4728_v60  ;;  %v4341_v24 = vpop.eup %4340  ;;  %v4092_v30 = vld [vmem:[%s5542_s3] sm:$0xff] }
 0x2fd   : > { %v1091_v0 = vpack.c.bf16 %v1090_v16, %v1090_v16  ;;  %v1220_v47 = vmul.f32 %v4341_v24, %v4736_v22 }
 0x2fe   : > { %3402 = vmatmul.msk.bf16.vlgmr.msrb.gmra.mxu2 %vm519_vm5, %v837_v53  ;;  %v1284_v45 = vpack.c.bf16 %v1283_v4, %v1283_v4 }
 0x2ff   : > { %1107 = vmatpush.bf16.msrb.mxu2 %v1098_v8  ;;  %v1221_v27 = vpack.c.bf16 %v1220_v47, %v1220_v47  ;;  %v4278_v47 = vld [vmem:[%s5543_s4] ss:$0 sm:$0xff] }
 0x305   : > { %v1347_v42 = vpop.permute.xlu0 %1346 }
 0x306   : > { %3408 = vmatmul.msk.bf16.vlgmr.msra.gmra.mxu1 %vm519_vm5, %v1030_v11  ;;  %v1352_v52 = vsel %vm523_vm3, %v1347_v42, 0 }
 0x307   : > { %1300 = vmatpush.bf16.msra.mxu1 %v1291_v33 }
 0x30e   : > { %3406 = vmatmul.msk.bf16.vlgmr.msra.gmra.mxu2 %vm519_vm5, %v967_v35 }
 0x30f   : > { %1237 = vmatpush.bf16.msra.mxu2 %v1228_v15 }
 0x316   : > { %3412 = vmatmul.msk.bf16.vlgmr.msrb.gmra.mxu1 %vm519_vm5, %v1156_v55 }
 0x31d   : > { %v536_v58 = vpop.f32.mrf.mxu2 }
 0x31e   : > { %541 = vst.msk [vmem:[#allocation3] sm:$0x3] %vm540_vm6, %v536_v58  ;;  %3410 = vmatmul.msk.bf16.vlgmr.msrb.gmra.mxu2 %vm519_vm5, %v1091_v0  ;;  %v4093_v0 = vld [vmem:[%s5542_s3 + $0x8] sm:$0xff] }
 0x31f   : > { %1361 = vmatpush.bf16.msrb.mxu2 %v1352_v52  ;;  %v1342_v61 = vpop.xlane.xlu1 %1341  ;;  %1533 = vmatpush.bf16.msra.mxu0 %v4093_v0  ;;  %v3450_v0 = vld [vmem:[%s5546_s7 + $0x10] sm:$0xf] }
 0x320   : > { %4342 = vrcp.f32 %v1342_v61 }
 0x323   : > { %1534 = vmatpush.bf16.msra.mxu0 %v4092_v30 }
 0x325   : > { %v538_v26 = vpop.f32.mrf.mxu2 }
 0x326   : > { %3416 = vmatmul.msk.bf16.vlgmr.msra.gmra.mxu1 %vm519_vm5, %v1284_v45  ;;  %v4343_v31 = vpop.eup %4342 }
 0x327   : > { %v1344_v43 = vmul.f32 %v4343_v31, %v4755_v14  ;;  %v4354_v31 = vld [vmem:[%s4470_s17] sm:$0xff] }
 0x329   : > { %v1345_v46 = vpack.c.bf16 %v1344_v43, %v1344_v43 }
 0x32e   : > { %3414 = vmatmul.msk.bf16.vlgmr.msra.gmra.mxu2 %vm519_vm5, %v1221_v27 }
 0x32f   : > { %v1407_v34 = vpop.xlane.xlu2 %1406 }
 0x330   : > { %4344 = vrcp.f32 %v1407_v34  ;;  %v1472_v60 = vpop.xlane.xlu0 %1471 }
 0x331   : > { %4346 = vrcp.f32 %v1472_v60 }
 0x336   : > { %v4345_v2 = vpop.eup %4344 }
 0x337   : > { %v1477_v39 = vpop.permute.xlu1 %1476  ;;  %v1409_v22 = vmul.f32 %v4345_v2, %v4761_v40  ;;  %v4347_v57 = vpop.eup %4346 }
 0x338   : > { %v1482_v44 = vsel %vm523_vm3, %v1477_v39, 0  ;;  %v1474_v14 = vmul.f32 %v4347_v57, %v4763_v20 }
 0x339   : > { %1491 = vmatpush.bf16.msra.mxu2 %v1482_v44  ;;  %v1410_v13 = vpack.c.bf16 %v1409_v22, %v1409_v22  ;;  %v4377_v44 = vmov 32.0  }
 0x33a   : > { %v1475_v48 = vpack.c.bf16 %v1474_v14, %v1474_v14  ;;  %4348 = vrcp.f32 %v4377_v44 }
 0x33e   : > { %3418 = vmatmul.msk.bf16.vlgmr.msrb.gmra.mxu2 %vm519_vm5, %v1345_v46 }
 0x340   : > { %v4349_v60 = vpop.eup %4348 }
 0x341   : > { %v1547_v46 = vmul.f32 32.0, %v4349_v60  ;;  %vm1551_vm10 = vweird.f32 %v4349_v60 }
 0x343   : > { %v1412_v38 = vpop.permute.xlu0 %1411  ;;  %v1548_v2 = vsub.f32 1.0, %v1547_v46 }
 0x344   : > { %v1417_v17 = vsel %vm523_vm3, %v1412_v38, 0 }
 0x345   : > { %1426 = vmatpush.bf16.msrb.mxu1 %v1417_v17  ;;  %v1549_v22 = vmul.f32 %v4349_v60, %v1548_v2 }
 0x347   : > { %v1550_v38 = vadd.f32 %v4349_v60, %v1549_v22 }
 0x348   : > { %3420 = vmatmul.msk.bf16.vlgmr.msrb.gmra.mxu1 %vm519_vm5, %v1410_v13 }
 0x349   : > { %v4860_v17 = vsel %vm1551_vm10, %v4349_v60, %v1550_v38  ;;  %v4279_v38 = vld [vmem:[%s5544_s5] ss:$0 sm:$0xff] }
 0x34e   : > { %3422 = vmatmul.msk.bf16.vlgmr.msra.gmra.mxu2 %vm519_vm5, %v1475_v48 }
 0x353   : > { %v664_v51 = vpop.f32.mrf.mxu1 }
 0x354   : > { %669 = vrot.lane.b32.xlu1 %v664_v51, %s4374_s18 }
 0x35b   : > { %v666_v54 = vpop.f32.mrf.mxu1 }
 0x35c   : > { %v3498_v54 = vld [vmem:[%s5546_s7 + $0x80] sm:$0xf] }
 0x361   : > { %v598_v5 = vpop.f32.mrf.mxu2 }
 0x362   : > { %603 = vrot.lane.b32.xlu1 %v598_v5, %s4375_s19  ;;  %v4118_v5 = vld [vmem:[%s5546_s7 + $0xbc] sm:$0xf0] }
 0x363   : > { %v794_v40 = vpop.f32.mrf.mxu1 }
 0x364   : > { %798 = vst.msk [vmem:[#allocation3 + $0x2] sm:$0x3] %vm540_vm6, %v794_v40  ;;  %v4110_v40 = vld [vmem:[%s5546_s7 + $0x84] sm:$0xf] }
 0x369   : > { %v600_v23 = vpop.f32.mrf.mxu2 }
 0x36a   : > { %v3499_v23 = vor.u32 %v4118_v5, %v3498_v54  ;;  %v3530_v54 = vld [vmem:[%s5546_s7 + $0xa0] sm:$0xf] }
 0x36b   : > { %v796_v56 = vpop.f32.mrf.mxu1  ;;  %v4122_v5 = vld [vmem:[%s5546_s7 + $0xdc] sm:$0xf0] }
 0x36c   : > { %v3500_v56 = vld [vmem:[%s5546_s7 + $0xc0] sm:$0xf0]  ;;  %1818 = vmatpush.bf16.msra.mxu1 %v3499_v23 }
 0x36d   : > { %v3532_v23 = vld [vmem:[%s5546_s7 + $0xe0] sm:$0xf0] }
 0x371   : > { %v730_v20 = vpop.f32.mrf.mxu2 }
 0x372   : > { %735 = vrot.lane.b32.xlu1 %v730_v20, %s4376_s20  ;;  %v3506_v20 = vld [vmem:[%s5546_s7 + $0x88] sm:$0xf] }
 0x373   : > { %v920_v49 = vpop.f32.mrf.mxu1 }
 0x374   : > { %925 = vrot.lane.b32.xlu0 %v920_v49, %s4374_s18  ;;  %v4119_v49 = vld [vmem:[%s5546_s7 + $0xc4] sm:$0xf0] }
 0x379   : > { %v732_v36 = vpop.f32.mrf.mxu2 }
 0x37a   : > { %v3503_v36 = vor.u32 %v4110_v40, %v3500_v56  ;;  %v4114_v40 = vld [vmem:[%s5546_s7 + $0xa4] sm:$0xf] }
 0x37b   : > { %v922_v19 = vpop.f32.mrf.mxu1 }
 0x37c   : > { %v3507_v19 = vor.u32 %v4119_v49, %v3506_v20  ;;  %1831 = vmatpush.bf16.msra.mxu3 %v3503_v36  ;;  %v4123_v20 = vld [vmem:[%s5546_s7 + $0xe4] sm:$0xf0]  ;;  %v4115_v49 = vld [vmem:[%s5546_s7 + $0xac] sm:$0xf] }
 0x37d   : > { %v3540_v36 = vld [vmem:[%s5546_s7 + $0xe8] sm:$0xf0] }
 0x37e   : > { %1844 = vmatpush.bf16.msrb.mxu2 %v3507_v19 }
 0x381   : > { %v855_v3 = vpop.f32.mrf.mxu2 }
 0x382   : > { %860 = vrot.lane.b32.xlu1 %v855_v3, %s4375_s19  ;;  %v4111_v3 = vld [vmem:[%s5546_s7 + $0x8c] sm:$0xf] }
 0x383   : > { %v1048_v59 = vpop.f32.mrf.mxu1 }
 0x384   : > { %1052 = vst.msk [vmem:[#allocation3 + $0x4] sm:$0x3] %vm540_vm6, %v1048_v59  ;;  %v3508_v59 = vld [vmem:[%s5546_s7 + $0xc8] sm:$0xf0] }
 0x389   : > { %v857_v62 = vpop.f32.mrf.mxu2 }
 0x38a   : > { %v3511_v62 = vor.u32 %v4111_v3, %v3508_v59  ;;  %v3531_v3 = vor.u32 %v4122_v5, %v3530_v54  ;;  %v3535_v59 = vor.u32 %v4114_v40, %v3532_v23  ;;  %v4154_v54 = vld [vmem:[%s5548_s9 + $0xe0] sm:$0xff]  ;;  %v4129_v23 = vld [vmem:[%s5548_s9 + $0x18] sm:$0xff] }
 0x38b   : > { %v1050_v63 = vpop.f32.mrf.mxu1  ;;  %v4138_v5 = vld [vmem:[%s5548_s9 + $0x60] sm:$0xff] }
 0x38c   : > { %v3434_v63 = vld [vmem:[%s5546_s7] sm:$0xf]  ;;  %1857 = vmatpush.bf16.msrb.mxu0 %v3511_v62 }
 0x38d   : > { %v3466_v62 = vld [vmem:[%s5546_s7 + $0x20] sm:$0xf] }
 0x38e   : > { %v4146_v40 = vld [vmem:[%s5548_s9 + $0xa0] sm:$0xff] }
 0x391   : > { %v985_v10 = vpop.f32.mrf.mxu2 }
 0x393   : > { %v1174_v1 = vpop.f32.mrf.mxu1 }
 0x394   : > { %1179 = vrot.lane.b32.xlu1 %v1174_v1, %s4374_s18  ;;  %v4094_v1 = vld [vmem:[%s5546_s7 + $0x4] sm:$0xf] }
 0x399   : > { %v987_v6 = vpop.f32.mrf.mxu2 }
 0x39b   : > { %v1176_v50 = vpop.f32.mrf.mxu1 }
 0x39c   : > { %v3436_v50 = vld [vmem:[%s5546_s7 + $0x40] sm:$0xf0] }
 0x3a1   : > { %v1109_v37 = vpop.f32.mrf.mxu2 }
 0x3a2   : > { %1114 = vrot.lane.b32.xlu2 %v1109_v37, %s4375_s19  ;;  %v3442_v37 = vld [vmem:[%s5546_s7 + $0x8] sm:$0xf] }
 0x3a3   : > { %v1302_v28 = vpop.f32.mrf.mxu1 }
 0x3a4   : > { %1306 = vst.msk [vmem:[#allocation3 + $0x6] sm:$0x3] %vm540_vm6, %v1302_v28  ;;  %v4103_v28 = vld [vmem:[%s5546_s7 + $0x44] sm:$0xf0] }
 0x3a9   : > { %v1111_v53 = vpop.f32.mrf.mxu2 }
 0x3aa   : > { %990 = vrot.lane.b32.xlu2 %v985_v10, %s4376_s20  ;;  %v4102_v10 = vld [vmem:[%s5546_s7 + $0x3c] sm:$0xf0]  ;;  %v3439_v53 = vor.u32 %v4094_v1, %v3436_v50  ;;  %v3543_v1 = vor.u32 %v4115_v49, %v3540_v36  ;;  %v3468_v50 = vld [vmem:[%s5546_s7 + $0x60] sm:$0xf0]  ;;  %v4145_v49 = vld [vmem:[%s5548_s9 + $0x98] sm:$0xff] }
 0x3ab   : > { %v1304_v7 = vpop.f32.mrf.mxu1  ;;  %v3435_v6 = vor.u32 %v4102_v10, %v3434_v63  ;;  %v4106_v63 = vld [vmem:[%s5546_s7 + $0x5c] sm:$0xf0]  ;;  %v4128_v36 = vld [vmem:[%s5548_s9 + $0x10] sm:$0xff] }
 0x3ac   : > { %v3443_v7 = vor.u32 %v4103_v28, %v3442_v37  ;;  %1832 = vmatpush.bf16.msra.mxu3 %v3439_v53  ;;  %v3474_v37 = vld [vmem:[%s5546_s7 + $0x28] sm:$0xf]  ;;  %v4099_v53 = vld [vmem:[%s5546_s7 + $0x2c] sm:$0xf] }
 0x3ad   : > { %1819 = vmatpush.bf16.msra.mxu1 %v3435_v6  ;;  %v4098_v6 = vld [vmem:[%s5546_s7 + $0x24] sm:$0xf]  ;;  %v4107_v28 = vld [vmem:[%s5546_s7 + $0x64] sm:$0xf0] }
 0x3ae   : > { %1845 = vmatpush.bf16.msrb.mxu2 %v3443_v7  ;;  %v3476_v7 = vld [vmem:[%s5546_s7 + $0x68] sm:$0xf0] }
 0x3b1   : > { %v1239_v8 = vpop.f32.mrf.mxu2 }
 0x3b9   : > { %v1241_v21 = vpop.f32.mrf.mxu2 }
 0x3ba   : > { %v3444_v21 = vld [vmem:[%s5546_s7 + $0x48] sm:$0xf0] }
 0x3c1   : > { %v1363_v9 = vpop.f32.mrf.mxu2 }
 0x3c5   : > { %v1428_v11 = vpop.f32.mrf.mxu1 }
 0x3c6   : > { %1433 = vrot.lane.b32.xlu0 %v1428_v11, %s4374_s18  ;;  %v670_v12 = vpop.permute.xlu1 %669 }
 0x3c9   : > { %v1365_v25 = vpop.f32.mrf.mxu2 }
 0x3ca   : > { %v3514_v25 = vld [vmem:[%s5546_s7 + $0x90] sm:$0xf] }
 0x3cd   : > { %v1430_v33 = vpop.f32.mrf.mxu1 }
 0x3ce   : > { %1368 = vrot.lane.b32.xlu0 %v1363_v9, %s4375_s19  ;;  %v4112_v33 = vld [vmem:[%s5546_s7 + $0x94] sm:$0xf] }
 0x3d1   : > { %v1493_v41 = vpop.f32.mrf.mxu2 }
 0x3d2   : > { %1498 = vrot.lane.b32.xlu1 %v1493_v41, %s4376_s20 }
 0x3d4   : > { %v604_v35 = vpop.permute.xlu1 %603 }
 0x3d5   : > { %607 = vst.msk [vmem:[#allocation3] sm:$0x3] %vm606_vm7, %v604_v35 }
 0x3d6   : > { %1244 = vrot.lane.b32.xlu0 %v1239_v8, %s4376_s20  ;;  %673 = vst.msk [vmem:[#allocation3] sm:$0x3] %vm672_vm8, %v670_v12  ;;  %v4095_v8 = vld [vmem:[%s5546_s7 + $0xc] sm:$0xf]  ;;  %v4120_v12 = vld [vmem:[%s5546_s7 + $0xcc] sm:$0xf0] }
 0x3d7   : > { %v3447_v11 = vor.u32 %v4095_v8, %v3444_v21  ;;  %v3515_v35 = vor.u32 %v4120_v12, %v3514_v25  ;;  %v3467_v8 = vor.u32 %v4106_v63, %v3466_v62  ;;  %v3471_v21 = vor.u32 %v4098_v6, %v3468_v50  ;;  %v3546_v25 = vld [vmem:[%s5546_s7 + $0xb0] sm:$0xf]  ;;  %v4127_v62 = vld [vmem:[%s5548_s9 + $0x8] sm:$0xff]  ;;  %v4126_v6 = vld [vmem:[%s5548_s9] sm:$0xff] }
 0x3d8   : > { %v4124_v12 = vld [vmem:[%s5546_s7 + $0xec] sm:$0xf0]  ;;  %v4151_v63 = vld [vmem:[%s5548_s9 + $0xc8] sm:$0xff]  ;;  %v4150_v50 = vld [vmem:[%s5548_s9 + $0xc0] sm:$0xff] }
 0x3d9   : > { %v1495_v32 = vpop.f32.mrf.mxu2  ;;  %1858 = vmatpush.bf16.msrb.mxu0 %v3447_v11  ;;  %1870 = vmatpush.bf16.msrb.mxu1 %v3515_v35  ;;  %v3479_v11 = vor.u32 %v4099_v53, %v3476_v7  ;;  %v3554_v35 = vld [vmem:[%s5546_s7 + $0xb8] sm:$0xf]  ;;  %v4134_v53 = vld [vmem:[%s5548_s9 + $0x40] sm:$0xff] }
 0x3da   : > { %v3516_v32 = vld [vmem:[%s5546_s7 + $0xd0] sm:$0xf0]  ;;  %v4142_v7 = vld [vmem:[%s5548_s9 + $0x80] sm:$0xff] }
 0x3e4   : > { %v736_v15 = vpop.permute.xlu1 %735 }
 0x3e5   : > { %739 = vst.msk [vmem:[#allocation3] sm:$0x3] %vm738_vm9, %v736_v15  ;;  %v3522_v15 = vld [vmem:[%s5546_s7 + $0x98] sm:$0xf] }
 0x3e6   : > { %v926_v55 = vpop.permute.xlu0 %925 }
 0x3f4   : > { %v861_v29 = vpop.permute.xlu1 %860 }
 0x3f5   : > { %863 = vst.msk [vmem:[#allocation3 + $0x2] sm:$0x3] %vm606_vm7, %v861_v29  ;;  %v4121_v29 = vld [vmem:[%s5546_s7 + $0xd4] sm:$0xf0] }
 0x3f6   : > { %928 = vst.msk [vmem:[#allocation3 + $0x2] sm:$0x3] %vm672_vm8, %v926_v55  ;;  %v3519_v55 = vor.u32 %v4112_v33, %v3516_v32  ;;  %v4116_v33 = vld [vmem:[%s5546_s7 + $0xb4] sm:$0xf]  ;;  %v4125_v32 = vld [vmem:[%s5546_s7 + $0xf4] sm:$0xf0] }
 0x3f8   : > { %1883 = vmatpush.bf16.msrb.mxu3 %v3519_v55  ;;  %v3547_v55 = vor.u32 %v4124_v12, %v3546_v25  ;;  %v4172_v25 = vld [vmem:[%s5548_s9 + $0x170] sm:$0xff] }
 0x3f9   : > { %v4180_v12 = vld [vmem:[%s5548_s9 + $0x1b0] sm:$0xff] }
 0x3fc   : > { %v1115_v18 = vpop.permute.xlu2 %1114 }
 0x3fd   : > { %1117 = vst.msk [vmem:[#allocation3 + $0x4] sm:$0x3] %vm606_vm7, %v1115_v18  ;;  %v3523_v18 = vor.u32 %v4121_v29, %v3522_v15  ;;  %v4117_v15 = vld [vmem:[%s5546_s7 + $0xbc] sm:$0xf] }
 0x3fe   : > { %v3556_v29 = vld [vmem:[%s5546_s7 + $0xf8] sm:$0xf0] }
 0x3ff   : > { %1896 = vmatpush.bf16.msra.mxu2 %v3523_v18 }
 0x404   : > { %v991_v16 = vpop.permute.xlu2 %990 }
 0x405   : > { %993 = vst.msk [vmem:[#allocation3 + $0x2] sm:$0x3] %vm738_vm9, %v991_v16  ;;  %v4113_v16 = vld [vmem:[%s5546_s7 + $0x9c] sm:$0xf] }
 0x406   : > { %v1180_v42 = vpop.permute.xlu1 %1179 }
 0x407   : > { %1182 = vst.msk [vmem:[#allocation3 + $0x4] sm:$0x3] %vm672_vm8, %v1180_v42  ;;  %v3524_v42 = vld [vmem:[%s5546_s7 + $0xd8] sm:$0xf0] }
 0x438   : > { %v1434_v58 = vpop.permute.xlu0 %1433 }
 0x440   : > { %v1369_v52 = vpop.permute.xlu0 %1368 }
 0x441   : > { %1371 = vst.msk [vmem:[#allocation3 + $0x6] sm:$0x3] %vm606_vm7, %v1369_v52  ;;  %v4104_v52 = vld [vmem:[%s5546_s7 + $0x4c] sm:$0xf0] }
 0x442   : > { %1436 = vst.msk [vmem:[#allocation3 + $0x6] sm:$0x3] %vm672_vm8, %v1434_v58  ;;  %v3527_v58 = vor.u32 %v4113_v16, %v3524_v42  ;;  %v3482_v16 = vld [vmem:[%s5546_s7 + $0x30] sm:$0xf] }
 0x443   : > { %v4108_v42 = vld [vmem:[%s5546_s7 + $0x6c] sm:$0xf0] }
 0x444   : > { %v1499_v4 = vpop.permute.xlu1 %1498 }
 0x445   : > { %1501 = vst.msk [vmem:[#allocation3 + $0x6] sm:$0x3] %vm738_vm9, %v1499_v4  ;;  %v4096_v4 = vld [vmem:[%s5546_s7 + $0x14] sm:$0xf] }
 0x448   : > { %v1245_v45 = vpop.permute.xlu0 %1244 }
 0x449   : > { %1247 = vst.msk [vmem:[#allocation3 + $0x4] sm:$0x3] %vm738_vm9, %v1245_v45  ;;  %v3451_v45 = vor.u32 %v4104_v52, %v3450_v0  ;;  %v3555_v0 = vor.u32 %v4125_v32, %v3554_v35  ;;  %v3484_v52 = vld [vmem:[%s5546_s7 + $0x70] sm:$0xf0]  ;;  %v4171_v35 = vld [vmem:[%s5548_s9 + $0x168] sm:$0xff] }
 0x44a   : > { %v4179_v32 = vld [vmem:[%s5548_s9 + $0x1a8] sm:$0xff] }
 0x44b   : > { %1871 = vmatpush.bf16.msrb.mxu1 %v3451_v45  ;;  %v4109_v45 = vld [vmem:[%s5546_s7 + $0x74] sm:$0xf0] }
 0x450   : > { %v1502_v24 = vld [vmem:[#allocation3] sm:$0xff] }
 0x451   : > { %v1503_v26 = vpack.c.bf16 %v1502_v24, %v1502_v24  ;;  %v3452_v24 = vld [vmem:[%s5546_s7 + $0x50] sm:$0xf0] }
 0x453   : > { %3431 = vmatmul.msk.bf16.vlgmr.msra.gmra.mxu0 %vm459_vm0, %v1503_v26  ;;  %v3458_v26 = vld [vmem:[%s5546_s7 + $0x18] sm:$0xf] }
 0x454   : > { %1909 = vmatpush.bf16.msra.mxu0 %v3527_v58  ;;  %v4100_v58 = vld [vmem:[%s5546_s7 + $0x34] sm:$0xf] }
 0x4d0   : > { %v1536_v27 = vpop.f32.mrf.mxu0 }
 0x4d1   : > { %v1537_v61 = vadd.f32 %v4278_v47, %v1536_v27  ;;  %v4105_v47 = vld [vmem:[%s5546_s7 + $0x54] sm:$0xf0]  ;;  %v3455_v27 = vor.u32 %v4096_v4, %v3452_v24  ;;  %v4101_v24 = vld [vmem:[%s5546_s7 + $0x3c] sm:$0xf] }
 0x4d2   : > { %v3490_v4 = vld [vmem:[%s5546_s7 + $0x38] sm:$0xf] }
 0x4d3   : > { %v1540_v34 = vadd.f32 %v4354_v31, %v1537_v61  ;;  %v3459_v61 = vor.u32 %v4105_v47, %v3458_v26  ;;  %v4097_v31 = vld [vmem:[%s5546_s7 + $0x1c] sm:$0xf]  ;;  %1884 = vmatpush.bf16.msrb.mxu3 %v3455_v27  ;;  %v3483_v47 = vor.u32 %v4108_v42, %v3482_v16  ;;  %v3487_v27 = vor.u32 %v4100_v58, %v3484_v52 }
 0x4d4   : > { %v3492_v26 = vld [vmem:[%s5546_s7 + $0x78] sm:$0xf0] }
 0x4d5   : > { %v1543_v39 = vsel %vm459_vm0, %v1540_v34, 0.0  ;;  %1897 = vmatpush.bf16.msra.mxu2 %v3459_v61  ;;  %v3491_v61 = vor.u32 %v4109_v45, %v3490_v4  ;;  %v4161_v16 = vld [vmem:[%s5548_s9 + $0x118] sm:$0xff]  ;;  %v4159_v4 = vld [vmem:[%s5548_s9 + $0x108] sm:$0xff] }
 0x4d6   : > { %1544 = vadd.xlane.f32.xlu2 %v1543_v39  ;;  %v4185_v42 = vld [vmem:[%s5548_s9 + $0x1d8] sm:$0xff]  ;;  %v4183_v45 = vld [vmem:[%s5548_s9 + $0x1c8] sm:$0xff] }
 0x4d7   : > { %v4169_v58 = vld [vmem:[%s5548_s9 + $0x158] sm:$0xff] }
 0x4d8   : > { %v1538_v43 = vpop.f32.mrf.mxu0  ;;  %v4177_v52 = vld [vmem:[%s5548_s9 + $0x198] sm:$0xff] }
 0x549   : > { %v1545_v57 = vpop.xlane.xlu2 %1544 }
 0x54a   : > { %v1553_v13 = vmul.f32 %v4860_v17, %v1545_v57 }
 0x54c   : > { %v4863_v14 = vsub.f32 %v1540_v34, %v1553_v13  ;;  %v3460_v34 = vld [vmem:[%s5546_s7 + $0x58] sm:$0xf0]  ;;  %v4280_v13 = vld [vmem:[%s5545_s6] ss:$0 sm:$0xff] }
 0x54d   : > { %v3463_v39 = vor.u32 %v4097_v31, %v3460_v34  ;;  %v3495_v31 = vor.u32 %v4101_v24, %v3492_v26  ;;  %v4133_v34 = vld [vmem:[%s5548_s9 + $0x38] sm:$0xff]  ;;  %v4168_v24 = vld [vmem:[%s5548_s9 + $0x150] sm:$0xff] }
 0x54e   : > { %v1555_v48 = vmul.f32 %v4863_v14, %v4863_v14  ;;  %v4176_v26 = vld [vmem:[%s5548_s9 + $0x190] sm:$0xff] }
 0x54f   : > { %1910 = vmatpush.bf16.msra.mxu0 %v3463_v39  ;;  %v4157_v39 = vld [vmem:[%s5548_s9 + $0xf8] sm:$0xff] }
 0x550   : > { %v1556_v51 = vsel %vm459_vm0, %v1555_v48, 0.0 }
 0x551   : > { %1557 = vadd.xlane.f32.xlu0 %v1556_v51 }
 0x5c4   : > { %v1558_v9 = vpop.xlane.xlu0 %1557 }
 0x5c5   : > { %v1559_v41 = vmul.f32 %v1558_v9, %v4860_v17  ;;  %v3475_v9 = vor.u32 %v4107_v28, %v3474_v37  ;;  %v4165_v37 = vld [vmem:[%s5548_s9 + $0x138] sm:$0xff] }
 0x5c6   : > { %v4189_v28 = vld [vmem:[%s5548_s9 + $0x1f8] sm:$0xff] }
 0x5c7   : > { %v1560_v30 = vadd.f32 1e-05, %v1559_v41  ;;  %v3548_v41 = vld [vmem:[%s5546_s7 + $0xf0] sm:$0xf0] }
 0x5c8   : > { %v3551_v18 = vor.u32 %v4116_v33, %v3548_v41  ;;  %v4163_v33 = vld [vmem:[%s5548_s9 + $0x128] sm:$0xff] }
 0x5c9   : > { %4350 = vrsqrt.f32 %v1560_v30  ;;  %vm1567_vm12 = vweird.f32 %v1560_v30  ;;  %v4187_v41 = vld [vmem:[%s5548_s9 + $0x1e8] sm:$0xff] }
 0x5cf   : > { %v4351_v43 = vpop.eup %4350 }
 0x5d0   : > { %v1562_v44 = vmul.f32 %v4351_v43, %v1560_v30  ;;  %vm1568_vm11 = vweird.f32 %v4351_v43  ;;  %v3559_v30 = vor.u32 %v4117_v15, %v3556_v29  ;;  %v4162_v15 = vld [vmem:[%s5548_s9 + $0x120] sm:$0xff] }
 0x5d1   : > { %vm1569_vm13 = vmor %vm1567_vm12, %vm1568_vm11  ;;  %v4186_v29 = vld [vmem:[%s5548_s9 + $0x1e0] sm:$0xff] }
 0x5d2   : > { %v1563_v60 = vmul.f32 %v4351_v43, %v1562_v44  ;;  %v4149_v44 = vld [vmem:[%s5548_s9 + $0xb8] sm:$0xff] }
 0x5d4   : > { %v1564_v46 = vmul.f32 0.5, %v1563_v60  ;;  %v4132_v60 = vld [vmem:[%s5548_s9 + $0x30] sm:$0xff] }
 0x5d6   : > { %v1565_v2 = vsub.f32 1.5, %v1564_v46  ;;  %v4156_v46 = vld [vmem:[%s5548_s9 + $0xf0] sm:$0xff] }
 0x5d8   : > { %v1566_v22 = vmul.f32 %v4351_v43, %v1565_v2  ;;  %v4140_v2 = vld [vmem:[%s5548_s9 + $0x70] sm:$0xff] }
 0x5da   : > { %v1570_v57 = vsel %vm1569_vm13, %v4351_v43, %v1566_v22  ;;  %v4141_v43 = vld [vmem:[%s5548_s9 + $0x78] sm:$0xff]  ;;  %v4148_v22 = vld [vmem:[%s5548_s9 + $0xb0] sm:$0xff] }
 0x5db   : > { %v1571_v48 = vmul.f32 %v1570_v57, %v4863_v14  ;;  %v3538_v14 = vld [vmem:[%s5546_s7 + $0xa8] sm:$0xf] }
 0x5dc   : > { %v3539_v10 = vor.u32 %v4123_v20, %v3538_v14  ;;  %v4155_v57 = vld [vmem:[%s5548_s9 + $0xe8] sm:$0xff]  ;;  %v4153_v14 = vld [vmem:[%s5548_s9 + $0xd8] sm:$0xff] }
 0x5dd   : > { %v1575_v51 = vmul.f32 %v4279_v38, %v1571_v48  ;;  %v4131_v38 = vld [vmem:[%s5548_s9 + $0x28] sm:$0xff]  ;;  %v4137_v20 = vld [vmem:[%s5548_s9 + $0x58] sm:$0xff] }
 0x5de   : > { %v4147_v48 = vld [vmem:[%s5548_s9 + $0xa8] sm:$0xff] }
 0x5df   : > { %v4987_v56 = vadd.f32 %v4280_v13, %v1575_v51  ;;  %v4139_v13 = vld [vmem:[%s5548_s9 + $0x68] sm:$0xff]  ;;  %v4130_v51 = vld [vmem:[%s5548_s9 + $0x20] sm:$0xff] }
 0x5e1   : > { %v5000_v19 = vpack.c.bf16 %v4987_v56, %v4987_v56 }
 0x5e3   : > { %3560 = vmatmul.msk.bf16.vlgmr.msra.gmra.mxu1 %vm459_vm0, %v5000_v19  ;;  %3561 = vmatmul.msk.bf16.vlgmr.msra.gmra.mxu3 %vm459_vm0, %v5000_v19 }
 0x5e4   : > { %3562 = vmatmul.msk.bf16.vlgmr.msrb.gmra.mxu2 %vm459_vm0, %v5000_v19  ;;  %3563 = vmatmul.msk.bf16.vlgmr.msrb.gmra.mxu0 %vm459_vm0, %v5000_v19 }
 0x5e5   : > { %1922 = vmatpush.bf16.msra.mxu1 %v3531_v3  ;;  %1935 = vmatpush.bf16.msra.mxu3 %v3535_v59  ;;  %v4152_v3 = vld [vmem:[%s5548_s9 + $0xd0] sm:$0xff] }
 0x5e6   : > { %1948 = vmatpush.bf16.msrb.mxu2 %v3539_v10  ;;  %1961 = vmatpush.bf16.msrb.mxu0 %v3543_v1  ;;  %v4136_v59 = vld [vmem:[%s5548_s9 + $0x50] sm:$0xff]  ;;  %v4135_v10 = vld [vmem:[%s5548_s9 + $0x48] sm:$0xff] }
 0x5e7   : > { %v4143_v1 = vld [vmem:[%s5548_s9 + $0x88] sm:$0xff] }
 0x5e9   : > { %1923 = vmatpush.bf16.msra.mxu1 %v3467_v8  ;;  %1936 = vmatpush.bf16.msra.mxu3 %v3471_v21  ;;  %v4173_v8 = vld [vmem:[%s5548_s9 + $0x178] sm:$0xff] }
 0x5ea   : > { %1949 = vmatpush.bf16.msrb.mxu2 %v3475_v9  ;;  %1962 = vmatpush.bf16.msrb.mxu0 %v3479_v11  ;;  %v4181_v21 = vld [vmem:[%s5548_s9 + $0x1b8] sm:$0xff]  ;;  %v4164_v9 = vld [vmem:[%s5548_s9 + $0x130] sm:$0xff] }
 0x5eb   : > { %v4188_v11 = vld [vmem:[%s5548_s9 + $0x1f0] sm:$0xff] }
 0x5f3   : > { %3564 = vmatmul.msk.bf16.vlgmr.msrb.gmra.mxu1 %vm459_vm0, %v5000_v19  ;;  %3565 = vmatmul.msk.bf16.vlgmr.msrb.gmra.mxu3 %vm459_vm0, %v5000_v19 }
 0x5f4   : > { %3566 = vmatmul.msk.bf16.vlgmr.msra.gmra.mxu2 %vm459_vm0, %v5000_v19  ;;  %3567 = vmatmul.msk.bf16.vlgmr.msra.gmra.mxu0 %vm459_vm0, %v5000_v19 }
 0x5f5   : > { %1974 = vmatpush.bf16.msrb.mxu1 %v3547_v55  ;;  %1987 = vmatpush.bf16.msrb.mxu3 %v3551_v18  ;;  %v4170_v55 = vld [vmem:[%s5548_s9 + $0x160] sm:$0xff] }
 0x5f6   : > { %2000 = vmatpush.bf16.msra.mxu2 %v3555_v0  ;;  %2013 = vmatpush.bf16.msra.mxu0 %v3559_v30  ;;  %v4178_v18 = vld [vmem:[%s5548_s9 + $0x1a0] sm:$0xff]  ;;  %v4160_v0 = vld [vmem:[%s5548_s9 + $0x110] sm:$0xff] }
 0x5f7   : > { %v4184_v30 = vld [vmem:[%s5548_s9 + $0x1d0] sm:$0xff] }
 0x5f9   : > { %1975 = vmatpush.bf16.msrb.mxu1 %v3483_v47  ;;  %1988 = vmatpush.bf16.msrb.mxu3 %v3487_v27  ;;  %v4158_v47 = vld [vmem:[%s5548_s9 + $0x100] sm:$0xff] }
 0x5fa   : > { %2001 = vmatpush.bf16.msra.mxu2 %v3491_v61  ;;  %2014 = vmatpush.bf16.msra.mxu0 %v3495_v31  ;;  %v4182_v27 = vld [vmem:[%s5548_s9 + $0x1c0] sm:$0xff]  ;;  %v4167_v61 = vld [vmem:[%s5548_s9 + $0x148] sm:$0xff] }
 0x5fb   : > { %v4175_v31 = vld [vmem:[%s5548_s9 + $0x188] sm:$0xff] }
 0x603   : > { %3568 = vmatmul.msk.bf16.vlgmr.msra.gmra.mxu1 %vm459_vm0, %v5000_v19  ;;  %3569 = vmatmul.msk.bf16.vlgmr.msra.gmra.mxu3 %vm459_vm0, %v5000_v19 }
 0x604   : > { %3570 = vmatmul.msk.bf16.vlgmr.msrb.gmra.mxu2 %vm459_vm0, %v5000_v19  ;;  %3571 = vmatmul.msk.bf16.vlgmr.msrb.gmra.mxu0 %vm459_vm0, %v5000_v19 }
 0x605   : > { %3080 = vmatpush.bf16.msra.mxu1 %v4133_v34  ;;  %3119 = vmatpush.bf16.msrb.mxu0 %v4157_v39  ;;  %v4166_v34 = vld [vmem:[%s5548_s9 + $0x140] sm:$0xff] }
 0x606   : > { %3093 = vmatpush.bf16.msra.mxu3 %v4141_v43  ;;  %3106 = vmatpush.bf16.msrb.mxu2 %v4149_v44  ;;  %v4174_v39 = vld [vmem:[%s5548_s9 + $0x180] sm:$0xff] }
 0x607   : > { %v5301_v43 = vld [vmem:[%s5547_s8] sm:$0xff] }
 0x608   : > { %v1617_v44 = vperm.slane %v5301_v43, 0 }
 0x609   : > { %3081 = vmatpush.bf16.msra.mxu1 %v4132_v60  ;;  %3120 = vmatpush.bf16.msrb.mxu0 %v4156_v46  ;;  %v1620_v60 = vperm.slane %v5301_v43, 3 }
 0x60a   : > { %3094 = vmatpush.bf16.msra.mxu3 %v4140_v2  ;;  %3107 = vmatpush.bf16.msrb.mxu2 %v4148_v22 }
 0x60d   : > { %3082 = vmatpush.bf16.msra.mxu1 %v4131_v38  ;;  %3121 = vmatpush.bf16.msrb.mxu0 %v4155_v57 }
 0x60e   : > { %3095 = vmatpush.bf16.msra.mxu3 %v4139_v13  ;;  %3108 = vmatpush.bf16.msrb.mxu2 %v4147_v48  ;;  %v1618_v13 = vperm.slane %v5301_v43, 1 }
 0x611   : > { %3083 = vmatpush.bf16.msra.mxu1 %v4130_v51  ;;  %3122 = vmatpush.bf16.msrb.mxu0 %v4154_v54  ;;  %v1619_v51 = vperm.slane %v5301_v43, 2  ;;  %v4197_v54 = vld [vmem:[%s5548_s9 + $0x238] sm:$0xff] }
 0x612   : > { %3096 = vmatpush.bf16.msra.mxu3 %v4138_v5  ;;  %3109 = vmatpush.bf16.msrb.mxu2 %v4146_v40  ;;  %v4221_v40 = vld [vmem:[%s5548_s9 + $0x2f8] sm:$0xff] }
 0x613   : > { %3572 = vmatmul.msk.bf16.vlgmr.msrb.gmra.mxu1 %vm459_vm0, %v5000_v19  ;;  %3573 = vmatmul.msk.bf16.vlgmr.msrb.gmra.mxu3 %vm459_vm0, %v5000_v19 }
 0x614   : > { %3574 = vmatmul.msk.bf16.vlgmr.msra.gmra.mxu2 %vm459_vm0, %v5000_v19  ;;  %3575 = vmatmul.msk.bf16.vlgmr.msra.gmra.mxu0 %vm459_vm0, %v5000_v19  ;;  %v4144_v19 = vld [vmem:[%s5548_s9 + $0x90] sm:$0xff] }
 0x615   : > { %3084 = vmatpush.bf16.msra.mxu1 %v4129_v23  ;;  %3123 = vmatpush.bf16.msrb.mxu0 %v4153_v14 }
 0x616   : > { %3097 = vmatpush.bf16.msra.mxu3 %v4137_v20  ;;  %3110 = vmatpush.bf16.msrb.mxu2 %v4145_v49 }
 0x619   : > { %3085 = vmatpush.bf16.msra.mxu1 %v4128_v36  ;;  %3124 = vmatpush.bf16.msrb.mxu0 %v4152_v3 }
 0x61a   : > { %3098 = vmatpush.bf16.msra.mxu3 %v4136_v59  ;;  %3111 = vmatpush.bf16.msrb.mxu2 %v4144_v19  ;;  %v4196_v59 = vld [vmem:[%s5548_s9 + $0x230] sm:$0xff] }
 0x61d   : > { %3086 = vmatpush.bf16.msra.mxu1 %v4127_v62  ;;  %3125 = vmatpush.bf16.msrb.mxu0 %v4151_v63  ;;  %v4220_v63 = vld [vmem:[%s5548_s9 + $0x2f0] sm:$0xff] }
 0x61e   : > { %3099 = vmatpush.bf16.msra.mxu3 %v4135_v10  ;;  %3112 = vmatpush.bf16.msrb.mxu2 %v4143_v1  ;;  %v4205_v1 = vld [vmem:[%s5548_s9 + $0x278] sm:$0xff] }
 0x621   : > { %3087 = vmatpush.bf16.msra.mxu1 %v4126_v6  ;;  %3126 = vmatpush.bf16.msrb.mxu0 %v4150_v50  ;;  %v4213_v50 = vld [vmem:[%s5548_s9 + $0x2b8] sm:$0xff] }
 0x622   : > { %3100 = vmatpush.bf16.msra.mxu3 %v4134_v53  ;;  %3113 = vmatpush.bf16.msrb.mxu2 %v4142_v7  ;;  %v4219_v53 = vld [vmem:[%s5548_s9 + $0x2e8] sm:$0xff]  ;;  %v1621_v7 = vperm.slane %v5301_v43, 4 }
 0x625   : > { %3132 = vmatpush.bf16.msrb.mxu1 %v4165_v37  ;;  %3171 = vmatpush.bf16.msra.mxu0 %v4189_v28  ;;  %v4195_v28 = vld [vmem:[%s5548_s9 + $0x228] sm:$0xff] }
 0x626   : > { %3145 = vmatpush.bf16.msrb.mxu3 %v4173_v8  ;;  %3158 = vmatpush.bf16.msra.mxu2 %v4181_v21  ;;  %v1624_v21 = vperm.slane %v5301_v43, 7 }
 0x629   : > { %3133 = vmatpush.bf16.msrb.mxu1 %v4164_v9  ;;  %3172 = vmatpush.bf16.msra.mxu0 %v4188_v11  ;;  %v4204_v9 = vld [vmem:[%s5548_s9 + $0x270] sm:$0xff] }
 0x62a   : > { %3146 = vmatpush.bf16.msrb.mxu3 %v4172_v25  ;;  %3159 = vmatpush.bf16.msra.mxu2 %v4180_v12  ;;  %v4212_v25 = vld [vmem:[%s5548_s9 + $0x2b0] sm:$0xff] }
 0x62d   : > { %3134 = vmatpush.bf16.msrb.mxu1 %v4163_v33  ;;  %3173 = vmatpush.bf16.msra.mxu0 %v4187_v41  ;;  %v4194_v33 = vld [vmem:[%s5548_s9 + $0x220] sm:$0xff] }
 0x62e   : > { %3147 = vmatpush.bf16.msrb.mxu3 %v4171_v35  ;;  %3160 = vmatpush.bf16.msra.mxu2 %v4179_v32  ;;  %v4218_v32 = vld [vmem:[%s5548_s9 + $0x2e0] sm:$0xff] }
 0x631   : > { %3135 = vmatpush.bf16.msrb.mxu1 %v4162_v15  ;;  %3174 = vmatpush.bf16.msra.mxu0 %v4186_v29  ;;  %v4203_v29 = vld [vmem:[%s5548_s9 + $0x268] sm:$0xff] }
 0x632   : > { %3148 = vmatpush.bf16.msrb.mxu3 %v4170_v55  ;;  %3161 = vmatpush.bf16.msra.mxu2 %v4178_v18  ;;  %v4211_v18 = vld [vmem:[%s5548_s9 + $0x2a8] sm:$0xff] }
 0x635   : > { %3136 = vmatpush.bf16.msrb.mxu1 %v4161_v16  ;;  %3175 = vmatpush.bf16.msra.mxu0 %v4185_v42  ;;  %v1622_v16 = vperm.slane %v5301_v43, 5 }
 0x636   : > { %3149 = vmatpush.bf16.msrb.mxu3 %v4169_v58  ;;  %3162 = vmatpush.bf16.msra.mxu2 %v4177_v52  ;;  %v4217_v52 = vld [vmem:[%s5548_s9 + $0x2d8] sm:$0xff] }
 0x639   : > { %3137 = vmatpush.bf16.msrb.mxu1 %v4160_v0  ;;  %3176 = vmatpush.bf16.msra.mxu0 %v4184_v30  ;;  %v1623_v0 = vperm.slane %v5301_v43, 6  ;;  %v4193_v30 = vld [vmem:[%s5548_s9 + $0x218] sm:$0xff] }
 0x63a   : > { %3150 = vmatpush.bf16.msrb.mxu3 %v4168_v24  ;;  %3163 = vmatpush.bf16.msra.mxu2 %v4176_v26  ;;  %v4202_v24 = vld [vmem:[%s5548_s9 + $0x260] sm:$0xff] }
 0x63d   : > { %3138 = vmatpush.bf16.msrb.mxu1 %v4159_v4  ;;  %3177 = vmatpush.bf16.msra.mxu0 %v4183_v45 }
 0x63e   : > { %3151 = vmatpush.bf16.msrb.mxu3 %v4167_v61  ;;  %3164 = vmatpush.bf16.msra.mxu2 %v4175_v31 }
 0x641   : > { %3139 = vmatpush.bf16.msrb.mxu1 %v4158_v47  ;;  %3178 = vmatpush.bf16.msra.mxu0 %v4182_v27  ;;  %v4210_v27 = vld [vmem:[%s5548_s9 + $0x2a0] sm:$0xff] }
 0x642   : > { %3152 = vmatpush.bf16.msrb.mxu3 %v4166_v34  ;;  %3165 = vmatpush.bf16.msra.mxu2 %v4174_v39  ;;  %v4192_v34 = vld [vmem:[%s5548_s9 + $0x210] sm:$0xff] }
 0x660   : > { %v1821_v46 = vpop.f32.mrf.mxu1 }
 0x661   : > { %v1822_v2 = vadd.f32 %v1821_v46, %v1617_v44  ;;  %v1860_v22 = vpop.f32.mrf.mxu0  ;;  %v4216_v44 = vld [vmem:[%s5548_s9 + $0x2d0] sm:$0xff]  ;;  %v4201_v46 = vld [vmem:[%s5548_s9 + $0x258] sm:$0xff] }
 0x662   : > { %v1861_v38 = vadd.f32 %v1860_v22, %v1620_v60 }
 0x663   : > { %v2020_v57 = vmax.f32 %v1822_v2, 0.0  ;;  %v5377_v2 = vld [vmem:[%s5547_s8 + $0x8] sm:$0xff] }
 0x664   : > { %v2023_v48 = vmax.f32 %v1861_v38, 0.0  ;;  %v4209_v38 = vld [vmem:[%s5548_s9 + $0x298] sm:$0xff] }
 0x665   : > { %v2036_v5 = vpack.c.bf16 %v2020_v57, %v2020_v57 }
 0x666   : > { %v2039_v23 = vpack.c.bf16 %v2023_v48, %v2023_v48  ;;  %v1834_v14 = vpop.f32.mrf.mxu3  ;;  %v4215_v48 = vld [vmem:[%s5548_s9 + $0x2c8] sm:$0xff] }
 0x667   : > { %v1835_v20 = vadd.f32 %v1834_v14, %v1618_v13  ;;  %v1847_v49 = vpop.f32.mrf.mxu2  ;;  %3088 = vmatmul.bf16.vlgmr.msra.gmra.mxu1 %v2036_v5  ;;  %v4191_v13 = vld [vmem:[%s5548_s9 + $0x208] sm:$0xff]  ;;  %v1628_v5 = vperm.slane %v5377_v2, 3  ;;  %v4208_v14 = vld [vmem:[%s5548_s9 + $0x290] sm:$0xff] }
 0x668   : > { %v1848_v36 = vadd.f32 %v1847_v49, %v1619_v51  ;;  %3127 = vmatmul.bf16.vlgmr.msrb.gmra.mxu0 %v2039_v23  ;;  %3184 = vmatpush.bf16.msra.mxu1 %v4197_v54  ;;  %v1823_v3 = vpop.f32.mrf.mxu1  ;;  %v1625_v51 = vperm.slane %v5377_v2, 0  ;;  %v4190_v49 = vld [vmem:[%s5548_s9 + $0x200] sm:$0xff] }
 0x669   : > { %v2021_v19 = vmax.f32 %v1835_v20, 0.0  ;;  %3223 = vmatpush.bf16.msrb.mxu0 %v4221_v40  ;;  %v1862_v62 = vpop.f32.mrf.mxu0  ;;  %v4200_v40 = vld [vmem:[%s5548_s9 + $0x250] sm:$0xff] }
 0x66a   : > { %v2022_v10 = vmax.f32 %v1848_v36, 0.0 }
 0x66b   : > { %v2037_v6 = vpack.c.bf16 %v2021_v19, %v2021_v19  ;;  %v4229_v19 = vld [vmem:[%s5548_s9 + $0x338] sm:$0xff] }
 0x66c   : > { %v2038_v37 = vpack.c.bf16 %v2022_v10, %v2022_v10  ;;  %3185 = vmatpush.bf16.msra.mxu1 %v4196_v59  ;;  %v4214_v59 = vld [vmem:[%s5548_s9 + $0x2c0] sm:$0xff]  ;;  %v4199_v10 = vld [vmem:[%s5548_s9 + $0x248] sm:$0xff] }
 0x66d   : > { %3224 = vmatpush.bf16.msrb.mxu0 %v4220_v63  ;;  %3101 = vmatmul.bf16.vlgmr.msra.gmra.mxu3 %v2037_v6  ;;  %v4253_v63 = vld [vmem:[%s5548_s9 + $0x3f8] sm:$0xff]  ;;  %v4207_v6 = vld [vmem:[%s5548_s9 + $0x288] sm:$0xff] }
 0x66e   : > { %3114 = vmatmul.bf16.vlgmr.msrb.gmra.mxu2 %v2038_v37  ;;  %3197 = vmatpush.bf16.msra.mxu3 %v4205_v1  ;;  %v1836_v8 = vpop.f32.mrf.mxu3 }
 0x66f   : > { %3210 = vmatpush.bf16.msrb.mxu2 %v4213_v50  ;;  %v1849_v11 = vpop.f32.mrf.mxu2  ;;  %v1626_v50 = vperm.slane %v5377_v2, 1 }
 0x670   : > { %3186 = vmatpush.bf16.msra.mxu1 %v4195_v28  ;;  %v1873_v12 = vpop.f32.mrf.mxu1  ;;  %v1627_v28 = vperm.slane %v5377_v2, 2  ;;  %v4198_v11 = vld [vmem:[%s5548_s9 + $0x240] sm:$0xff] }
 0x671   : > { %3225 = vmatpush.bf16.msrb.mxu0 %v4219_v53  ;;  %v1874_v41 = vadd.f32 %v1873_v12, %v1621_v7  ;;  %v1912_v35 = vpop.f32.mrf.mxu0  ;;  %v4228_v7 = vld [vmem:[%s5548_s9 + $0x330] sm:$0xff] }
 0x672   : > { %v1913_v15 = vadd.f32 %v1912_v35, %v1624_v21  ;;  %3198 = vmatpush.bf16.msra.mxu3 %v4204_v9  ;;  %v4252_v9 = vld [vmem:[%s5548_s9 + $0x3f0] sm:$0xff] }
 0x673   : > { %v2024_v55 = vmax.f32 %v1874_v41, 0.0  ;;  %3211 = vmatpush.bf16.msrb.mxu2 %v4212_v25  ;;  %v4237_v41 = vld [vmem:[%s5548_s9 + $0x378] sm:$0xff] }
 0x674   : > { %v2027_v42 = vmax.f32 %v1913_v15, 0.0  ;;  %3187 = vmatpush.bf16.msra.mxu1 %v4194_v33  ;;  %v4206_v33 = vld [vmem:[%s5548_s9 + $0x280] sm:$0xff]  ;;  %v4245_v15 = vld [vmem:[%s5548_s9 + $0x3b8] sm:$0xff] }
 0x675   : > { %v2040_v58 = vpack.c.bf16 %v2024_v55, %v2024_v55  ;;  %3226 = vmatpush.bf16.msrb.mxu0 %v4218_v32 }
 0x676   : > { %v2043_v4 = vpack.c.bf16 %v2027_v42, %v2027_v42  ;;  %3199 = vmatpush.bf16.msra.mxu3 %v4203_v29  ;;  %v1886_v45 = vpop.f32.mrf.mxu3  ;;  %v4251_v42 = vld [vmem:[%s5548_s9 + $0x3e8] sm:$0xff] }
 0x677   : > { %3212 = vmatpush.bf16.msrb.mxu2 %v4211_v18  ;;  %v1887_v26 = vadd.f32 %v1886_v45, %v1622_v16  ;;  %v1899_v47 = vpop.f32.mrf.mxu2  ;;  %3140 = vmatmul.bf16.vlgmr.msrb.gmra.mxu1 %v2040_v58  ;;  %v4227_v18 = vld [vmem:[%s5548_s9 + $0x328] sm:$0xff] }
 0x678   : > { %v1900_v61 = vadd.f32 %v1899_v47, %v1623_v0  ;;  %3179 = vmatmul.bf16.vlgmr.msra.gmra.mxu0 %v2043_v4  ;;  %3188 = vmatpush.bf16.msra.mxu1 %v4193_v30  ;;  %v1875_v31 = vpop.f32.mrf.mxu1  ;;  %v4236_v30 = vld [vmem:[%s5548_s9 + $0x370] sm:$0xff]  ;;  %v4226_v4 = vld [vmem:[%s5548_s9 + $0x320] sm:$0xff]  ;;  %v4235_v47 = vld [vmem:[%s5548_s9 + $0x368] sm:$0xff] }
 0x679   : > { %v2025_v39 = vmax.f32 %v1887_v26, 0.0  ;;  %3227 = vmatpush.bf16.msrb.mxu0 %v4217_v52  ;;  %v1914_v43 = vpop.f32.mrf.mxu0  ;;  %v4244_v52 = vld [vmem:[%s5548_s9 + $0x3b0] sm:$0xff] }
 0x67a   : > { %v2026_v60 = vmax.f32 %v1900_v61, 0.0  ;;  %3200 = vmatpush.bf16.msra.mxu3 %v4202_v24  ;;  %v4250_v24 = vld [vmem:[%s5548_s9 + $0x3e0] sm:$0xff]  ;;  %v4243_v61 = vld [vmem:[%s5548_s9 + $0x3a8] sm:$0xff] }
 0x67b   : > { %v2041_v22 = vpack.c.bf16 %v2025_v39, %v2025_v39  ;;  %3213 = vmatpush.bf16.msrb.mxu2 %v4210_v27  ;;  %v4249_v39 = vld [vmem:[%s5548_s9 + $0x3d8] sm:$0xff]  ;;  %v4234_v43 = vld [vmem:[%s5548_s9 + $0x360] sm:$0xff] }
 0x67c   : > { %v2042_v57 = vpack.c.bf16 %v2026_v60, %v2026_v60  ;;  %3189 = vmatpush.bf16.msra.mxu1 %v4192_v34  ;;  %v4225_v34 = vld [vmem:[%s5548_s9 + $0x318] sm:$0xff]  ;;  %v4224_v60 = vld [vmem:[%s5548_s9 + $0x310] sm:$0xff] }
 0x67d   : > { %3228 = vmatpush.bf16.msrb.mxu0 %v4216_v44  ;;  %3153 = vmatmul.bf16.vlgmr.msrb.gmra.mxu3 %v2041_v22  ;;  %v4242_v44 = vld [vmem:[%s5548_s9 + $0x3a0] sm:$0xff] }
 0x67e   : > { %3166 = vmatmul.bf16.vlgmr.msra.gmra.mxu2 %v2042_v57  ;;  %3201 = vmatpush.bf16.msra.mxu3 %v4201_v46  ;;  %v1888_v54 = vpop.f32.mrf.mxu3  ;;  %v1629_v46 = vperm.slane %v5377_v2, 4  ;;  %v1632_v57 = vperm.slane %v5377_v2, 7 }
 0x67f   : > { %3214 = vmatpush.bf16.msrb.mxu2 %v4209_v38  ;;  %v1901_v23 = vpop.f32.mrf.mxu2  ;;  %v4248_v38 = vld [vmem:[%s5548_s9 + $0x3d0] sm:$0xff]  ;;  %v4241_v54 = vld [vmem:[%s5548_s9 + $0x398] sm:$0xff] }
 0x680   : > { %3190 = vmatpush.bf16.msra.mxu1 %v4191_v13  ;;  %v1925_v20 = vpop.f32.mrf.mxu1 }
 0x681   : > { %3229 = vmatpush.bf16.msrb.mxu0 %v4215_v48  ;;  %v1926_v36 = vadd.f32 %v1925_v20, %v1625_v51  ;;  %v1964_v3 = vpop.f32.mrf.mxu0  ;;  %v4233_v48 = vld [vmem:[%s5548_s9 + $0x358] sm:$0xff] }
 0x682   : > { %v1965_v62 = vadd.f32 %v1964_v3, %v1628_v5  ;;  %3202 = vmatpush.bf16.msra.mxu3 %v4200_v40  ;;  %v4223_v40 = vld [vmem:[%s5548_s9 + $0x308] sm:$0xff]  ;;  %v4240_v3 = vld [vmem:[%s5548_s9 + $0x390] sm:$0xff] }
 0x683   : > { %v2028_v1 = vmax.f32 %v1926_v36, 0.0  ;;  %3215 = vmatpush.bf16.msrb.mxu2 %v4208_v14  ;;  %v4247_v14 = vld [vmem:[%s5548_s9 + $0x3c8] sm:$0xff]  ;;  %v1630_v36 = vperm.slane %v5377_v2, 5 }
 0x684   : > { %v2031_v37 = vmax.f32 %v1965_v62, 0.0  ;;  %3191 = vmatpush.bf16.msra.mxu1 %v4190_v49  ;;  %v4232_v49 = vld [vmem:[%s5548_s9 + $0x350] sm:$0xff] }
 0x685   : > { %v2044_v53 = vpack.c.bf16 %v2028_v1, %v2028_v1  ;;  %3230 = vmatpush.bf16.msrb.mxu0 %v4214_v59  ;;  %v1631_v59 = vperm.slane %v5377_v2, 6 }
 0x686   : > { %v2047_v8 = vpack.c.bf16 %v2031_v37, %v2031_v37  ;;  %3203 = vmatpush.bf16.msra.mxu3 %v4199_v10  ;;  %v1938_v21 = vpop.f32.mrf.mxu3  ;;  %v4246_v10 = vld [vmem:[%s5548_s9 + $0x3c0] sm:$0xff]  ;;  %v4239_v37 = vld [vmem:[%s5548_s9 + $0x388] sm:$0xff] }
 0x687   : > { %3216 = vmatpush.bf16.msrb.mxu2 %v4207_v6  ;;  %v1939_v25 = vadd.f32 %v1938_v21, %v1626_v50  ;;  %v1951_v12 = vpop.f32.mrf.mxu2  ;;  %3192 = vmatmul.bf16.vlgmr.msra.gmra.mxu1 %v2044_v53  ;;  %v4231_v50 = vld [vmem:[%s5548_s9 + $0x348] sm:$0xff] }
 0x688   : > { %3236 = vmatpush.bf16.msrb.mxu1 %v4229_v19  ;;  %v1952_v35 = vadd.f32 %v1951_v12, %v1627_v28  ;;  %3231 = vmatmul.bf16.vlgmr.msrb.gmra.mxu0 %v2047_v8  ;;  %v1927_v32 = vpop.f32.mrf.mxu1  ;;  %v4222_v19 = vld [vmem:[%s5548_s9 + $0x300] sm:$0xff] }
 0x689   : > { %3275 = vmatpush.bf16.msra.mxu0 %v4253_v63  ;;  %v2029_v29 = vmax.f32 %v1939_v25, 0.0  ;;  %v1966_v55 = vpop.f32.mrf.mxu0  ;;  %v4230_v8 = vld [vmem:[%s5548_s9 + $0x340] sm:$0xff] }
 0x68a   : > { %v2030_v16 = vmax.f32 %v1952_v35, 0.0  ;;  %3204 = vmatpush.bf16.msra.mxu3 %v4198_v11 }
 0x68b   : > { %v2045_v0 = vpack.c.bf16 %v2029_v29, %v2029_v29  ;;  %3217 = vmatpush.bf16.msrb.mxu2 %v4206_v33 }
 0x68c   : > { %3237 = vmatpush.bf16.msrb.mxu1 %v4228_v7  ;;  %v2046_v58 = vpack.c.bf16 %v2030_v16, %v2030_v16 }
 0x68d   : > { %3276 = vmatpush.bf16.msra.mxu0 %v4252_v9  ;;  %3205 = vmatmul.bf16.vlgmr.msra.gmra.mxu3 %v2045_v0  ;;  %v4238_v9 = vld [vmem:[%s5548_s9 + $0x380] sm:$0xff] }
 0x68e   : > { %3249 = vmatpush.bf16.msrb.mxu3 %v4237_v41  ;;  %3218 = vmatmul.bf16.vlgmr.msrb.gmra.mxu2 %v2046_v58  ;;  %v1940_v45 = vpop.f32.mrf.mxu3  ;;  %v4281_v58 = vld [vmem:[%s5549_s10] ss:$0 sm:$0xff] }
 0x68f   : > { %3262 = vmatpush.bf16.msra.mxu2 %v4245_v15  ;;  %v1953_v26 = vpop.f32.mrf.mxu2 }
 0x690   : > { %3238 = vmatpush.bf16.msrb.mxu1 %v4227_v18  ;;  %v1977_v27 = vpop.f32.mrf.mxu1 }
 0x691   : > { %3277 = vmatpush.bf16.msra.mxu0 %v4251_v42  ;;  %v2016_v31 = vpop.f32.mrf.mxu0  ;;  %v1978_v23 = vadd.f32 %v1977_v27, %v1629_v46 }
 0x692   : > { %3250 = vmatpush.bf16.msrb.mxu3 %v4236_v30  ;;  %v2017_v20 = vadd.f32 %v2016_v31, %v1632_v57 }
 0x693   : > { %3263 = vmatpush.bf16.msra.mxu2 %v4244_v52  ;;  %v2032_v62 = vmax.f32 %v1978_v23, 0.0 }
 0x694   : > { %3239 = vmatpush.bf16.msrb.mxu1 %v4226_v4  ;;  %v2035_v1 = vmax.f32 %v2017_v20, 0.0 }
 0x695   : > { %3278 = vmatpush.bf16.msra.mxu0 %v4250_v24  ;;  %v2048_v53 = vpack.c.bf16 %v2032_v62, %v2032_v62 }
 0x696   : > { %3251 = vmatpush.bf16.msrb.mxu3 %v4235_v47  ;;  %v1990_v22 = vpop.f32.mrf.mxu3  ;;  %v2051_v7 = vpack.c.bf16 %v2035_v1, %v2035_v1 }
 0x697   : > { %3264 = vmatpush.bf16.msra.mxu2 %v4243_v61  ;;  %v2003_v13 = vpop.f32.mrf.mxu2  ;;  %v1991_v2 = vadd.f32 %v1990_v22, %v1630_v36 }
 0x698   : > { %3240 = vmatpush.bf16.msrb.mxu1 %v4225_v34  ;;  %v1979_v51 = vpop.f32.mrf.mxu1  ;;  %v2004_v28 = vadd.f32 %v2003_v13, %v1631_v59 }
 0x699   : > { %3279 = vmatpush.bf16.msra.mxu0 %v4249_v39  ;;  %v2018_v5 = vpop.f32.mrf.mxu0  ;;  %v2033_v21 = vmax.f32 %v1991_v2, 0.0 }
 0x69a   : > { %3252 = vmatpush.bf16.msrb.mxu3 %v4234_v43  ;;  %v2034_v11 = vmax.f32 %v2004_v28, 0.0 }
 0x69b   : > { %3265 = vmatpush.bf16.msra.mxu2 %v4242_v44  ;;  %v2049_v25 = vpack.c.bf16 %v2033_v21, %v2033_v21 }
 0x69c   : > { %3241 = vmatpush.bf16.msrb.mxu1 %v4224_v60  ;;  %v2050_v12 = vpack.c.bf16 %v2034_v11, %v2034_v11 }
 0x69d   : > { %3280 = vmatpush.bf16.msra.mxu0 %v4248_v38 }
 0x69e   : > { %3253 = vmatpush.bf16.msrb.mxu3 %v4233_v48  ;;  %v1992_v63 = vpop.f32.mrf.mxu3 }
 0x69f   : > { %3266 = vmatpush.bf16.msra.mxu2 %v4241_v54  ;;  %v2005_v6 = vpop.f32.mrf.mxu2 }
 0x6a0   : > { %3242 = vmatpush.bf16.msrb.mxu1 %v4223_v40 }
 0x6a1   : > { %3281 = vmatpush.bf16.msra.mxu0 %v4247_v14 }
 0x6a2   : > { %3254 = vmatpush.bf16.msrb.mxu3 %v4232_v49 }
 0x6a3   : > { %3267 = vmatpush.bf16.msra.mxu2 %v4240_v3 }
 0x6a4   : > { %3243 = vmatpush.bf16.msrb.mxu1 %v4222_v19 }
 0x6a5   : > { %3282 = vmatpush.bf16.msra.mxu0 %v4246_v10 }
 0x6a6   : > { %3255 = vmatpush.bf16.msrb.mxu3 %v4231_v50 }
 0x6a7   : > { %3268 = vmatpush.bf16.msra.mxu2 %v4239_v37  ;;  %3244 = vmatmul.bf16.vlgmr.msrb.gmra.mxu1 %v2048_v53 }
 0x6a8   : > { %3283 = vmatmul.bf16.vlgmr.msra.gmra.mxu0 %v2051_v7 }
 0x6aa   : > { %3256 = vmatpush.bf16.msrb.mxu3 %v4230_v8 }
 0x6ab   : > { %3269 = vmatpush.bf16.msra.mxu2 %v4238_v9 }
 0x6ad   : > { %3257 = vmatmul.bf16.vlgmr.msrb.gmra.mxu3 %v2049_v25 }
 0x6ae   : > { %3270 = vmatmul.bf16.vlgmr.msra.gmra.mxu2 %v2050_v12 }
 0x6e4   : > { %v3089_v33 = vpop.f32.mrf.mxu1 }
 0x6e5   : > { %v3128_v41 = vpop.f32.mrf.mxu0  ;;  %v3090_v45 = vadd.f32 %v4281_v58, %v3089_v33 }
 0x6ec   : > { %v3091_v35 = vpop.f32.mrf.mxu1 }
 0x6ed   : > { %v3130_v32 = vpop.f32.mrf.mxu0  ;;  %v4282_v35 = vld [vmem:[%s5550_s11] ss:$0 sm:$0xff] }
 0x6f0   : > { %v3102_v15 = vpop.f32.mrf.mxu3 }
 0x6f1   : > { %v3115_v29 = vpop.f32.mrf.mxu2  ;;  %v3103_v47 = vadd.f32 %v3102_v15, %v3090_v45 }
 0x6f3   : > { %v3116_v31 = vadd.f32 %v3115_v29, %v3103_v47 }
 0x6f4   : > { %v3141_v55 = vpop.f32.mrf.mxu1 }
 0x6f5   : > { %v3180_v18 = vpop.f32.mrf.mxu0  ;;  %v3129_v43 = vadd.f32 %v3128_v41, %v3116_v31 }
 0x6f7   : > { %v3142_v46 = vadd.f32 %v3141_v55, %v3129_v43 }
 0x6f8   : > { %v3104_v16 = vpop.f32.mrf.mxu3 }
 0x6f9   : > { %v3117_v42 = vpop.f32.mrf.mxu2 }
 0x6fc   : > { %v3143_v0 = vpop.f32.mrf.mxu1 }
 0x6fd   : > { %v3182_v30 = vpop.f32.mrf.mxu0 }
 0x700   : > { %v3154_v52 = vpop.f32.mrf.mxu3 }
 0x701   : > { %v3167_v4 = vpop.f32.mrf.mxu2  ;;  %v3155_v22 = vadd.f32 %v3154_v52, %v3142_v46 }
 0x703   : > { %v3168_v38 = vadd.f32 %v3167_v4, %v3155_v22 }
 0x704   : > { %v3193_v24 = vpop.f32.mrf.mxu1 }
 0x705   : > { %v3232_v26 = vpop.f32.mrf.mxu0  ;;  %v3181_v48 = vadd.f32 %v3180_v18, %v3168_v38 }
 0x707   : > { %v3194_v51 = vadd.f32 %v3193_v24, %v3181_v48 }
 0x708   : > { %v3156_v27 = vpop.f32.mrf.mxu3 }
 0x709   : > { %v3169_v61 = vpop.f32.mrf.mxu2 }
 0x70c   : > { %v3195_v34 = vpop.f32.mrf.mxu1 }
 0x70d   : > { %v3234_v39 = vpop.f32.mrf.mxu0 }
 0x710   : > { %v3206_v44 = vpop.f32.mrf.mxu3 }
 0x711   : > { %v3219_v60 = vpop.f32.mrf.mxu2  ;;  %v3207_v5 = vadd.f32 %v3206_v44, %v3194_v51 }
 0x713   : > { %v3220_v23 = vadd.f32 %v3219_v60, %v3207_v5 }
 0x715   : > { %v3233_v20 = vadd.f32 %v3232_v26, %v3220_v23 }
 0x718   : > { %v3208_v57 = vpop.f32.mrf.mxu3 }
 0x719   : > { %v3221_v13 = vpop.f32.mrf.mxu2 }
 0x724   : > { %v3245_v54 = vpop.f32.mrf.mxu1 }
 0x725   : > { %v3284_v40 = vpop.f32.mrf.mxu0  ;;  %v3246_v36 = vadd.f32 %v3245_v54, %v3233_v20 }
 0x72c   : > { %v3247_v14 = vpop.f32.mrf.mxu1 }
 0x72d   : > { %v3286_v49 = vpop.f32.mrf.mxu0 }
 0x730   : > { %v3258_v3 = vpop.f32.mrf.mxu3 }
 0x731   : > { %v3259_v59 = vadd.f32 %v3258_v3, %v3246_v36  ;;  %v3271_v19 = vpop.f32.mrf.mxu2 }
 0x733   : > { %v3272_v62 = vadd.f32 %v3271_v19, %v3259_v59 }
 0x735   : > { %v3285_v63 = vadd.f32 %v3284_v40, %v3272_v62 }
 0x737   : > { %v3288_v10 = vadd.f32 %v3285_v63, %v4987_v56 }
 0x738   : > { %v3260_v1 = vpop.f32.mrf.mxu3 }
 0x739   : > { %v3273_v6 = vpop.f32.mrf.mxu2  ;;  %v3291_v50 = vsel %vm459_vm0, %v3288_v10, 0.0 }
 0x73a   : > { %3292 = vadd.xlane.f32.xlu1 %v3291_v50 }
 0x7ad   : > { %v3293_v2 = vpop.xlane.xlu1 %3292 }
 0x7ae   : > { %v3294_v37 = vmul.f32 %v3293_v2, %v4860_v17 }
 0x7b0   : > { %v3295_v28 = vsub.f32 %v3288_v10, %v3294_v37 }
 0x7b2   : > { %v3296_v53 = vmul.f32 %v3295_v28, %v3295_v28 }
 0x7b4   : > { %v3297_v7 = vsel %vm459_vm0, %v3296_v53, 0.0 }
 0x7b5   : > { %3298 = vadd.xlane.f32.xlu2 %v3297_v7 }
 0x828   : > { %v3299_v8 = vpop.xlane.xlu2 %3298 }
 0x829   : > { %v3300_v21 = vmul.f32 %v3299_v8, %v4860_v17  ;;  %v4283_v17 = vld [vmem:[%s5551_s12] ss:$0 sm:$0xff] }
 0x82b   : > { %v3301_v9 = vadd.f32 1e-05, %v3300_v21 }
 0x82d   : > { %4352 = vrsqrt.f32 %v3301_v9  ;;  %vm3308_vm15 = vweird.f32 %v3301_v9 }
 0x833   : > { %v4353_v56 = vpop.eup %4352 }
 0x834   : > { %v3303_v11 = vmul.f32 %v4353_v56, %v3301_v9  ;;  %vm3309_vm14 = vweird.f32 %v4353_v56 }
 0x835   : > { %vm3310_vm1 = vmor %vm3308_vm15, %vm3309_vm14 }
 0x836   : > { %v3304_v25 = vmul.f32 %v4353_v56, %v3303_v11 }
 0x838   : > { %v3305_v12 = vmul.f32 0.5, %v3304_v25 }
 0x83a   : > { %v3306_v33 = vsub.f32 1.5, %v3305_v12 }
 0x83c   : > { %v3307_v41 = vmul.f32 %v4353_v56, %v3306_v33 }
 0x83e   : > { %v3311_v32 = vsel %vm3310_vm1, %v4353_v56, %v3307_v41 }
 0x83f   : > { %v3312_v15 = vmul.f32 %v3311_v32, %v3295_v28 }
 0x841   : > { %v3316_v29 = vmul.f32 %v4282_v35, %v3312_v15 }
 0x843   : > { %v3320_v55 = vadd.f32 %v4283_v17, %v3316_v29 }
 0x845   : > { %3321 = vst.msk [vmem:[%s435_s21] sm:$0xff] %vm459_vm0, %v3320_v55 }
 0x846 PF: > { %s23_s25 = sadd.s32 1, %s4361_s25  }
 0x847   : > { %p20_p4 = scmp.ge.s32.totalorder %s23_s25, 4  }
 0x849   :  { %22 = sbr.rel (!%p20_p4) target bundleno = 1 (0x1), region = 102 }

</bundles_post_ra>
